<compile_context>
chip_gen: v7x
topology: tpu7x:2x2x1
jax: 0.10.0
libtpu: 0.0.40
codegen_flags: <defaults>
</compile_context>

<pallas_src>
import functools
import math

import jax
import jax.numpy as jnp
from jax.experimental import pallas as pl
from jax.experimental.pallas import tpu as pltpu

# MXU-input dtype (f32 accumulation kept via preferred_element_type).
_MXU_DTYPE = jnp.bfloat16
_LN_EPS = 1e-5


def _layernorm(y, g, b, eps):
    mu = jnp.mean(y, axis=-1, keepdims=True)
    var = jnp.mean(jnp.square(y - mu), axis=-1, keepdims=True)
    return (y - mu) * jax.lax.rsqrt(var + eps) * g + b


# ----------------------- fused segment-transformer encoder kernel -----------------------
#
# grid = (segment_blocks, num_layers).  Each step runs ONE transformer layer for SB
# segments of length L.  The hidden state [SB*L, Hd] lives in a VMEM scratch carried
# across the layer axis; input projection runs at layer 0 and per-segment mean pooling at
# the last layer.
#
# Weight layouts (leading dim = layer, selected by the BlockSpec index_map):
#   inp_w  [D, Hd] (bf16)        inp_b  [1, Hd] (f32)
#   qkv_w  [Lyr, 3, H, Hd, dh]   qkv_b  [Lyr, 3, H, 1, dh]   (0=q,1=k,2=v; scale folded
#          (bf16)                       (f32)                 into the q slot;
#          qkv_w[l,0,h] == torch in_proj_weight[h*dh:(h+1)*dh, :].T / sqrt(dh), etc.)
#   out_w  [Lyr, H, dh, Hd](bf16)  out_b [Lyr, 1, Hd](f32)
#   ff1_w  [Lyr, Hd, F](bf16)      ff1_b [Lyr, 1, F](f32)
#   ff2_w  [Lyr, F, Hd](bf16)      ff2_b [Lyr, 1, Hd](f32)
#   ln*_g/b [Lyr, 1, Hd](f32)
def _encoder_kernel(x_ref, inp_w_ref, inp_b_ref,
                    qkv_w_ref, qkv_b_ref, out_w_ref, out_b_ref,
                    ln1_g_ref, ln1_b_ref, ff1_w_ref, ff1_b_ref,
                    ff2_w_ref, ff2_b_ref, ln2_g_ref, ln2_b_ref,
                    o_ref, x_sc, *, num_heads, eps):
    lyr = pl.program_id(1)
    SB, L, D = x_ref.shape
    R = SB * L
    Hd = x_sc.shape[-1]
    dh = Hd // num_heads

    # ---- layer-0 prologue: input projection (once per segment block) ----
    @pl.when(lyr == 0)
    def _():
        xin = x_ref[...].reshape(R, D).astype(_MXU_DTYPE)
        x_sc[...] = (jnp.dot(xin, inp_w_ref[...],
                             preferred_element_type=jnp.float32) + inp_b_ref[...])

    x = x_sc[...]                              # [R, Hd] f32 residual stream
    xb = x.astype(_MXU_DTYPE)                  # hoisted cast, feeds all q/k/v projections

    # ---- multi-head self-attention, strictly per segment ----
    attn = None
    for h in range(num_heads):
        q = (jnp.dot(xb, qkv_w_ref[0, 0, h], preferred_element_type=jnp.float32)
             + qkv_b_ref[0, 0, h])             # 1/sqrt(dh) already folded into W_q, b_q
        k = (jnp.dot(xb, qkv_w_ref[0, 1, h], preferred_element_type=jnp.float32)
             + qkv_b_ref[0, 1, h])
        v = (jnp.dot(xb, qkv_w_ref[0, 2, h], preferred_element_type=jnp.float32)
             + qkv_b_ref[0, 2, h])
        q3 = q.reshape(SB, L, dh).astype(_MXU_DTYPE)
        k3 = k.reshape(SB, L, dh).astype(_MXU_DTYPE)
        v3 = v.reshape(SB, L, dh).astype(_MXU_DTYPE)

        s = jnp.einsum('bqd,bkd->bqk', q3, k3,
                       preferred_element_type=jnp.float32)          # [SB, L, L]
        s = s - jnp.max(s, axis=-1, keepdims=True)
        p = jnp.exp(s)
        p = p * pl.reciprocal(jnp.sum(p, axis=-1, keepdims=True), approx=True)
        head = jnp.einsum('bqk,bkd->bqd', p.astype(_MXU_DTYPE), v3,
                          preferred_element_type=jnp.float32)        # [SB, L, dh]
        head = head.reshape(R, dh).astype(_MXU_DTYPE)
        contrib = jnp.dot(head, out_w_ref[0, h],
                          preferred_element_type=jnp.float32)        # [R, Hd]
        attn = contrib if attn is None else attn + contrib
    attn = attn + out_b_ref[0]

    x = _layernorm(x + attn, ln1_g_ref[0], ln1_b_ref[0], eps)

    # ---- feed-forward (ReLU), activation stays in VMEM/vregs ----
    xb2 = x.astype(_MXU_DTYPE)
    ff = jnp.maximum(jnp.dot(xb2, ff1_w_ref[0],
                             preferred_element_type=jnp.float32) + ff1_b_ref[0], 0.0)
    ff = (jnp.dot(ff.astype(_MXU_DTYPE), ff2_w_ref[0],
                  preferred_element_type=jnp.float32) + ff2_b_ref[0])
    x = _layernorm(x + ff, ln2_g_ref[0], ln2_b_ref[0], eps)
    x_sc[...] = x

    # ---- last-layer epilogue: per-segment mean pooling ----
    @pl.when(lyr == pl.num_programs(1) - 1)
    def _():
        pooled = jnp.mean(x.reshape(SB, L, Hd), axis=1)               # [SB, Hd]
        o_ref[0] = pooled.astype(o_ref.dtype)


def _pick_seg_block(num_seg, seg_len, max_rows=512):
    """Segments per grid step.  Caps rows-per-block (bounds the [rows, dim_ff] FF
    activation in VMEM) and prefers >= 2 grid steps so the 'parallel' axis can be split
    across TensorCores.  Never falls back to an unbounded block."""
    divisors = [d for d in range(1, num_seg + 1) if num_seg % d == 0]
    fitting = [d for d in divisors if d * seg_len <= max_rows] or [1]
    multi = [d for d in fitting if num_seg // d >= 2]
    return max(multi) if multi else max(fitting)


_ENC_WEIGHT_NAMES = ("inp_w", "inp_b", "qkv_w", "qkv_b", "out_w", "out_b",
                     "ln1_g", "ln1_b", "ff1_w", "ff1_b", "ff2_w", "ff2_b",
                     "ln2_g", "ln2_b")


def segment_encoder(x3, params, *, num_heads, num_layers):
    """x3: [num_seg, seg_len, D] (each row = one segment) -> pooled [num_seg, hidden]."""
    num_seg, seg_len, D = x3.shape
    hidden = params["inp_w"].shape[-1]
    sb = _pick_seg_block(num_seg, seg_len)
    num_blocks = num_seg // sb
    rows = sb * seg_len

    weights = [params[n] for n in _ENC_WEIGHT_NAMES]

    def const_spec(a):              # whole array resident (input projection weights)
        nd = a.ndim
        return pl.BlockSpec(a.shape, lambda i, l, nd=nd: (0,) * nd)

    def per_layer_spec(a):          # leading dim streamed along the layer grid axis
        nd = a.ndim
        return pl.BlockSpec((1,) + a.shape[1:],
                            lambda i, l, nd=nd: (l,) + (0,) * (nd - 1))

    in_specs = ([pl.BlockSpec((sb, seg_len, D), lambda i, l: (i, 0, 0)),
                 const_spec(params["inp_w"]), const_spec(params["inp_b"])]
                + [per_layer_spec(params[n]) for n in _ENC_WEIGHT_NAMES[2:]])

    out = pl.pallas_call(
        functools.partial(_encoder_kernel, num_heads=num_heads, eps=_LN_EPS),
        out_shape=jax.ShapeDtypeStruct((num_blocks, sb, hidden), jnp.float32),
        grid=(num_blocks, num_layers),
        in_specs=in_specs,
        out_specs=pl.BlockSpec((1, sb, hidden), lambda i, l: (i, 0, 0)),
        scratch_shapes=[pltpu.VMEM((rows, hidden), jnp.float32)],
        compiler_params=pltpu.CompilerParams(
            dimension_semantics=("parallel", "arbitrary"),
            vmem_limit_bytes=48 * 1024 * 1024),
    )(x3, *weights)
    return out.reshape(num_seg, hidden)


# --------------------- final projection: tiny M, single-K, N-tiled ----------------------

def _proj_kernel(x_ref, w_ref, b_ref, o_ref):
    o_ref[...] = (jnp.dot(x_ref[...].astype(_MXU_DTYPE), w_ref[...],
                          preferred_element_type=jnp.float32)
                  + b_ref[...]).astype(o_ref.dtype)


def final_projection(x, w, b):
    """y = x @ w + b.  M (=batch) is tiny -> no K grid axis / accumulator; sweep N with
    lane-dense tiles.  w is expected in bf16 (pre-cast once)."""
    M, K = x.shape
    N = w.shape[1]
    tn = next((t for t in (512, 256, 128) if N % t == 0), N)
    return pl.pallas_call(
        _proj_kernel,
        out_shape=jax.ShapeDtypeStruct((M, N), jnp.float32),
        grid=(N // tn,),
        in_specs=[pl.BlockSpec((M, K), lambda j: (0, 0)),
                  pl.BlockSpec((K, tn), lambda j: (0, j)),
                  pl.BlockSpec((1, tn), lambda j: (0, j))],
        out_specs=pl.BlockSpec((M, tn), lambda j: (0, j)),
        compiler_params=pltpu.CompilerParams(dimension_semantics=("parallel",)),
    )(x, w, b.reshape(1, N))


# --------------------------------------- forward ----------------------------------------

def segmented_feature_extractor(features, params, *, num_segments, music_seq_len,
                                num_heads, num_layers):
    """features: [B, seq_len, input_dim] -> [B, music_seq_len, hidden_dim]."""
    B, S, D = features.shape
    hidden = params["inp_w"].shape[-1]
    seg = S // num_segments
    rem = S - seg * num_segments

    if rem == 0:
        # All segments equal length: batch them as leading rows -> one fused call.
        x3 = features.reshape(B * num_segments, seg, D)
        emb = segment_encoder(x3, params, num_heads=num_heads, num_layers=num_layers)
        seg_emb = emb.reshape(B, num_segments * hidden)
    else:
        # Ragged last segment (matches the PyTorch loop): leading segments batched,
        # the longer final segment handled by one extra fused call.
        lead = features[:, :(num_segments - 1) * seg, :].reshape(
            B * (num_segments - 1), seg, D)
        emb_lead = segment_encoder(lead, params, num_heads=num_heads,
                                   num_layers=num_layers)
        emb_lead = emb_lead.reshape(B, num_segments - 1, hidden)
        last = features[:, (num_segments - 1) * seg:, :]          # [B, seg+rem, D]
        emb_last = segment_encoder(last, params, num_heads=num_heads,
                                   num_layers=num_layers).reshape(B, 1, hidden)
        seg_emb = jnp.concatenate([emb_lead, emb_last], axis=1)
        seg_emb = seg_emb.reshape(B, num_segments * hidden)

    out = final_projection(seg_emb, params["proj_w"], params["proj_b"])
    return out.reshape(B, music_seq_len, -1)


# ---------------------------------- params & reference ----------------------------------

def init_params(key, *, input_dim, hidden_dim, num_heads, num_layers,
                num_segments, music_seq_len, dim_ff=2048):
    dh = hidden_dim // num_heads
    keys = iter(jax.random.split(key, 16))

    def rnd(shape, scale=0.05):
        return jax.random.normal(next(keys), shape, jnp.float32) * scale

    return {
        "inp_w": rnd((input_dim, hidden_dim)),
        "inp_b": rnd((1, hidden_dim)),
        "qkv_w": rnd((num_layers, 3, num_heads, hidden_dim, dh)),
        "qkv_b": rnd((num_layers, 3, num_heads, 1, dh)),
        "out_w": rnd((num_layers, num_heads, dh, hidden_dim)),
        "out_b": rnd((num_layers, 1, hidden_dim)),
        "ff1_w": rnd((num_layers, hidden_dim, dim_ff)),
        "ff1_b": rnd((num_layers, 1, dim_ff)),
        "ff2_w": rnd((num_layers, dim_ff, hidden_dim)),
        "ff2_b": rnd((num_layers, 1, hidden_dim)),
        "ln1_g": jnp.ones((num_layers, 1, hidden_dim), jnp.float32),
        "ln1_b": jnp.zeros((num_layers, 1, hidden_dim), jnp.float32),
        "ln2_g": jnp.ones((num_layers, 1, hidden_dim), jnp.float32),
        "ln2_b": jnp.zeros((num_layers, 1, hidden_dim), jnp.float32),
        "proj_w": rnd((hidden_dim * num_segments, hidden_dim * music_seq_len)),
        "proj_b": rnd((hidden_dim * music_seq_len,)),
    }


def prepare_params(params):
    """Fold 1/sqrt(dh) into the Q projection and pre-cast matmul weights to bf16 once."""
    dh = params["qkv_w"].shape[-1]
    scale = 1.0 / math.sqrt(dh)
    p = dict(params)
    p["qkv_w"] = params["qkv_w"].at[:, 0].multiply(scale).astype(_MXU_DTYPE)
    p["qkv_b"] = params["qkv_b"].at[:, 0].multiply(scale)
    for n in ("inp_w", "out_w", "ff1_w", "ff2_w", "proj_w"):
        p[n] = params[n].astype(_MXU_DTYPE)
    return p


def reference_forward(features, params, *, num_segments, music_seq_len,
                      num_heads, num_layers):
    """Pure-JAX f32 reference matching the PyTorch module (eval mode)."""
    B, S, _ = features.shape
    hidden = params["inp_w"].shape[-1]
    dh = hidden // num_heads
    seg = S // num_segments

    def encode(x):                                         # x: [B, T, D]
        x = x @ params["inp_w"] + params["inp_b"]
        for l in range(num_layers):
            attn = 0.0
            for h in range(num_heads):
                q = x @ params["qkv_w"][l, 0, h] + params["qkv_b"][l, 0, h]
                k = x @ params["qkv_w"][l, 1, h] + params["qkv_b"][l, 1, h]
                v = x @ params["qkv_w"][l, 2, h] + params["qkv_b"][l, 2, h]
                s = jnp.einsum("btd,bsd->bts", q, k) / math.sqrt(dh)
                pr = jax.nn.softmax(s, axis=-1)
                attn = attn + jnp.einsum("bts,bsd->btd", pr, v) @ params["out_w"][l, h]
            attn = attn + params["out_b"][l]
            x = _layernorm(x + attn, params["ln1_g"][l], params["ln1_b"][l], _LN_EPS)
            ff = jax.nn.relu(x @ params["ff1_w"][l] + params["ff1_b"][l])
            ff = ff @ params["ff2_w"][l] + params["ff2_b"][l]
            x = _layernorm(x + ff, params["ln2_g"][l], params["ln2_b"][l], _LN_EPS)
        return x.mean(axis=1)                              # [B, hidden]

    embs = []
    for s_ in range(num_segments):
        start = s_ * seg
        end = (s_ + 1) * seg if s_ < num_segments - 1 else S
        embs.append(encode(features[:, start:end, :]))
    seg_emb = jnp.concatenate(embs, axis=1)
    out = seg_emb @ params["proj_w"] + params["proj_b"]
    return out.reshape(B, music_seq_len, -1)


# ----------------------------------------- main ------------------------------------------

if __name__ == "__main__":
    batch, seq_len, input_dim = 2, 16, 16
    num_segments, hidden_dim, num_heads, num_layers, music_seq_len = 2, 32, 4, 2, 4

    key = jax.random.PRNGKey(0)
    kx, kp = jax.random.split(key)
    x = jax.random.normal(kx, (batch, seq_len, input_dim), dtype=jnp.float32)

    params_f32 = init_params(
        kp, input_dim=input_dim, hidden_dim=hidden_dim, num_heads=num_heads,
        num_layers=num_layers, num_segments=num_segments, music_seq_len=music_seq_len,
        dim_ff=2048)  # nn.TransformerEncoderLayer default dim_feedforward
    kparams = prepare_params(params_f32)

    fwd = jax.jit(functools.partial(
        segmented_feature_extractor, num_segments=num_segments,
        music_seq_len=music_seq_len, num_heads=num_heads, num_layers=num_layers))

    out = jax.block_until_ready(fwd(x, kparams))

    assert out.shape == (batch, music_seq_len, hidden_dim), out.shape
    assert bool(jnp.all(jnp.isfinite(out)))

    ref = reference_forward(x, params_f32, num_segments=num_segments,
                            music_seq_len=music_seq_len, num_heads=num_heads,
                            num_layers=num_layers)
    max_err = float(jnp.max(jnp.abs(out - ref)))
    assert max_err < 1e-1, f"max abs error vs reference: {max_err}"
    print("KERNEL_OK")
</pallas_src>

<mosaic_0001>
module attributes {stable_mosaic.version = 11 : i64} {
  func.func @_encoder_kernel(%arg0: i32, %arg1: i32, %arg2: memref<2x8x16xf32, #tpu.memory_space<vmem>>, %arg3: memref<16x32xbf16, #tpu.memory_space<vmem>>, %arg4: memref<1x32xf32, #tpu.memory_space<vmem>>, %arg5: memref<1x3x4x32x8xbf16, #tpu.memory_space<vmem>>, %arg6: memref<1x3x4x1x8xf32, #tpu.memory_space<vmem>>, %arg7: memref<1x4x8x32xbf16, #tpu.memory_space<vmem>>, %arg8: memref<1x1x32xf32, #tpu.memory_space<vmem>>, %arg9: memref<1x1x32xf32, #tpu.memory_space<vmem>>, %arg10: memref<1x1x32xf32, #tpu.memory_space<vmem>>, %arg11: memref<1x32x2048xbf16, #tpu.memory_space<vmem>>, %arg12: memref<1x1x2048xf32, #tpu.memory_space<vmem>>, %arg13: memref<1x2048x32xbf16, #tpu.memory_space<vmem>>, %arg14: memref<1x1x32xf32, #tpu.memory_space<vmem>>, %arg15: memref<1x1x32xf32, #tpu.memory_space<vmem>>, %arg16: memref<1x1x32xf32, #tpu.memory_space<vmem>>, %arg17: memref<1x2x32xf32, #tpu.memory_space<vmem>>, %arg18: memref<16x32xf32, #tpu.memory_space<vmem>>) attributes {dimension_semantics = [#tpu.dimension_semantics<parallel>, #tpu.dimension_semantics<arbitrary>], iteration_bounds = array<i64: 2, 2>, scalar_prefetch = 0 : i64, scratch_operands = 1 : i64, tpu.core_type = #tpu.core_type<tc>, window_params = [{transform_indices = @transform_0, window_bounds = array<i64: 2, 8, 16>}, {pipeline_mode = #tpu.pipeline_mode<synchronous>, transform_indices = @transform_1, window_bounds = array<i64: 16, 32>}, {pipeline_mode = #tpu.pipeline_mode<synchronous>, transform_indices = @transform_2, window_bounds = array<i64: 1, 32>}, {transform_indices = @transform_3, window_bounds = array<i64: 1, 3, 4, 32, 8>}, {transform_indices = @transform_4, window_bounds = array<i64: 1, 3, 4, 1, 8>}, {transform_indices = @transform_5, window_bounds = array<i64: 1, 4, 8, 32>}, {transform_indices = @transform_6, window_bounds = array<i64: 1, 1, 32>}, {transform_indices = @transform_7, window_bounds = array<i64: 1, 1, 32>}, {transform_indices = @transform_8, window_bounds = array<i64: 1, 1, 32>}, {transform_indices = @transform_9, window_bounds = array<i64: 1, 32, 2048>}, {transform_indices = @transform_10, window_bounds = array<i64: 1, 1, 2048>}, {transform_indices = @transform_11, window_bounds = array<i64: 1, 2048, 32>}, {transform_indices = @transform_12, window_bounds = array<i64: 1, 1, 32>}, {transform_indices = @transform_13, window_bounds = array<i64: 1, 1, 32>}, {transform_indices = @transform_14, window_bounds = array<i64: 1, 1, 32>}, {transform_indices = @transform_15, window_bounds = array<i64: 1, 2, 32>}]} {
    %c0_i32 = arith.constant 0 : i32
    %0 = arith.cmpi eq, %arg1, %c0_i32 : i32
    %1 = arith.extui %0 : i1 to i32
    %c0_i32_0 = arith.constant 0 : i32
    %2 = arith.cmpi ne, %1, %c0_i32_0 : i32
    scf.if %2 {
      %c0_209 = arith.constant 0 : index
      %c0_210 = arith.constant 0 : index
      %c0_211 = arith.constant 0 : index
      %268 = vector.load %arg2[%c0_209, %c0_210, %c0_211] : memref<2x8x16xf32, #tpu.memory_space<vmem>>, vector<2x8x16xf32>
      %269 = vector.shape_cast %268 : vector<2x8x16xf32> to vector<16x16xf32>
      %270 = arith.truncf %269 : vector<16x16xf32> to vector<16x16xbf16>
      %c0_212 = arith.constant 0 : index
      %c0_213 = arith.constant 0 : index
      %271 = vector.load %arg3[%c0_212, %c0_213] : memref<16x32xbf16, #tpu.memory_space<vmem>>, vector<16x32xbf16>
      %cst_214 = arith.constant dense<0.000000e+00> : vector<16x32xf32>
      %272 = tpu.matmul %270, %271, %cst_214 {dimension_numbers = #tpu.dot_dimension_numbers<[1], [0], [0], [1], [0, 0, 1, 1], [], []>} : vector<16x16xbf16>, vector<16x32xbf16>, vector<16x32xf32> -> vector<16x32xf32>
      %c0_215 = arith.constant 0 : index
      %c0_216 = arith.constant 0 : index
      %273 = vector.load %arg4[%c0_215, %c0_216] : memref<1x32xf32, #tpu.memory_space<vmem>>, vector<1x32xf32>
      %274 = vector.broadcast %273 : vector<1x32xf32> to vector<16x32xf32>
      %275 = arith.addf %272, %274 : vector<16x32xf32>
      %c0_217 = arith.constant 0 : index
      %c0_218 = arith.constant 0 : index
      %276 = vector.load %arg18[%c0_217, %c0_218] : memref<16x32xf32, #tpu.memory_space<vmem>>, vector<16x32xf32>
      tpu.vector_store %arg18[%c0_217, %c0_218], %275 {strides = array<i32>} : memref<16x32xf32, #tpu.memory_space<vmem>>, vector<16x32xf32>,
    } else {
    }
    %c0 = arith.constant 0 : index
    %c0_1 = arith.constant 0 : index
    %3 = vector.load %arg18[%c0, %c0_1] : memref<16x32xf32, #tpu.memory_space<vmem>>, vector<16x32xf32>
    %4 = arith.truncf %3 : vector<16x32xf32> to vector<16x32xbf16>
    %c0_2 = arith.constant 0 : index
    %c0_3 = arith.constant 0 : index
    %c0_4 = arith.constant 0 : index
    %c0_5 = arith.constant 0 : index
    %c0_6 = arith.constant 0 : index
    %5 = vector.load %arg5[%c0_2, %c0_3, %c0_4, %c0_5, %c0_6] : memref<1x3x4x32x8xbf16, #tpu.memory_space<vmem>>, vector<1x1x1x32x8xbf16>
    %6 = vector.shape_cast %5 : vector<1x1x1x32x8xbf16> to vector<32x8xbf16>
    %cst = arith.constant dense<0.000000e+00> : vector<16x8xf32>
    %7 = tpu.matmul %4, %6, %cst {dimension_numbers = #tpu.dot_dimension_numbers<[1], [0], [0], [1], [0, 0, 1, 1], [], []>} : vector<16x32xbf16>, vector<32x8xbf16>, vector<16x8xf32> -> vector<16x8xf32>
    %c0_7 = arith.constant 0 : index
    %c0_8 = arith.constant 0 : index
    %c0_9 = arith.constant 0 : index
    %c0_10 = arith.constant 0 : index
    %c0_11 = arith.constant 0 : index
    %8 = vector.load %arg6[%c0_7, %c0_8, %c0_9, %c0_10, %c0_11] : memref<1x3x4x1x8xf32, #tpu.memory_space<vmem>>, vector<1x1x1x1x8xf32>
    %9 = vector.shape_cast %8 : vector<1x1x1x1x8xf32> to vector<1x8xf32>
    %10 = vector.broadcast %9 : vector<1x8xf32> to vector<16x8xf32>
    %11 = arith.addf %7, %10 : vector<16x8xf32>
    %c0_12 = arith.constant 0 : index
    %c1 = arith.constant 1 : index
    %c0_13 = arith.constant 0 : index
    %c0_14 = arith.constant 0 : index
    %c0_15 = arith.constant 0 : index
    %12 = vector.load %arg5[%c0_12, %c1, %c0_13, %c0_14, %c0_15] : memref<1x3x4x32x8xbf16, #tpu.memory_space<vmem>>, vector<1x1x1x32x8xbf16>
    %13 = vector.shape_cast %12 : vector<1x1x1x32x8xbf16> to vector<32x8xbf16>
    %cst_16 = arith.constant dense<0.000000e+00> : vector<16x8xf32>
    %14 = tpu.matmul %4, %13, %cst_16 {dimension_numbers = #tpu.dot_dimension_numbers<[1], [0], [0], [1], [0, 0, 1, 1], [], []>} : vector<16x32xbf16>, vector<32x8xbf16>, vector<16x8xf32> -> vector<16x8xf32>
    %c0_17 = arith.constant 0 : index
    %c1_18 = arith.constant 1 : index
    %c0_19 = arith.constant 0 : index
    %c0_20 = arith.constant 0 : index
    %c0_21 = arith.constant 0 : index
    %15 = vector.load %arg6[%c0_17, %c1_18, %c0_19, %c0_20, %c0_21] : memref<1x3x4x1x8xf32, #tpu.memory_space<vmem>>, vector<1x1x1x1x8xf32>
    %16 = vector.shape_cast %15 : vector<1x1x1x1x8xf32> to vector<1x8xf32>
    %17 = vector.broadcast %16 : vector<1x8xf32> to vector<16x8xf32>
    %18 = arith.addf %14, %17 : vector<16x8xf32>
    %c0_22 = arith.constant 0 : index
    %c2 = arith.constant 2 : index
    %c0_23 = arith.constant 0 : index
    %c0_24 = arith.constant 0 : index
    %c0_25 = arith.constant 0 : index
    %19 = vector.load %arg5[%c0_22, %c2, %c0_23, %c0_24, %c0_25] : memref<1x3x4x32x8xbf16, #tpu.memory_space<vmem>>, vector<1x1x1x32x8xbf16>
    %20 = vector.shape_cast %19 : vector<1x1x1x32x8xbf16> to vector<32x8xbf16>
    %cst_26 = arith.constant dense<0.000000e+00> : vector<16x8xf32>
    %21 = tpu.matmul %4, %20, %cst_26 {dimension_numbers = #tpu.dot_dimension_numbers<[1], [0], [0], [1], [0, 0, 1, 1], [], []>} : vector<16x32xbf16>, vector<32x8xbf16>, vector<16x8xf32> -> vector<16x8xf32>
    %c0_27 = arith.constant 0 : index
    %c2_28 = arith.constant 2 : index
    %c0_29 = arith.constant 0 : index
    %c0_30 = arith.constant 0 : index
    %c0_31 = arith.constant 0 : index
    %22 = vector.load %arg6[%c0_27, %c2_28, %c0_29, %c0_30, %c0_31] : memref<1x3x4x1x8xf32, #tpu.memory_space<vmem>>, vector<1x1x1x1x8xf32>
    %23 = vector.shape_cast %22 : vector<1x1x1x1x8xf32> to vector<1x8xf32>
    %24 = vector.broadcast %23 : vector<1x8xf32> to vector<16x8xf32>
    %25 = arith.addf %21, %24 : vector<16x8xf32>
    %26 = vector.shape_cast %11 : vector<16x8xf32> to vector<2x8x8xf32>
    %27 = arith.truncf %26 : vector<2x8x8xf32> to vector<2x8x8xbf16>
    %28 = vector.shape_cast %18 : vector<16x8xf32> to vector<2x8x8xf32>
    %29 = arith.truncf %28 : vector<2x8x8xf32> to vector<2x8x8xbf16>
    %30 = vector.shape_cast %25 : vector<16x8xf32> to vector<2x8x8xf32>
    %31 = arith.truncf %30 : vector<2x8x8xf32> to vector<2x8x8xbf16>
    "tpu.trace_start"() <{level = 10 : i32, message = "bqd,bkd->bqk"}> : () -> ()
    %cst_32 = arith.constant dense<0.000000e+00> : vector<2x8x8xf32>
    %32 = tpu.matmul %27, %29, %cst_32 {dimension_numbers = #tpu.dot_dimension_numbers<[2], [2], [1], [1], [0, 0, 0, 1, 1, 1], [0], [0]>} : vector<2x8x8xbf16>, vector<2x8x8xbf16>, vector<2x8x8xf32> -> vector<2x8x8xf32>
    "tpu.trace_stop"() : () -> ()
    %cst_33 = arith.constant dense<0xFF800000> : vector<2x8xf32>
    %33 = vector.multi_reduction <maximumf>, %32, %cst_33 [2] : vector<2x8x8xf32> to vector<2x8xf32>
    %34 = vector.shape_cast %33 : vector<2x8xf32> to vector<2x8x1xf32>
    %35 = vector.broadcast %34 : vector<2x8x1xf32> to vector<2x8x8xf32>
    %36 = arith.subf %32, %35 : vector<2x8x8xf32>
    %37 = math.exp %36 : vector<2x8x8xf32>
    %cst_34 = arith.constant dense<0.000000e+00> : vector<2x8xf32>
    %38 = vector.multi_reduction <add>, %37, %cst_34 [2] : vector<2x8x8xf32> to vector<2x8xf32>
    %39 = vector.shape_cast %38 : vector<2x8xf32> to vector<2x8x1xf32>
    %40 = tpu.reciprocal %39 {approx = true} : vector<2x8x1xf32> -> vector<2x8x1xf32>
    %41 = vector.broadcast %40 : vector<2x8x1xf32> to vector<2x8x8xf32>
    %42 = arith.mulf %37, %41 : vector<2x8x8xf32>
    %43 = arith.truncf %42 : vector<2x8x8xf32> to vector<2x8x8xbf16>
    "tpu.trace_start"() <{level = 10 : i32, message = "bqk,bkd->bqd"}> : () -> ()
    %cst_35 = arith.constant dense<0.000000e+00> : vector<2x8x8xf32>
    %44 = tpu.matmul %43, %31, %cst_35 {dimension_numbers = #tpu.dot_dimension_numbers<[2], [1], [1], [2], [0, 0, 0, 1, 1, 2], [0], [0]>} : vector<2x8x8xbf16>, vector<2x8x8xbf16>, vector<2x8x8xf32> -> vector<2x8x8xf32>
    "tpu.trace_stop"() : () -> ()
    %45 = vector.shape_cast %44 : vector<2x8x8xf32> to vector<16x8xf32>
    %46 = arith.truncf %45 : vector<16x8xf32> to vector<16x8xbf16>
    %c0_36 = arith.constant 0 : index
    %c0_37 = arith.constant 0 : index
    %c0_38 = arith.constant 0 : index
    %c0_39 = arith.constant 0 : index
    %47 = vector.load %arg7[%c0_36, %c0_37, %c0_38, %c0_39] : memref<1x4x8x32xbf16, #tpu.memory_space<vmem>>, vector<1x1x8x32xbf16>
    %48 = vector.shape_cast %47 : vector<1x1x8x32xbf16> to vector<8x32xbf16>
    %cst_40 = arith.constant dense<0.000000e+00> : vector<16x32xf32>
    %49 = tpu.matmul %46, %48, %cst_40 {dimension_numbers = #tpu.dot_dimension_numbers<[1], [0], [0], [1], [0, 0, 1, 1], [], []>} : vector<16x8xbf16>, vector<8x32xbf16>, vector<16x32xf32> -> vector<16x32xf32>
    %c0_41 = arith.constant 0 : index
    %c0_42 = arith.constant 0 : index
    %c1_43 = arith.constant 1 : index
    %c0_44 = arith.constant 0 : index
    %c0_45 = arith.constant 0 : index
    %50 = vector.load %arg5[%c0_41, %c0_42, %c1_43, %c0_44, %c0_45] : memref<1x3x4x32x8xbf16, #tpu.memory_space<vmem>>, vector<1x1x1x32x8xbf16>
    %51 = vector.shape_cast %50 : vector<1x1x1x32x8xbf16> to vector<32x8xbf16>
    %cst_46 = arith.constant dense<0.000000e+00> : vector<16x8xf32>
    %52 = tpu.matmul %4, %51, %cst_46 {dimension_numbers = #tpu.dot_dimension_numbers<[1], [0], [0], [1], [0, 0, 1, 1], [], []>} : vector<16x32xbf16>, vector<32x8xbf16>, vector<16x8xf32> -> vector<16x8xf32>
    %c0_47 = arith.constant 0 : index
    %c0_48 = arith.constant 0 : index
    %c1_49 = arith.constant 1 : index
    %c0_50 = arith.constant 0 : index
    %c0_51 = arith.constant 0 : index
    %53 = vector.load %arg6[%c0_47, %c0_48, %c1_49, %c0_50, %c0_51] : memref<1x3x4x1x8xf32, #tpu.memory_space<vmem>>, vector<1x1x1x1x8xf32>
    %54 = vector.shape_cast %53 : vector<1x1x1x1x8xf32> to vector<1x8xf32>
    %55 = vector.broadcast %54 : vector<1x8xf32> to vector<16x8xf32>
    %56 = arith.addf %52, %55 : vector<16x8xf32>
    %c0_52 = arith.constant 0 : index
    %c1_53 = arith.constant 1 : index
    %c1_54 = arith.constant 1 : index
    %c0_55 = arith.constant 0 : index
    %c0_56 = arith.constant 0 : index
    %57 = vector.load %arg5[%c0_52, %c1_53, %c1_54, %c0_55, %c0_56] : memref<1x3x4x32x8xbf16, #tpu.memory_space<vmem>>, vector<1x1x1x32x8xbf16>
    %58 = vector.shape_cast %57 : vector<1x1x1x32x8xbf16> to vector<32x8xbf16>
    %cst_57 = arith.constant dense<0.000000e+00> : vector<16x8xf32>
    %59 = tpu.matmul %4, %58, %cst_57 {dimension_numbers = #tpu.dot_dimension_numbers<[1], [0], [0], [1], [0, 0, 1, 1], [], []>} : vector<16x32xbf16>, vector<32x8xbf16>, vector<16x8xf32> -> vector<16x8xf32>
    %c0_58 = arith.constant 0 : index
    %c1_59 = arith.constant 1 : index
    %c1_60 = arith.constant 1 : index
    %c0_61 = arith.constant 0 : index
    %c0_62 = arith.constant 0 : index
    %60 = vector.load %arg6[%c0_58, %c1_59, %c1_60, %c0_61, %c0_62] : memref<1x3x4x1x8xf32, #tpu.memory_space<vmem>>, vector<1x1x1x1x8xf32>
    %61 = vector.shape_cast %60 : vector<1x1x1x1x8xf32> to vector<1x8xf32>
    %62 = vector.broadcast %61 : vector<1x8xf32> to vector<16x8xf32>
    %63 = arith.addf %59, %62 : vector<16x8xf32>
    %c0_63 = arith.constant 0 : index
    %c2_64 = arith.constant 2 : index
    %c1_65 = arith.constant 1 : index
    %c0_66 = arith.constant 0 : index
    %c0_67 = arith.constant 0 : index
    %64 = vector.load %arg5[%c0_63, %c2_64, %c1_65, %c0_66, %c0_67] : memref<1x3x4x32x8xbf16, #tpu.memory_space<vmem>>, vector<1x1x1x32x8xbf16>
    %65 = vector.shape_cast %64 : vector<1x1x1x32x8xbf16> to vector<32x8xbf16>
    %cst_68 = arith.constant dense<0.000000e+00> : vector<16x8xf32>
    %66 = tpu.matmul %4, %65, %cst_68 {dimension_numbers = #tpu.dot_dimension_numbers<[1], [0], [0], [1], [0, 0, 1, 1], [], []>} : vector<16x32xbf16>, vector<32x8xbf16>, vector<16x8xf32> -> vector<16x8xf32>
    %c0_69 = arith.constant 0 : index
    %c2_70 = arith.constant 2 : index
    %c1_71 = arith.constant 1 : index
    %c0_72 = arith.constant 0 : index
    %c0_73 = arith.constant 0 : index
    %67 = vector.load %arg6[%c0_69, %c2_70, %c1_71, %c0_72, %c0_73] : memref<1x3x4x1x8xf32, #tpu.memory_space<vmem>>, vector<1x1x1x1x8xf32>
    %68 = vector.shape_cast %67 : vector<1x1x1x1x8xf32> to vector<1x8xf32>
    %69 = vector.broadcast %68 : vector<1x8xf32> to vector<16x8xf32>
    %70 = arith.addf %66, %69 : vector<16x8xf32>
    %71 = vector.shape_cast %56 : vector<16x8xf32> to vector<2x8x8xf32>
    %72 = arith.truncf %71 : vector<2x8x8xf32> to vector<2x8x8xbf16>
    %73 = vector.shape_cast %63 : vector<16x8xf32> to vector<2x8x8xf32>
    %74 = arith.truncf %73 : vector<2x8x8xf32> to vector<2x8x8xbf16>
    %75 = vector.shape_cast %70 : vector<16x8xf32> to vector<2x8x8xf32>
    %76 = arith.truncf %75 : vector<2x8x8xf32> to vector<2x8x8xbf16>
    "tpu.trace_start"() <{level = 10 : i32, message = "bqd,bkd->bqk"}> : () -> ()
    %cst_74 = arith.constant dense<0.000000e+00> : vector<2x8x8xf32>
    %77 = tpu.matmul %72, %74, %cst_74 {dimension_numbers = #tpu.dot_dimension_numbers<[2], [2], [1], [1], [0, 0, 0, 1, 1, 1], [0], [0]>} : vector<2x8x8xbf16>, vector<2x8x8xbf16>, vector<2x8x8xf32> -> vector<2x8x8xf32>
    "tpu.trace_stop"() : () -> ()
    %cst_75 = arith.constant dense<0xFF800000> : vector<2x8xf32>
    %78 = vector.multi_reduction <maximumf>, %77, %cst_75 [2] : vector<2x8x8xf32> to vector<2x8xf32>
    %79 = vector.shape_cast %78 : vector<2x8xf32> to vector<2x8x1xf32>
    %80 = vector.broadcast %79 : vector<2x8x1xf32> to vector<2x8x8xf32>
    %81 = arith.subf %77, %80 : vector<2x8x8xf32>
    %82 = math.exp %81 : vector<2x8x8xf32>
    %cst_76 = arith.constant dense<0.000000e+00> : vector<2x8xf32>
    %83 = vector.multi_reduction <add>, %82, %cst_76 [2] : vector<2x8x8xf32> to vector<2x8xf32>
    %84 = vector.shape_cast %83 : vector<2x8xf32> to vector<2x8x1xf32>
    %85 = tpu.reciprocal %84 {approx = true} : vector<2x8x1xf32> -> vector<2x8x1xf32>
    %86 = vector.broadcast %85 : vector<2x8x1xf32> to vector<2x8x8xf32>
    %87 = arith.mulf %82, %86 : vector<2x8x8xf32>
    %88 = arith.truncf %87 : vector<2x8x8xf32> to vector<2x8x8xbf16>
    "tpu.trace_start"() <{level = 10 : i32, message = "bqk,bkd->bqd"}> : () -> ()
    %cst_77 = arith.constant dense<0.000000e+00> : vector<2x8x8xf32>
    %89 = tpu.matmul %88, %76, %cst_77 {dimension_numbers = #tpu.dot_dimension_numbers<[2], [1], [1], [2], [0, 0, 0, 1, 1, 2], [0], [0]>} : vector<2x8x8xbf16>, vector<2x8x8xbf16>, vector<2x8x8xf32> -> vector<2x8x8xf32>
    "tpu.trace_stop"() : () -> ()
    %90 = vector.shape_cast %89 : vector<2x8x8xf32> to vector<16x8xf32>
    %91 = arith.truncf %90 : vector<16x8xf32> to vector<16x8xbf16>
    %c0_78 = arith.constant 0 : index
    %c1_79 = arith.constant 1 : index
    %c0_80 = arith.constant 0 : index
    %c0_81 = arith.constant 0 : index
    %92 = vector.load %arg7[%c0_78, %c1_79, %c0_80, %c0_81] : memref<1x4x8x32xbf16, #tpu.memory_space<vmem>>, vector<1x1x8x32xbf16>
    %93 = vector.shape_cast %92 : vector<1x1x8x32xbf16> to vector<8x32xbf16>
    %cst_82 = arith.constant dense<0.000000e+00> : vector<16x32xf32>
    %94 = tpu.matmul %91, %93, %cst_82 {dimension_numbers = #tpu.dot_dimension_numbers<[1], [0], [0], [1], [0, 0, 1, 1], [], []>} : vector<16x8xbf16>, vector<8x32xbf16>, vector<16x32xf32> -> vector<16x32xf32>
    %95 = arith.addf %49, %94 : vector<16x32xf32>
    %c0_83 = arith.constant 0 : index
    %c0_84 = arith.constant 0 : index
    %c2_85 = arith.constant 2 : index
    %c0_86 = arith.constant 0 : index
    %c0_87 = arith.constant 0 : index
    %96 = vector.load %arg5[%c0_83, %c0_84, %c2_85, %c0_86, %c0_87] : memref<1x3x4x32x8xbf16, #tpu.memory_space<vmem>>, vector<1x1x1x32x8xbf16>
    %97 = vector.shape_cast %96 : vector<1x1x1x32x8xbf16> to vector<32x8xbf16>
    %cst_88 = arith.constant dense<0.000000e+00> : vector<16x8xf32>
    %98 = tpu.matmul %4, %97, %cst_88 {dimension_numbers = #tpu.dot_dimension_numbers<[1], [0], [0], [1], [0, 0, 1, 1], [], []>} : vector<16x32xbf16>, vector<32x8xbf16>, vector<16x8xf32> -> vector<16x8xf32>
    %c0_89 = arith.constant 0 : index
    %c0_90 = arith.constant 0 : index
    %c2_91 = arith.constant 2 : index
    %c0_92 = arith.constant 0 : index
    %c0_93 = arith.constant 0 : index
    %99 = vector.load %arg6[%c0_89, %c0_90, %c2_91, %c0_92, %c0_93] : memref<1x3x4x1x8xf32, #tpu.memory_space<vmem>>, vector<1x1x1x1x8xf32>
    %100 = vector.shape_cast %99 : vector<1x1x1x1x8xf32> to vector<1x8xf32>
    %101 = vector.broadcast %100 : vector<1x8xf32> to vector<16x8xf32>
    %102 = arith.addf %98, %101 : vector<16x8xf32>
    %c0_94 = arith.constant 0 : index
    %c1_95 = arith.constant 1 : index
    %c2_96 = arith.constant 2 : index
    %c0_97 = arith.constant 0 : index
    %c0_98 = arith.constant 0 : index
    %103 = vector.load %arg5[%c0_94, %c1_95, %c2_96, %c0_97, %c0_98] : memref<1x3x4x32x8xbf16, #tpu.memory_space<vmem>>, vector<1x1x1x32x8xbf16>
    %104 = vector.shape_cast %103 : vector<1x1x1x32x8xbf16> to vector<32x8xbf16>
    %cst_99 = arith.constant dense<0.000000e+00> : vector<16x8xf32>
    %105 = tpu.matmul %4, %104, %cst_99 {dimension_numbers = #tpu.dot_dimension_numbers<[1], [0], [0], [1], [0, 0, 1, 1], [], []>} : vector<16x32xbf16>, vector<32x8xbf16>, vector<16x8xf32> -> vector<16x8xf32>
    %c0_100 = arith.constant 0 : index
    %c1_101 = arith.constant 1 : index
    %c2_102 = arith.constant 2 : index
    %c0_103 = arith.constant 0 : index
    %c0_104 = arith.constant 0 : index
    %106 = vector.load %arg6[%c0_100, %c1_101, %c2_102, %c0_103, %c0_104] : memref<1x3x4x1x8xf32, #tpu.memory_space<vmem>>, vector<1x1x1x1x8xf32>
    %107 = vector.shape_cast %106 : vector<1x1x1x1x8xf32> to vector<1x8xf32>
    %108 = vector.broadcast %107 : vector<1x8xf32> to vector<16x8xf32>
    %109 = arith.addf %105, %108 : vector<16x8xf32>
    %c0_105 = arith.constant 0 : index
    %c2_106 = arith.constant 2 : index
    %c2_107 = arith.constant 2 : index
    %c0_108 = arith.constant 0 : index
    %c0_109 = arith.constant 0 : index
    %110 = vector.load %arg5[%c0_105, %c2_106, %c2_107, %c0_108, %c0_109] : memref<1x3x4x32x8xbf16, #tpu.memory_space<vmem>>, vector<1x1x1x32x8xbf16>
    %111 = vector.shape_cast %110 : vector<1x1x1x32x8xbf16> to vector<32x8xbf16>
    %cst_110 = arith.constant dense<0.000000e+00> : vector<16x8xf32>
    %112 = tpu.matmul %4, %111, %cst_110 {dimension_numbers = #tpu.dot_dimension_numbers<[1], [0], [0], [1], [0, 0, 1, 1], [], []>} : vector<16x32xbf16>, vector<32x8xbf16>, vector<16x8xf32> -> vector<16x8xf32>
    %c0_111 = arith.constant 0 : index
    %c2_112 = arith.constant 2 : index
    %c2_113 = arith.constant 2 : index
    %c0_114 = arith.constant 0 : index
    %c0_115 = arith.constant 0 : index
    %113 = vector.load %arg6[%c0_111, %c2_112, %c2_113, %c0_114, %c0_115] : memref<1x3x4x1x8xf32, #tpu.memory_space<vmem>>, vector<1x1x1x1x8xf32>
    %114 = vector.shape_cast %113 : vector<1x1x1x1x8xf32> to vector<1x8xf32>
    %115 = vector.broadcast %114 : vector<1x8xf32> to vector<16x8xf32>
    %116 = arith.addf %112, %115 : vector<16x8xf32>
    %117 = vector.shape_cast %102 : vector<16x8xf32> to vector<2x8x8xf32>
    %118 = arith.truncf %117 : vector<2x8x8xf32> to vector<2x8x8xbf16>
    %119 = vector.shape_cast %109 : vector<16x8xf32> to vector<2x8x8xf32>
    %120 = arith.truncf %119 : vector<2x8x8xf32> to vector<2x8x8xbf16>
    %121 = vector.shape_cast %116 : vector<16x8xf32> to vector<2x8x8xf32>
    %122 = arith.truncf %121 : vector<2x8x8xf32> to vector<2x8x8xbf16>
    "tpu.trace_start"() <{level = 10 : i32, message = "bqd,bkd->bqk"}> : () -> ()
    %cst_116 = arith.constant dense<0.000000e+00> : vector<2x8x8xf32>
    %123 = tpu.matmul %118, %120, %cst_116 {dimension_numbers = #tpu.dot_dimension_numbers<[2], [2], [1], [1], [0, 0, 0, 1, 1, 1], [0], [0]>} : vector<2x8x8xbf16>, vector<2x8x8xbf16>, vector<2x8x8xf32> -> vector<2x8x8xf32>
    "tpu.trace_stop"() : () -> ()
    %cst_117 = arith.constant dense<0xFF800000> : vector<2x8xf32>
    %124 = vector.multi_reduction <maximumf>, %123, %cst_117 [2] : vector<2x8x8xf32> to vector<2x8xf32>
    %125 = vector.shape_cast %124 : vector<2x8xf32> to vector<2x8x1xf32>
    %126 = vector.broadcast %125 : vector<2x8x1xf32> to vector<2x8x8xf32>
    %127 = arith.subf %123, %126 : vector<2x8x8xf32>
    %128 = math.exp %127 : vector<2x8x8xf32>
    %cst_118 = arith.constant dense<0.000000e+00> : vector<2x8xf32>
    %129 = vector.multi_reduction <add>, %128, %cst_118 [2] : vector<2x8x8xf32> to vector<2x8xf32>
    %130 = vector.shape_cast %129 : vector<2x8xf32> to vector<2x8x1xf32>
    %131 = tpu.reciprocal %130 {approx = true} : vector<2x8x1xf32> -> vector<2x8x1xf32>
    %132 = vector.broadcast %131 : vector<2x8x1xf32> to vector<2x8x8xf32>
    %133 = arith.mulf %128, %132 : vector<2x8x8xf32>
    %134 = arith.truncf %133 : vector<2x8x8xf32> to vector<2x8x8xbf16>
    "tpu.trace_start"() <{level = 10 : i32, message = "bqk,bkd->bqd"}> : () -> ()
    %cst_119 = arith.constant dense<0.000000e+00> : vector<2x8x8xf32>
    %135 = tpu.matmul %134, %122, %cst_119 {dimension_numbers = #tpu.dot_dimension_numbers<[2], [1], [1], [2], [0, 0, 0, 1, 1, 2], [0], [0]>} : vector<2x8x8xbf16>, vector<2x8x8xbf16>, vector<2x8x8xf32> -> vector<2x8x8xf32>
    "tpu.trace_stop"() : () -> ()
    %136 = vector.shape_cast %135 : vector<2x8x8xf32> to vector<16x8xf32>
    %137 = arith.truncf %136 : vector<16x8xf32> to vector<16x8xbf16>
    %c0_120 = arith.constant 0 : index
    %c2_121 = arith.constant 2 : index
    %c0_122 = arith.constant 0 : index
    %c0_123 = arith.constant 0 : index
    %138 = vector.load %arg7[%c0_120, %c2_121, %c0_122, %c0_123] : memref<1x4x8x32xbf16, #tpu.memory_space<vmem>>, vector<1x1x8x32xbf16>
    %139 = vector.shape_cast %138 : vector<1x1x8x32xbf16> to vector<8x32xbf16>
    %cst_124 = arith.constant dense<0.000000e+00> : vector<16x32xf32>
    %140 = tpu.matmul %137, %139, %cst_124 {dimension_numbers = #tpu.dot_dimension_numbers<[1], [0], [0], [1], [0, 0, 1, 1], [], []>} : vector<16x8xbf16>, vector<8x32xbf16>, vector<16x32xf32> -> vector<16x32xf32>
    %141 = arith.addf %95, %140 : vector<16x32xf32>
    %c0_125 = arith.constant 0 : index
    %c0_126 = arith.constant 0 : index
    %c3 = arith.constant 3 : index
    %c0_127 = arith.constant 0 : index
    %c0_128 = arith.constant 0 : index
    %142 = vector.load %arg5[%c0_125, %c0_126, %c3, %c0_127, %c0_128] : memref<1x3x4x32x8xbf16, #tpu.memory_space<vmem>>, vector<1x1x1x32x8xbf16>
    %143 = vector.shape_cast %142 : vector<1x1x1x32x8xbf16> to vector<32x8xbf16>
    %cst_129 = arith.constant dense<0.000000e+00> : vector<16x8xf32>
    %144 = tpu.matmul %4, %143, %cst_129 {dimension_numbers = #tpu.dot_dimension_numbers<[1], [0], [0], [1], [0, 0, 1, 1], [], []>} : vector<16x32xbf16>, vector<32x8xbf16>, vector<16x8xf32> -> vector<16x8xf32>
    %c0_130 = arith.constant 0 : index
    %c0_131 = arith.constant 0 : index
    %c3_132 = arith.constant 3 : index
    %c0_133 = arith.constant 0 : index
    %c0_134 = arith.constant 0 : index
    %145 = vector.load %arg6[%c0_130, %c0_131, %c3_132, %c0_133, %c0_134] : memref<1x3x4x1x8xf32, #tpu.memory_space<vmem>>, vector<1x1x1x1x8xf32>
    %146 = vector.shape_cast %145 : vector<1x1x1x1x8xf32> to vector<1x8xf32>
    %147 = vector.broadcast %146 : vector<1x8xf32> to vector<16x8xf32>
    %148 = arith.addf %144, %147 : vector<16x8xf32>
    %c0_135 = arith.constant 0 : index
    %c1_136 = arith.constant 1 : index
    %c3_137 = arith.constant 3 : index
    %c0_138 = arith.constant 0 : index
    %c0_139 = arith.constant 0 : index
    %149 = vector.load %arg5[%c0_135, %c1_136, %c3_137, %c0_138, %c0_139] : memref<1x3x4x32x8xbf16, #tpu.memory_space<vmem>>, vector<1x1x1x32x8xbf16>
    %150 = vector.shape_cast %149 : vector<1x1x1x32x8xbf16> to vector<32x8xbf16>
    %cst_140 = arith.constant dense<0.000000e+00> : vector<16x8xf32>
    %151 = tpu.matmul %4, %150, %cst_140 {dimension_numbers = #tpu.dot_dimension_numbers<[1], [0], [0], [1], [0, 0, 1, 1], [], []>} : vector<16x32xbf16>, vector<32x8xbf16>, vector<16x8xf32> -> vector<16x8xf32>
    %c0_141 = arith.constant 0 : index
    %c1_142 = arith.constant 1 : index
    %c3_143 = arith.constant 3 : index
    %c0_144 = arith.constant 0 : index
    %c0_145 = arith.constant 0 : index
    %152 = vector.load %arg6[%c0_141, %c1_142, %c3_143, %c0_144, %c0_145] : memref<1x3x4x1x8xf32, #tpu.memory_space<vmem>>, vector<1x1x1x1x8xf32>
    %153 = vector.shape_cast %152 : vector<1x1x1x1x8xf32> to vector<1x8xf32>
    %154 = vector.broadcast %153 : vector<1x8xf32> to vector<16x8xf32>
    %155 = arith.addf %151, %154 : vector<16x8xf32>
    %c0_146 = arith.constant 0 : index
    %c2_147 = arith.constant 2 : index
    %c3_148 = arith.constant 3 : index
    %c0_149 = arith.constant 0 : index
    %c0_150 = arith.constant 0 : index
    %156 = vector.load %arg5[%c0_146, %c2_147, %c3_148, %c0_149, %c0_150] : memref<1x3x4x32x8xbf16, #tpu.memory_space<vmem>>, vector<1x1x1x32x8xbf16>
    %157 = vector.shape_cast %156 : vector<1x1x1x32x8xbf16> to vector<32x8xbf16>
    %cst_151 = arith.constant dense<0.000000e+00> : vector<16x8xf32>
    %158 = tpu.matmul %4, %157, %cst_151 {dimension_numbers = #tpu.dot_dimension_numbers<[1], [0], [0], [1], [0, 0, 1, 1], [], []>} : vector<16x32xbf16>, vector<32x8xbf16>, vector<16x8xf32> -> vector<16x8xf32>
    %c0_152 = arith.constant 0 : index
    %c2_153 = arith.constant 2 : index
    %c3_154 = arith.constant 3 : index
    %c0_155 = arith.constant 0 : index
    %c0_156 = arith.constant 0 : index
    %159 = vector.load %arg6[%c0_152, %c2_153, %c3_154, %c0_155, %c0_156] : memref<1x3x4x1x8xf32, #tpu.memory_space<vmem>>, vector<1x1x1x1x8xf32>
    %160 = vector.shape_cast %159 : vector<1x1x1x1x8xf32> to vector<1x8xf32>
    %161 = vector.broadcast %160 : vector<1x8xf32> to vector<16x8xf32>
    %162 = arith.addf %158, %161 : vector<16x8xf32>
    %163 = vector.shape_cast %148 : vector<16x8xf32> to vector<2x8x8xf32>
    %164 = arith.truncf %163 : vector<2x8x8xf32> to vector<2x8x8xbf16>
    %165 = vector.shape_cast %155 : vector<16x8xf32> to vector<2x8x8xf32>
    %166 = arith.truncf %165 : vector<2x8x8xf32> to vector<2x8x8xbf16>
    %167 = vector.shape_cast %162 : vector<16x8xf32> to vector<2x8x8xf32>
    %168 = arith.truncf %167 : vector<2x8x8xf32> to vector<2x8x8xbf16>
    "tpu.trace_start"() <{level = 10 : i32, message = "bqd,bkd->bqk"}> : () -> ()
    %cst_157 = arith.constant dense<0.000000e+00> : vector<2x8x8xf32>
    %169 = tpu.matmul %164, %166, %cst_157 {dimension_numbers = #tpu.dot_dimension_numbers<[2], [2], [1], [1], [0, 0, 0, 1, 1, 1], [0], [0]>} : vector<2x8x8xbf16>, vector<2x8x8xbf16>, vector<2x8x8xf32> -> vector<2x8x8xf32>
    "tpu.trace_stop"() : () -> ()
    %cst_158 = arith.constant dense<0xFF800000> : vector<2x8xf32>
    %170 = vector.multi_reduction <maximumf>, %169, %cst_158 [2] : vector<2x8x8xf32> to vector<2x8xf32>
    %171 = vector.shape_cast %170 : vector<2x8xf32> to vector<2x8x1xf32>
    %172 = vector.broadcast %171 : vector<2x8x1xf32> to vector<2x8x8xf32>
    %173 = arith.subf %169, %172 : vector<2x8x8xf32>
    %174 = math.exp %173 : vector<2x8x8xf32>
    %cst_159 = arith.constant dense<0.000000e+00> : vector<2x8xf32>
    %175 = vector.multi_reduction <add>, %174, %cst_159 [2] : vector<2x8x8xf32> to vector<2x8xf32>
    %176 = vector.shape_cast %175 : vector<2x8xf32> to vector<2x8x1xf32>
    %177 = tpu.reciprocal %176 {approx = true} : vector<2x8x1xf32> -> vector<2x8x1xf32>
    %178 = vector.broadcast %177 : vector<2x8x1xf32> to vector<2x8x8xf32>
    %179 = arith.mulf %174, %178 : vector<2x8x8xf32>
    %180 = arith.truncf %179 : vector<2x8x8xf32> to vector<2x8x8xbf16>
    "tpu.trace_start"() <{level = 10 : i32, message = "bqk,bkd->bqd"}> : () -> ()
    %cst_160 = arith.constant dense<0.000000e+00> : vector<2x8x8xf32>
    %181 = tpu.matmul %180, %168, %cst_160 {dimension_numbers = #tpu.dot_dimension_numbers<[2], [1], [1], [2], [0, 0, 0, 1, 1, 2], [0], [0]>} : vector<2x8x8xbf16>, vector<2x8x8xbf16>, vector<2x8x8xf32> -> vector<2x8x8xf32>
    "tpu.trace_stop"() : () -> ()
    %182 = vector.shape_cast %181 : vector<2x8x8xf32> to vector<16x8xf32>
    %183 = arith.truncf %182 : vector<16x8xf32> to vector<16x8xbf16>
    %c0_161 = arith.constant 0 : index
    %c3_162 = arith.constant 3 : index
    %c0_163 = arith.constant 0 : index
    %c0_164 = arith.constant 0 : index
    %184 = vector.load %arg7[%c0_161, %c3_162, %c0_163, %c0_164] : memref<1x4x8x32xbf16, #tpu.memory_space<vmem>>, vector<1x1x8x32xbf16>
    %185 = vector.shape_cast %184 : vector<1x1x8x32xbf16> to vector<8x32xbf16>
    %cst_165 = arith.constant dense<0.000000e+00> : vector<16x32xf32>
    %186 = tpu.matmul %183, %185, %cst_165 {dimension_numbers = #tpu.dot_dimension_numbers<[1], [0], [0], [1], [0, 0, 1, 1], [], []>} : vector<16x8xbf16>, vector<8x32xbf16>, vector<16x32xf32> -> vector<16x32xf32>
    %187 = arith.addf %141, %186 : vector<16x32xf32>
    %c0_166 = arith.constant 0 : index
    %c0_167 = arith.constant 0 : index
    %c0_168 = arith.constant 0 : index
    %188 = vector.load %arg8[%c0_166, %c0_167, %c0_168] : memref<1x1x32xf32, #tpu.memory_space<vmem>>, vector<1x1x32xf32>
    %189 = vector.shape_cast %188 : vector<1x1x32xf32> to vector<1x32xf32>
    %190 = vector.broadcast %189 : vector<1x32xf32> to vector<16x32xf32>
    %191 = arith.addf %187, %190 : vector<16x32xf32>
    %192 = arith.addf %3, %191 : vector<16x32xf32>
    %c0_169 = arith.constant 0 : index
    %c0_170 = arith.constant 0 : index
    %c0_171 = arith.constant 0 : index
    %193 = vector.load %arg9[%c0_169, %c0_170, %c0_171] : memref<1x1x32xf32, #tpu.memory_space<vmem>>, vector<1x1x32xf32>
    %194 = vector.shape_cast %193 : vector<1x1x32xf32> to vector<1x32xf32>
    %c0_172 = arith.constant 0 : index
    %c0_173 = arith.constant 0 : index
    %c0_174 = arith.constant 0 : index
    %195 = vector.load %arg10[%c0_172, %c0_173, %c0_174] : memref<1x1x32xf32, #tpu.memory_space<vmem>>, vector<1x1x32xf32>
    %196 = vector.shape_cast %195 : vector<1x1x32xf32> to vector<1x32xf32>
    %cst_175 = arith.constant dense<0.000000e+00> : vector<16xf32>
    %197 = vector.multi_reduction <add>, %192, %cst_175 [1] : vector<16x32xf32> to vector<16xf32>
    %198 = vector.shape_cast %197 : vector<16xf32> to vector<16x1xf32>
    %cst_176 = arith.constant 3.200000e+01 : f32
    %199 = vector.broadcast %cst_176 : f32 to vector<16x1xf32>
    %200 = arith.divf %198, %199 : vector<16x1xf32>
    %201 = vector.broadcast %200 : vector<16x1xf32> to vector<16x32xf32>
    %202 = arith.subf %192, %201 : vector<16x32xf32>
    %203 = arith.mulf %202, %202 : vector<16x32xf32>
    %cst_177 = arith.constant dense<0.000000e+00> : vector<16xf32>
    %204 = vector.multi_reduction <add>, %203, %cst_177 [1] : vector<16x32xf32> to vector<16xf32>
    %205 = vector.shape_cast %204 : vector<16xf32> to vector<16x1xf32>
    %cst_178 = arith.constant 3.200000e+01 : f32
    %206 = vector.broadcast %cst_178 : f32 to vector<16x1xf32>
    %207 = arith.divf %205, %206 : vector<16x1xf32>
    %208 = vector.broadcast %200 : vector<16x1xf32> to vector<16x32xf32>
    %209 = arith.subf %192, %208 : vector<16x32xf32>
    %cst_179 = arith.constant 9.99999974E-6 : f32
    %210 = vector.broadcast %cst_179 : f32 to vector<16x1xf32>
    %211 = arith.addf %207, %210 : vector<16x1xf32>
    %212 = math.rsqrt %211 : vector<16x1xf32>
    %213 = vector.broadcast %212 : vector<16x1xf32> to vector<16x32xf32>
    %214 = arith.mulf %209, %213 : vector<16x32xf32>
    %215 = vector.broadcast %194 : vector<1x32xf32> to vector<16x32xf32>
    %216 = arith.mulf %214, %215 : vector<16x32xf32>
    %217 = vector.broadcast %196 : vector<1x32xf32> to vector<16x32xf32>
    %218 = arith.addf %216, %217 : vector<16x32xf32>
    %219 = arith.truncf %218 : vector<16x32xf32> to vector<16x32xbf16>
    %c0_180 = arith.constant 0 : index
    %c0_181 = arith.constant 0 : index
    %c0_182 = arith.constant 0 : index
    %220 = vector.load %arg11[%c0_180, %c0_181, %c0_182] : memref<1x32x2048xbf16, #tpu.memory_space<vmem>>, vector<1x32x2048xbf16>
    %221 = vector.shape_cast %220 : vector<1x32x2048xbf16> to vector<32x2048xbf16>
    %cst_183 = arith.constant dense<0.000000e+00> : vector<16x2048xf32>
    %222 = tpu.matmul %219, %221, %cst_183 {dimension_numbers = #tpu.dot_dimension_numbers<[1], [0], [0], [1], [0, 0, 1, 1], [], []>} : vector<16x32xbf16>, vector<32x2048xbf16>, vector<16x2048xf32> -> vector<16x2048xf32>
    %c0_184 = arith.constant 0 : index
    %c0_185 = arith.constant 0 : index
    %c0_186 = arith.constant 0 : index
    %223 = vector.load %arg12[%c0_184, %c0_185, %c0_186] : memref<1x1x2048xf32, #tpu.memory_space<vmem>>, vector<1x1x2048xf32>
    %224 = vector.shape_cast %223 : vector<1x1x2048xf32> to vector<1x2048xf32>
    %225 = vector.broadcast %224 : vector<1x2048xf32> to vector<16x2048xf32>
    %226 = arith.addf %222, %225 : vector<16x2048xf32>
    %cst_187 = arith.constant 0.000000e+00 : f32
    %227 = vector.broadcast %cst_187 : f32 to vector<16x2048xf32>
    %228 = arith.maximumf %226, %227 : vector<16x2048xf32>
    %229 = arith.truncf %228 : vector<16x2048xf32> to vector<16x2048xbf16>
    %c0_188 = arith.constant 0 : index
    %c0_189 = arith.constant 0 : index
    %c0_190 = arith.constant 0 : index
    %230 = vector.load %arg13[%c0_188, %c0_189, %c0_190] : memref<1x2048x32xbf16, #tpu.memory_space<vmem>>, vector<1x2048x32xbf16>
    %231 = vector.shape_cast %230 : vector<1x2048x32xbf16> to vector<2048x32xbf16>
    %cst_191 = arith.constant dense<0.000000e+00> : vector<16x32xf32>
    %232 = tpu.matmul %229, %231, %cst_191 {dimension_numbers = #tpu.dot_dimension_numbers<[1], [0], [0], [1], [0, 0, 1, 1], [], []>} : vector<16x2048xbf16>, vector<2048x32xbf16>, vector<16x32xf32> -> vector<16x32xf32>
    %c0_192 = arith.constant 0 : index
    %c0_193 = arith.constant 0 : index
    %c0_194 = arith.constant 0 : index
    %233 = vector.load %arg14[%c0_192, %c0_193, %c0_194] : memref<1x1x32xf32, #tpu.memory_space<vmem>>, vector<1x1x32xf32>
    %234 = vector.shape_cast %233 : vector<1x1x32xf32> to vector<1x32xf32>
    %235 = vector.broadcast %234 : vector<1x32xf32> to vector<16x32xf32>
    %236 = arith.addf %232, %235 : vector<16x32xf32>
    %237 = arith.addf %218, %236 : vector<16x32xf32>
    %c0_195 = arith.constant 0 : index
    %c0_196 = arith.constant 0 : index
    %c0_197 = arith.constant 0 : index
    %238 = vector.load %arg15[%c0_195, %c0_196, %c0_197] : memref<1x1x32xf32, #tpu.memory_space<vmem>>, vector<1x1x32xf32>
    %239 = vector.shape_cast %238 : vector<1x1x32xf32> to vector<1x32xf32>
    %c0_198 = arith.constant 0 : index
    %c0_199 = arith.constant 0 : index
    %c0_200 = arith.constant 0 : index
    %240 = vector.load %arg16[%c0_198, %c0_199, %c0_200] : memref<1x1x32xf32, #tpu.memory_space<vmem>>, vector<1x1x32xf32>
    %241 = vector.shape_cast %240 : vector<1x1x32xf32> to vector<1x32xf32>
    %cst_201 = arith.constant dense<0.000000e+00> : vector<16xf32>
    %242 = vector.multi_reduction <add>, %237, %cst_201 [1] : vector<16x32xf32> to vector<16xf32>
    %243 = vector.shape_cast %242 : vector<16xf32> to vector<16x1xf32>
    %cst_202 = arith.constant 3.200000e+01 : f32
    %244 = vector.broadcast %cst_202 : f32 to vector<16x1xf32>
    %245 = arith.divf %243, %244 : vector<16x1xf32>
    %246 = vector.broadcast %245 : vector<16x1xf32> to vector<16x32xf32>
    %247 = arith.subf %237, %246 : vector<16x32xf32>
    %248 = arith.mulf %247, %247 : vector<16x32xf32>
    %cst_203 = arith.constant dense<0.000000e+00> : vector<16xf32>
    %249 = vector.multi_reduction <add>, %248, %cst_203 [1] : vector<16x32xf32> to vector<16xf32>
    %250 = vector.shape_cast %249 : vector<16xf32> to vector<16x1xf32>
    %cst_204 = arith.constant 3.200000e+01 : f32
    %251 = vector.broadcast %cst_204 : f32 to vector<16x1xf32>
    %252 = arith.divf %250, %251 : vector<16x1xf32>
    %253 = vector.broadcast %245 : vector<16x1xf32> to vector<16x32xf32>
    %254 = arith.subf %237, %253 : vector<16x32xf32>
    %cst_205 = arith.constant 9.99999974E-6 : f32
    %255 = vector.broadcast %cst_205 : f32 to vector<16x1xf32>
    %256 = arith.addf %252, %255 : vector<16x1xf32>
    %257 = math.rsqrt %256 : vector<16x1xf32>
    %258 = vector.broadcast %257 : vector<16x1xf32> to vector<16x32xf32>
    %259 = arith.mulf %254, %258 : vector<16x32xf32>
    %260 = vector.broadcast %239 : vector<1x32xf32> to vector<16x32xf32>
    %261 = arith.mulf %259, %260 : vector<16x32xf32>
    %262 = vector.broadcast %241 : vector<1x32xf32> to vector<16x32xf32>
    %263 = arith.addf %261, %262 : vector<16x32xf32>
    %c0_206 = arith.constant 0 : index
    %c0_207 = arith.constant 0 : index
    %264 = vector.load %arg18[%c0_206, %c0_207] : memref<16x32xf32, #tpu.memory_space<vmem>>, vector<16x32xf32>
    tpu.vector_store %arg18[%c0_206, %c0_207], %263 {strides = array<i32>} : memref<16x32xf32, #tpu.memory_space<vmem>>, vector<16x32xf32>,
    %c1_i32 = arith.constant 1 : i32
    %265 = arith.cmpi eq, %arg1, %c1_i32 : i32
    %266 = arith.extui %265 : i1 to i32
    %c0_i32_208 = arith.constant 0 : i32
    %267 = arith.cmpi ne, %266, %c0_i32_208 : i32
    scf.if %267 {
      %268 = vector.shape_cast %263 : vector<16x32xf32> to vector<2x8x32xf32>
      %cst_209 = arith.constant dense<0.000000e+00> : vector<2x32xf32>
      %269 = vector.multi_reduction <add>, %268, %cst_209 [1] : vector<2x8x32xf32> to vector<2x32xf32>
      %cst_210 = arith.constant 8.000000e+00 : f32
      %270 = vector.broadcast %cst_210 : f32 to vector<2x32xf32>
      %271 = arith.divf %269, %270 : vector<2x32xf32>
      %c0_211 = arith.constant 0 : index
      %c0_212 = arith.constant 0 : index
      %c0_213 = arith.constant 0 : index
      %272 = vector.load %arg17[%c0_211, %c0_212, %c0_213] : memref<1x2x32xf32, #tpu.memory_space<vmem>>, vector<1x2x32xf32>
      %273 = vector.shape_cast %272 : vector<1x2x32xf32> to vector<2x32xf32>
      %274 = vector.shape_cast %271 : vector<2x32xf32> to vector<1x2x32xf32>
      tpu.vector_store %arg17[%c0_211, %c0_212, %c0_213], %274 {strides = array<i32>} : memref<1x2x32xf32, #tpu.memory_space<vmem>>, vector<1x2x32xf32>,
    } else {
    }
    return
  }
  func.func @transform_0(%arg0: i32, %arg1: i32) -> (i32, i32, i32) {
    %c0_i32 = arith.constant 0 : i32
    %c0_i32_0 = arith.constant 0 : i32
    %c0_i32_1 = arith.constant 0 : i32
    return %arg0, %c0_i32, %c0_i32_0 : i32, i32, i32
  }
  func.func @transform_1(%arg0: i32, %arg1: i32) -> (i32, i32) {
    %c0_i32 = arith.constant 0 : i32
    %c0_i32_0 = arith.constant 0 : i32
    %c0_i32_1 = arith.constant 0 : i32
    return %c0_i32, %c0_i32_0 : i32, i32
  }
  func.func @transform_2(%arg0: i32, %arg1: i32) -> (i32, i32) {
    %c0_i32 = arith.constant 0 : i32
    %c0_i32_0 = arith.constant 0 : i32
    %c0_i32_1 = arith.constant 0 : i32
    return %c0_i32, %c0_i32_0 : i32, i32
  }
  func.func @transform_3(%arg0: i32, %arg1: i32) -> (i32, i32, i32, i32, i32) {
    %c0_i32 = arith.constant 0 : i32
    %c0_i32_0 = arith.constant 0 : i32
    %c0_i32_1 = arith.constant 0 : i32
    %c0_i32_2 = arith.constant 0 : i32
    %c0_i32_3 = arith.constant 0 : i32
    return %arg1, %c0_i32, %c0_i32_0, %c0_i32_1, %c0_i32_2 : i32, i32, i32, i32, i32
  }
  func.func @transform_4(%arg0: i32, %arg1: i32) -> (i32, i32, i32, i32, i32) {
    %c0_i32 = arith.constant 0 : i32
    %c0_i32_0 = arith.constant 0 : i32
    %c0_i32_1 = arith.constant 0 : i32
    %c0_i32_2 = arith.constant 0 : i32
    %c0_i32_3 = arith.constant 0 : i32
    return %arg1, %c0_i32, %c0_i32_0, %c0_i32_1, %c0_i32_2 : i32, i32, i32, i32, i32
  }
  func.func @transform_5(%arg0: i32, %arg1: i32) -> (i32, i32, i32, i32) {
    %c0_i32 = arith.constant 0 : i32
    %c0_i32_0 = arith.constant 0 : i32
    %c0_i32_1 = arith.constant 0 : i32
    %c0_i32_2 = arith.constant 0 : i32
    return %arg1, %c0_i32, %c0_i32_0, %c0_i32_1 : i32, i32, i32, i32
  }
  func.func @transform_6(%arg0: i32, %arg1: i32) -> (i32, i32, i32) {
    %c0_i32 = arith.constant 0 : i32
    %c0_i32_0 = arith.constant 0 : i32
    %c0_i32_1 = arith.constant 0 : i32
    return %arg1, %c0_i32, %c0_i32_0 : i32, i32, i32
  }
  func.func @transform_7(%arg0: i32, %arg1: i32) -> (i32, i32, i32) {
    %c0_i32 = arith.constant 0 : i32
    %c0_i32_0 = arith.constant 0 : i32
    %c0_i32_1 = arith.constant 0 : i32
    return %arg1, %c0_i32, %c0_i32_0 : i32, i32, i32
  }
  func.func @transform_8(%arg0: i32, %arg1: i32) -> (i32, i32, i32) {
    %c0_i32 = arith.constant 0 : i32
    %c0_i32_0 = arith.constant 0 : i32
    %c0_i32_1 = arith.constant 0 : i32
    return %arg1, %c0_i32, %c0_i32_0 : i32, i32, i32
  }
  func.func @transform_9(%arg0: i32, %arg1: i32) -> (i32, i32, i32) {
    %c0_i32 = arith.constant 0 : i32
    %c0_i32_0 = arith.constant 0 : i32
    %c0_i32_1 = arith.constant 0 : i32
    return %arg1, %c0_i32, %c0_i32_0 : i32, i32, i32
  }
  func.func @transform_10(%arg0: i32, %arg1: i32) -> (i32, i32, i32) {
    %c0_i32 = arith.constant 0 : i32
    %c0_i32_0 = arith.constant 0 : i32
    %c0_i32_1 = arith.constant 0 : i32
    return %arg1, %c0_i32, %c0_i32_0 : i32, i32, i32
  }
  func.func @transform_11(%arg0: i32, %arg1: i32) -> (i32, i32, i32) {
    %c0_i32 = arith.constant 0 : i32
    %c0_i32_0 = arith.constant 0 : i32
    %c0_i32_1 = arith.constant 0 : i32
    return %arg1, %c0_i32, %c0_i32_0 : i32, i32, i32
  }
  func.func @transform_12(%arg0: i32, %arg1: i32) -> (i32, i32, i32) {
    %c0_i32 = arith.constant 0 : i32
    %c0_i32_0 = arith.constant 0 : i32
    %c0_i32_1 = arith.constant 0 : i32
    return %arg1, %c0_i32, %c0_i32_0 : i32, i32, i32
  }
  func.func @transform_13(%arg0: i32, %arg1: i32) -> (i32, i32, i32) {
    %c0_i32 = arith.constant 0 : i32
    %c0_i32_0 = arith.constant 0 : i32
    %c0_i32_1 = arith.constant 0 : i32
    return %arg1, %c0_i32, %c0_i32_0 : i32, i32, i32
  }
  func.func @transform_14(%arg0: i32, %arg1: i32) -> (i32, i32, i32) {
    %c0_i32 = arith.constant 0 : i32
    %c0_i32_0 = arith.constant 0 : i32
    %c0_i32_1 = arith.constant 0 : i32
    return %arg1, %c0_i32, %c0_i32_0 : i32, i32, i32
  }
  func.func @transform_15(%arg0: i32, %arg1: i32) -> (i32, i32, i32) {
    %c0_i32 = arith.constant 0 : i32
    %c0_i32_0 = arith.constant 0 : i32
    %c0_i32_1 = arith.constant 0 : i32
    return %arg0, %c0_i32, %c0_i32_0 : i32, i32, i32
  }
}

module attributes {stable_mosaic.version = 11 : i64} {
  func.func @_proj_kernel(%arg0: i32, %arg1: memref<2x64xf32, #tpu.memory_space<vmem>>, %arg2: memref<64x128xbf16, #tpu.memory_space<vmem>>, %arg3: memref<1x128xf32, #tpu.memory_space<vmem>>, %arg4: memref<2x128xf32, #tpu.memory_space<vmem>>) attributes {dimension_semantics = [#tpu.dimension_semantics<parallel>], iteration_bounds = array<i64: 1>, scalar_prefetch = 0 : i64, scratch_operands = 0 : i64, tpu.core_type = #tpu.core_type<tc>, window_params = [{pipeline_mode = #tpu.pipeline_mode<synchronous>, transform_indices = @transform_0, window_bounds = array<i64: 2, 64>}, {transform_indices = @transform_1, window_bounds = array<i64: 64, 128>}, {transform_indices = @transform_2, window_bounds = array<i64: 1, 128>}, {transform_indices = @transform_3, window_bounds = array<i64: 2, 128>}]} {
    %c0 = arith.constant 0 : index
    %c0_0 = arith.constant 0 : index
    %0 = vector.load %arg1[%c0, %c0_0] : memref<2x64xf32, #tpu.memory_space<vmem>>, vector<2x64xf32>
    %1 = arith.truncf %0 : vector<2x64xf32> to vector<2x64xbf16>
    %c0_1 = arith.constant 0 : index
    %c0_2 = arith.constant 0 : index
    %2 = vector.load %arg2[%c0_1, %c0_2] : memref<64x128xbf16, #tpu.memory_space<vmem>>, vector<64x128xbf16>
    %cst = arith.constant dense<0.000000e+00> : vector<2x128xf32>
    %3 = tpu.matmul %1, %2, %cst {dimension_numbers = #tpu.dot_dimension_numbers<[1], [0], [0], [1], [0, 0, 1, 1], [], []>} : vector<2x64xbf16>, vector<64x128xbf16>, vector<2x128xf32> -> vector<2x128xf32>
    %c0_3 = arith.constant 0 : index
    %c0_4 = arith.constant 0 : index
    %4 = vector.load %arg3[%c0_3, %c0_4] : memref<1x128xf32, #tpu.memory_space<vmem>>, vector<1x128xf32>
    %5 = vector.broadcast %4 : vector<1x128xf32> to vector<2x128xf32>
    %6 = arith.addf %3, %5 : vector<2x128xf32>
    %c0_5 = arith.constant 0 : index
    %c0_6 = arith.constant 0 : index
    %7 = vector.load %arg4[%c0_5, %c0_6] : memref<2x128xf32, #tpu.memory_space<vmem>>, vector<2x128xf32>
    tpu.vector_store %arg4[%c0_5, %c0_6], %6 {strides = array<i32>} : memref<2x128xf32, #tpu.memory_space<vmem>>, vector<2x128xf32>,
    return
  }
  func.func @transform_0(%arg0: i32) -> (i32, i32) {
    %c0_i32 = arith.constant 0 : i32
    %c0_i32_0 = arith.constant 0 : i32
    %c0_i32_1 = arith.constant 0 : i32
    return %c0_i32, %c0_i32_0 : i32, i32
  }
  func.func @transform_1(%arg0: i32) -> (i32, i32) {
    %c0_i32 = arith.constant 0 : i32
    %c0_i32_0 = arith.constant 0 : i32
    return %c0_i32, %arg0 : i32, i32
  }
  func.func @transform_2(%arg0: i32) -> (i32, i32) {
    %c0_i32 = arith.constant 0 : i32
    %c0_i32_0 = arith.constant 0 : i32
    return %c0_i32, %arg0 : i32, i32
  }
  func.func @transform_3(%arg0: i32) -> (i32, i32) {
    %c0_i32 = arith.constant 0 : i32
    %c0_i32_0 = arith.constant 0 : i32
    return %c0_i32, %arg0 : i32, i32
  }
}

</mosaic_0001>

<bundles_post_ra>
// kernel: segmented_feature_extractor.3
= control target key start
LH: loop header
LB: loop body
LE: loop exit
PB: predicated region body
PF: predicated region fallthrough
CT: control target
= control target key end

     0   :  { %v134_v0 = vmov 0.0   ;;  %vm135_vm0 = vmmov 0   ;;  %vm56_vm1 = vcmask 523264   ;;  %s177_s1 = inlined_call_operand.vmem [shape: bf16[64,128], index: 1, kind: input, shape index: {}]   ;;  %s178_s0 = inlined_call_operand.vmem [shape: f32[2,64], index: 0, kind: input, shape index: {}]   ;;  %s179_s2 = inlined_call_operand.vmem [shape: f32[1,128], index: 2, kind: input, shape index: {}]   ;;  %s180_s3 = inlined_call_operand.vmem [shape: f32[2,128], index: 3, kind: output, shape index: {}]  }
   0x1   :  { %116 = vmatprep.subr.bf16.mxu0 %v134_v0  ;;  %v130_v1 = vld [vmem:[%s177_s1] sm:$0xff]   ;;  %124 = vmatprep.mubr.msk.bf16.mxu0 %vm135_vm0, %v134_v0  ;;  %v131_v2 = vld [vmem:[%s177_s1 + $0x8] sm:$0xff]   ;;  %v132_v3 = vld [vmem:[%s177_s1 + $0x10] sm:$0xff]  }
   0x2   :  { %117 = vmatpush3.bf16.msra.mxu0 %v130_v1  ;;  %v133_v4 = vld [vmem:[%s177_s1 + $0x18] sm:$0xff]   ;;  %v15_v5 = vld [vmem:[%s178_s0] sm:$0x3] }
   0x3   :  { %118 = vmatprep.subr.bf16.mxu0 %v134_v0  ;;  %v16_v6 = vpack.c.bf16 %v15_v5, %v15_v5  ;;  %v105_v7 = vld [vmem:[%s179_s2] ss:$0 sm:$0xff] }
   0x6   :  { %119 = vmatpush3.bf16.msra.mxu0 %v131_v2 }
   0x7   :  { %120 = vmatprep.subr.bf16.mxu0 %v134_v0 }
   0xa   :  { %121 = vmatpush3.bf16.msra.mxu0 %v132_v3 }
   0xb   :  { %122 = vmatprep.subr.bf16.mxu0 %v134_v0 }
   0xe   :  { %123 = vmatpush3.bf16.msra.mxu0 %v133_v4 }
  0x11   :  { %125 = vmatmul.mubr.msk.bf16.vlgmr.msra.gmra.mrb[0].mxu0 %vm56_vm1, %v16_v6 }
  0xe4   :  { %v94_v8 = vpop.f32.mrb[0].mxu0 }
  0xe5   :  { %v95_v9 = vadd.f32 %v105_v7, %v94_v8  ;;  %v126_v10 = vpop.f32.mrb[1].mxu0 }
  0xe6   :  { %v97_v11 = vpop.f32.mrb[2].mxu0 }
  0xe7   :  { %100 = vst [vmem:[%s180_s3] sm:$0x3] %v95_v9  ;;  %v127_v12 = vpop.f32.mrb[3].mxu0 }

// kernel: segmented_feature_extractor.2
= control target key start
LH: loop header
LB: loop body
LE: loop exit
PB: predicated region body
PF: predicated region fallthrough
CT: control target
= control target key end

     0   :  { %s6156_s18 = smov 0   ;;  %s6158_s19 = smov 0   ;;  %s6853_s0 = inlined_call_operand.vmem [shape: f32[4,8,16], index: 0, kind: input, shape index: {}]   ;;  %s6854_s1 = inlined_call_operand.vmem [shape: bf16[16,32], index: 1, kind: input, shape index: {}]   ;;  %s6855_s2 = inlined_call_operand.vmem [shape: f32[1,32], index: 2, kind: input, shape index: {}]   ;;  %s6856_s3 = inlined_call_operand.vmem [shape: bf16[2,3,4,32,8], index: 3, kind: input, shape index: {}]   ;;  %s6857_s4 = inlined_call_operand.vmem [shape: f32[2,3,4,1,8], index: 4, kind: input, shape index: {}]   ;;  %s6858_s5 = inlined_call_operand.vmem [shape: bf16[2,4,8,32], index: 5, kind: input, shape index: {}]   ;;  %s6859_s6 = inlined_call_operand.vmem [shape: f32[2,1,32], index: 6, kind: input, shape index: {}]   ;;  %s6860_s7 = inlined_call_operand.vmem [shape: f32[2,1,32], index: 7, kind: input, shape index: {}]   ;;  %s6861_s8 = inlined_call_operand.vmem [shape: f32[2,1,32], index: 8, kind: input, shape index: {}]   ;;  %s6862_s9 = inlined_call_operand.vmem [shape: bf16[2,32,2048], index: 9, kind: input, shape index: {}]   ;;  %s6863_s10 = inlined_call_operand.vmem [shape: f32[2,1,2048], index: 10, kind: input, shape index: {}]   ;;  %s6864_s11 = inlined_call_operand.vmem [shape: bf16[2,2048,32], index: 11, kind: input, shape index: {}]   ;;  %s6865_s12 = inlined_call_operand.vmem [shape: f32[2,1,32], index: 12, kind: input, shape index: {}]   ;;  %s6866_s13 = inlined_call_operand.vmem [shape: f32[2,1,32], index: 13, kind: input, shape index: {}]   ;;  %s6867_s14 = inlined_call_operand.vmem [shape: f32[2,1,32], index: 14, kind: input, shape index: {}]   ;;  %s6868_s15 = inlined_call_operand.vmem [shape: f32[2,2,32], index: 15, kind: output, shape index: {}]  }
   0x1   :  { %6873 = sst [smem:[#allocation9_spill]] %s6853_s0  ;;  %s6160_s20 = smov 0  }
   0x2   :  { %6874 = sst [smem:[#allocation10_spill]] %s6854_s1  ;;  %s6162_s21 = smov 0  }
   0x3   :  { %6875 = sst [smem:[#allocation11_spill]] %s6855_s2  ;;  %s6164_s22 = smov 0  }
   0x4   :  { %6876 = sst [smem:[#allocation12_spill]] %s6856_s3 }
   0x5   :  { %6877 = sst [smem:[#allocation13_spill]] %s6857_s4 }
   0x6   :  { %6878 = sst [smem:[#allocation14_spill]] %s6858_s5 }
   0x7   :  { %6879 = sst [smem:[#allocation15_spill]] %s6862_s9 }
   0x8   :  { %6880 = sst [smem:[#allocation16_spill]] %s6863_s10 }
   0x9   :  { %6881 = sst [smem:[#allocation17_spill]] %s6867_s14 }
   0xa   :  { %6882 = sst [smem:[#allocation18_spill]] %s6868_s15 }
   0xb LB: > { %6883 = sst [smem:[#allocation3_spill]] %s6053_s18  ;;  %s34_s23 = sadd.s32 1, %s6061_s20  ;;  %s6069_s22 = sphi %s6164_s22, %s25_s22   ;;  %s6065_s21 = sphi %s6162_s21, %s6910_s21   ;;  %s6061_s20 = sphi %s6160_s20, %s6909_s20   ;;  %s6057_s19 = sphi %s6158_s19, %s6908_s19   ;;  %s6053_s18 = sphi %s6156_s18, %s6907_s18  }
   0xc   : > { %6884 = sst [smem:[#allocation4_spill]] %s6061_s20  ;;  %s37_s24 = sadd.s32 1, %s6065_s21 }
   0xd   : > { %6885 = sst [smem:[#allocation5_spill]] %s6065_s21  ;;  %p35_p0 = scmp.ge.s32.totalorder %s34_s23, 2 }
   0xe   : > { %6886 = sst [smem:[#allocation6_spill]] %s6069_s22  ;;  %p4991_p1 = scmp.ge.s32.totalorder %s6069_s22, 1 }
   0xf   : > { %p556_p2 = scmp.lt.s32.totalorder %s6069_s22, 5  ;;  %s6912_s23 = smov (%p35_p0, %s34_s23), 0 }
  0x10   : > { %6887 = sst [smem:[#allocation7_spill]] %s6912_s23  ;;  %s6914_s24 = smov (!%p35_p0, %s37_s24), %s6065_s21 }
  0x11   : > { %p557_p3 = pnand %p4991_p1, %p556_p2  ;;  %p39_p4 = scmp.ge.s32.totalorder %s6914_s24, 2 }
  0x12   : > { %s4992_s25 = sshll.u32 (!%p557_p3), %s6057_s19, 1  ;;  %p655_p5 = scmp.lt.s32.totalorder (!%p557_p3), %s6053_s18, 1 }
  0x13   : > { %s6916_s24 = smov (%p39_p4, %s6914_s24), 0  ;;  %560 = sbr.rel (%p557_p3) target bundleno = 5359 (0x14ef), region = 80 }
  0x14   : > { %6888 = sst [smem:[#allocation8_spill]] %s6916_s24  ;;  %p650_p6 = scmp.lt.s32.totalorder (!%p557_p3), %s4992_s25, 3 }
  0x15   : > { %p701_p7 = scmp.lt.s32.totalorder (!%p557_p3), %s6057_s19, 1  ;;  %s6889_s0 = sld [smem:[#allocation9_spill]] (!%p557_p3) }
  0x16   : > { %s6890_s3 = sld [smem:[#allocation12_spill]] (!%p557_p3)  ;;  %s6891_s4 = sld [smem:[#allocation13_spill]] (!%p557_p3) }
  0x17   : > { %s6892_s5 = sld [smem:[#allocation14_spill]] (!%p557_p3)  ;;  %s6893_s9 = sld [smem:[#allocation15_spill]] (!%p557_p3) }
  0x18   : > { %s6894_s10 = sld [smem:[#allocation16_spill]] (!%p557_p3)  ;;  %s6896_s17 = sld [smem:[#allocation18_spill]] (!%p557_p3) }
  0x1a   : > { %s6194_s26 = scalar_select %p655_p5, %s6053_s18, 1 }
  0x1b   : > { %s6918_s25 = smov (!%p650_p6, %s4992_s25), 3  ;;  %s6920_s19 = smov (!%p701_p7, %s6057_s19), 1 }
  0x1c   : > { %s5789_s27 = smul.u32 192, %s6194_s26  ;;  %s5310_s28 = sshll.u32 %s6194_s26, 4 }
  0x1d   : > { %s4993_s29 = sshll.u32 %s6918_s25, 3  ;;  %s5790_s30 = smul.u32 12, %s6194_s26 }
  0x1e   : > { %s653_s24 = scalar_lea.vmem %s6889_s0, %s4993_s29  ;;  %s6205_s20 = scalar_lea.vmem %s6890_s3, %s5789_s27 }
  0x1f   : > { %s6210_s1 = scalar_lea.vmem %s6891_s4, %s5790_s30  ;;  %s6215_s15 = scalar_lea.vmem %s6892_s5, %s5310_s28 }
  0x20   : > { %s5311_s2 = sshll.u32 %s6194_s26, 8  ;;  %s6238_s5 = scalar_lea.vmem %s6894_s10, %s5310_s28 }
  0x21   : > { %s6233_s4 = scalar_lea.vmem %s6893_s9, %s5311_s2  ;;  %s5312_s14 = sshll.u32 %s6194_s26, 10 }
  0x22   : > { %s6248_s23 = scalar_lea.vmem %s6864_s11, %s5312_s14  ;;  %s697_s2 = scalar_lea.vmem %s6866_s13, %s6194_s26 }
  0x23   : > { %s6895_s9 = sld [smem:[#allocation17_spill]]  ;;  %s5002_s28 = sshll.u32 %s6920_s19, 1 }
  0x24   : > { %s6264_s16 = scalar_lea.vmem %s6896_s17, %s5002_s28  ;;  %s6897_s0 = sld [smem:[#allocation3_spill]] }
  0x29   : > { %s700_s18 = scalar_lea.vmem %s6895_s9, %s6194_s26 }
  0x2a   : > { %p5003_p8 = scmp.ne.s32.totalorder %s6897_s0, 0 }
  0x2b   : > { %s6898_s29 = sld [smem:[#allocation10_spill]] (!%p5003_p8)  ;;  %v6071_v1 = vmov (!%p5003_p8), 0.0   ;;  %v710_v2 = vld [vmem:[%s653_s24] sm:$0xff] (!%p5003_p8)  ;;  %v711_v3 = vld [vmem:[%s653_s24 + $0x8] sm:$0xff] (!%p5003_p8)  ;;  %vm6072_vm0 = vmmov (!%p5003_p8), 0   ;;  %vm728_vm1 = vcmask (!%p5003_p8), 130048  }
  0x2c   : > { %709 = sbr.rel (%p5003_p8) target bundleno = 270 (0x10e), region = 84  ;;  %5567 = vmatprep.subr.bf16.mxu0 (!%p5003_p8), %v6071_v1  ;;  %5569 = vmatprep.mubr.msk.bf16.mxu0 (!%p5003_p8), %vm6072_vm0, %v6071_v1  ;;  %v712_v4 = vpack.c.bf16 (!%p5003_p8), %v711_v3, %v710_v2  ;;  %s6899_s10 = sld [smem:[#allocation11_spill]] (!%p5003_p8)  ;;  %vm773_vm2 = vcmask (!%p5003_p8), 261120  }
  0x31   : > { %v5836_v0 = vld [vmem:[%s6898_s29] sm:$0xff] (!%p5003_p8)  }
  0x32   : > { %5568 = vmatpush3.bf16.msra.mxu0 (!%p5003_p8), %v5836_v0  ;;  %v5004_v5 = vld [vmem:[%s6899_s10] ss:$0 sm:$0xff] (!%p5003_p8) }
  0x35   : > { %5570 = vmatmul.mubr.msk.bf16.vlgmr.msra.gmra.mrb[0].mxu0 %vm728_vm1, %v712_v4 }
 0x108   : > { %v766_v6 = vpop.f32.mrb[0].mxu0 }
 0x109   : > { %v767_v7 = vadd.f32 %v5004_v5, %v766_v6  ;;  %v5571_v8 = vpop.f32.mrb[1].mxu0 }
 0x10a   : > { %v769_v9 = vpop.f32.mrb[2].mxu0 }
 0x10b   : > { %774 = vst.msk [vmem:[#allocation2] sm:$0xff] %vm773_vm2, %v767_v7  ;;  %v770_v10 = vadd.f32 %v5004_v5, %v769_v9  ;;  %v5572_v11 = vpop.f32.mrb[3].mxu0 }
 0x10d   : > { %775 = vst.msk [vmem:[#allocation2 + $0x8] sm:$0xff] %vm773_vm2, %v770_v10 }
 0x10e PF: > { %v5837_v12 = vld [vmem:[%s6205_s20 + $0x40] sm:$0xff]   ;;  %v6073_v13 = vmov 0.0   ;;  %v5838_v14 = vld [vmem:[%s6205_s20 + $0x48] sm:$0xff]   ;;  %vm6074_vm3 = vmmov 0   ;;  %vm802_vm4 = vcmask 261120   ;;  %vm985_vm5 = vcmask 64512   ;;  %s6900_s19 = scalar_lea.vmem %s6859_s6, %s6194_s26  ;;  %s6901_s0 = scalar_lea.vmem %s6860_s7, %s6194_s26 }
 0x10f   : > { %5581 = vmatprep.subr.bf16.mxu1 %v6073_v13  ;;  %5573 = vmatprep.subr.bf16.mxu0 %v6073_v13  ;;  %v5839_v15 = vld [vmem:[%s6205_s20] sm:$0xff]   ;;  %v5840_v18 = vld [vmem:[%s6205_s20 + $0x8] sm:$0xff]   ;;  %vm1105_vm6 = vcmask 1043456   ;;  %s6902_s30 = scalar_lea.vmem %s6861_s8, %s6194_s26  ;;  %s6903_s28 = scalar_lea.vmem %s6865_s12, %s6194_s26 }
 0x110   : > { %5582 = vmatpush3.bf16.msra.mxu1 %v5837_v12  ;;  %5585 = vmatprep.mubr.msk.bf16.mxu1 %vm6074_vm3, %v6073_v13  ;;  %v5841_v20 = vld [vmem:[%s6205_s20 + $0x80] sm:$0xff]   ;;  %v5842_v21 = vld [vmem:[%s6205_s20 + $0x88] sm:$0xff]   ;;  %s6905_s29 = sld [smem:[#allocation3_spill]] }
 0x111   : > { %5583 = vmatprep.subr.bf16.mxu1 %v6073_v13  ;;  %5577 = vmatprep.mubr.msk.bf16.mxu0 %vm6074_vm3, %v6073_v13  ;;  %v5016_v22 = vld [vmem:[%s6210_s1 + $0x4] ss:$0 sm:$0xff]  ;;  %v5007_v27 = vld [vmem:[%s6210_s1] ss:$0 sm:$0xff]  ;;  %v5025_v39 = vld [vmem:[%s6210_s1 + $0x8] ss:$0 sm:$0xff] }
 0x112   : > { %v776_v16 = vld [vmem:[#allocation2] sm:$0xff]  ;;  %5574 = vmatpush3.bf16.msra.mxu0 %v5839_v15 }
 0x113   : > { %5575 = vmatprep.subr.bf16.mxu0 %v6073_v13 }
 0x114   : > { %v777_v17 = vld [vmem:[#allocation2 + $0x8] sm:$0xff]  ;;  %5584 = vmatpush3.bf16.msra.mxu1 %v5838_v14  ;;  %v5843_v14 = vld [vmem:[%s6205_s20 + $0x50] sm:$0xff]  }
 0x115   : > { %v6284_v19 = vpack.c.bf16 %v777_v17, %v776_v16  ;;  %5597 = vmatprep.subr.bf16.mxu1 %v6073_v13 }
 0x116   : > { %5576 = vmatpush3.bf16.msra.mxu0 %v5840_v18  ;;  %v5844_v18 = vld [vmem:[%s6205_s20 + $0x58] sm:$0xff]   ;;  %p5307_p9 = scmp.ne.s32.totalorder %s6905_s29, 1 }
 0x117   : > { %5586 = vmatmul.mubr.msk.bf16.vlgmr.msra.gmra.mrb[0].mxu1 %vm802_vm4, %v6284_v19  ;;  %5589 = vmatprep.subr.bf16.mxu0 %v6073_v13  ;;  %vm4792_vm7 = vcmask (!%p5307_p9), 1041409   ;;  %vm4795_vm8 = vcmask (!%p5307_p9), 254976  }
 0x118   : > { %5599 = vmatprep.mubr.msk.bf16.mxu1 %vm6074_vm3, %v6073_v13 }
 0x119   : > { %5578 = vmatmul.mubr.msk.bf16.vlgmr.msra.gmra.mrb[0].mxu0 %vm802_vm4, %v6284_v19 }
 0x11a   : > { %5590 = vmatpush3.bf16.msra.mxu0 %v5841_v20  ;;  %5593 = vmatprep.mubr.msk.bf16.mxu0 %vm6074_vm3, %v6073_v13  ;;  %v5845_v20 = vld [vmem:[%s6205_s20 + $0x10] sm:$0xff]  }
 0x11b   : > { %5591 = vmatprep.subr.bf16.mxu0 %v6073_v13 }
 0x11e   : > { %5592 = vmatpush3.bf16.msra.mxu0 %v5842_v21 }
 0x11f   : > { %5603 = vmatprep.subr.bf16.mxu0 %v6073_v13 }
 0x121   : > { %5594 = vmatmul.mubr.msk.bf16.vlgmr.msra.gmra.mrb[4].mxu0 %vm802_vm4, %v6284_v19 }
 0x122   : > { %5605 = vmatprep.mubr.msk.bf16.mxu0 %vm6074_vm3, %v6073_v13 }
 0x1ea   : > { %v906_v23 = vpop.f32.mrb[0].mxu1 }
 0x1eb   : > { %v907_v24 = vadd.f32 %v5016_v22, %v906_v23  ;;  %v5587_v25 = vpop.f32.mrb[1].mxu1  ;;  %v5847_v23 = vld [vmem:[%s6205_s20 + $0x90] sm:$0xff]  }
 0x1ec   : > { %v909_v26 = vpop.f32.mrb[2].mxu1  ;;  %v840_v28 = vpop.f32.mrb[0].mxu0 }
 0x1ed   : > { %v981_v29 = vpack.c.bf16 %v907_v24, %v907_v24  ;;  %v910_v30 = vadd.f32 %v5016_v22, %v909_v26  ;;  %v5588_v31 = vpop.f32.mrb[3].mxu1  ;;  %v5579_v32 = vpop.f32.mrb[1].mxu0  ;;  %v841_v36 = vadd.f32 %v5007_v27, %v840_v28  ;;  %v5846_v22 = vld [vmem:[%s6205_s20 + $0x18] sm:$0xff]  }
 0x1ee   : > { %v843_v33 = vpop.f32.mrb[2].mxu0  ;;  %v5848_v24 = vld [vmem:[%s6205_s20 + $0x98] sm:$0xff]  }
 0x1ef   : > { %v990_v34 = vsel %vm985_vm5, %v981_v29, 0  ;;  %v982_v35 = vpack.c.bf16 %v910_v30, %v910_v30  ;;  %v5580_v37 = vpop.f32.mrb[3].mxu0  ;;  %v979_v40 = vpack.c.bf16 %v841_v36, %v841_v36  ;;  %v844_v41 = vadd.f32 %v5007_v27, %v843_v33  ;;  %v5047_v33 = vld [vmem:[%s6210_s1 + $0x5] ss:$0 sm:$0xff] }
 0x1f0   : > { %5598 = vmatpush3.bf16.xpose.msra.mxu1 %v990_v34 }
 0x1f1   : > { %v1036_v38 = vsel %vm985_vm5, %v982_v35, 0  ;;  %5609 = vmatprep.subr.bf16.mxu1 %v6073_v13  ;;  %v980_v46 = vpack.c.bf16 %v844_v41, %v844_v41 }
 0x1f2   : > { %5604 = vmatpush3.bf16.xpose.msra.mxu0 %v1036_v38 }
 0x1f3   : > { %5615 = vmatprep.subr.bf16.mxu0 %v6073_v13 }
 0x1f4   : > { %v972_v42 = vpop.f32.mrb[4].mxu0 }
 0x1f5   : > { %v973_v43 = vadd.f32 %v5025_v39, %v972_v42  ;;  %v5595_v44 = vpop.f32.mrb[5].mxu0 }
 0x1f6   : > { %v975_v45 = vpop.f32.mrb[6].mxu0 }
 0x1f7   : > { %5600 = vmatmul.mubr.msk.bf16.vlgmr.msra.gmra.mrb[4].mxu1 %vm985_vm5, %v979_v40  ;;  %v983_v47 = vpack.c.bf16 %v973_v43, %v973_v43  ;;  %v976_v48 = vadd.f32 %v5025_v39, %v975_v45  ;;  %v5596_v49 = vpop.f32.mrb[7].mxu0  ;;  %v5038_v39 = vld [vmem:[%s6210_s1 + $0x1] ss:$0 sm:$0xff] }
 0x1f8   : > { %5611 = vmatprep.mubr.msk.bf16.mxu1 %vm6074_vm3, %v6073_v13 }
 0x1f9   : > { %5606 = vmatmul.mubr.msk.bf16.vlgmr.msra.gmra.mrb[8].mxu0 %vm985_vm5, %v980_v46  ;;  %v1107_v50 = vsel %vm1105_vm6, %v983_v47, 0  ;;  %v984_v51 = vpack.c.bf16 %v976_v48, %v976_v48 }
 0x1fa   : > { %5610 = vmatpush3.bf16.msra.mxu1 %v1107_v50  ;;  %5617 = vmatprep.mubr.msk.bf16.mxu0 %vm6074_vm3, %v6073_v13 }
 0x1fb   : > { %v1153_v52 = vsel %vm1105_vm6, %v984_v51, 0  ;;  %5621 = vmatprep.subr.bf16.mxu1 %v6073_v13 }
 0x1fc   : > { %5616 = vmatpush3.bf16.msra.mxu0 %v1153_v52 }
 0x1fd   : > { %5629 = vmatprep.subr.bf16.mxu0 %v6073_v13 }
 0x2ca   : > { %v1026_v53 = vpop.f32.mrb[4].mxu1 }
 0x2cb   : > { %v5601_v54 = vpop.f32.mrb[5].mxu1  ;;  %v1078_v62 = vsel %vm985_vm5, %v1026_v53, -inf }
 0x2cc   : > { %v1029_v55 = vpop.f32.mrb[6].mxu1  ;;  %v1072_v56 = vpop.f32.mrb[8].mxu0  ;;  %v5056_v54 = vld [vmem:[%s6210_s1 + $0x9] ss:$0 sm:$0xff] }
 0x2cd   : > { %v5602_v57 = vpop.f32.mrb[7].mxu1  ;;  %v5607_v58 = vpop.f32.mrb[9].mxu0  ;;  %v1081_v59 = vsel %vm985_vm5, %v1072_v56, -inf }
 0x2ce   : > { %1082 = vmax.xlane.f32.xlu0 %v1081_v59  ;;  %v1075_v60 = vpop.f32.mrb[10].mxu0 }
 0x2cf   : > { %v5608_v61 = vpop.f32.mrb[11].mxu0 }
 0x2d2   : > { %1079 = vmax.xlane.f32.xlu0 %v1078_v62 }
 0x35b   : > { %v1083_v63 = vpop.xlane.xlu0 %1082 }
 0x35c   : > { %v1085_v0 = vsub.f32 %v1072_v56, %v1083_v63 }
 0x35e   : > { %v1088_v1 = vmul.f32 1.442695, %v1085_v0 }
 0x35f   : > { %v1080_v2 = vpop.xlane.xlu0 %1079 }
 0x360   : > { %5989 = vpow2.f32 %v1088_v1  ;;  %v1084_v3 = vsub.f32 %v1026_v53, %v1080_v2 }
 0x362   : > { %v1086_v4 = vmul.f32 1.442695, %v1084_v3 }
 0x364   : > { %5991 = vpow2.f32 %v1086_v4 }
 0x36a   : > { %v5990_v5 = vpop.eup %5989 }
 0x36b   : > { %v1093_v6 = vsel %vm985_vm5, %v5990_v5, 0.0 }
 0x36c   : > { %1094 = vadd.xlane.f32.xlu1 %v1093_v6 }
 0x36e   : > { %v5992_v7 = vpop.eup %5991 }
 0x36f   : > { %v1090_v8 = vsel %vm985_vm5, %v5992_v7, 0.0 }
 0x370   : > { %1091 = vadd.xlane.f32.xlu1 %v1090_v8 }
 0x3f9   : > { %v1095_v9 = vpop.xlane.xlu1 %1094 }
 0x3fa   : > { %5993 = vrcp.f32 %v1095_v9 }
 0x3fd   : > { %v1092_v10 = vpop.xlane.xlu1 %1091 }
 0x3fe   : > { %5995 = vrcp.f32 %v1092_v10 }
 0x404   : > { %v5994_v11 = vpop.eup %5993 }
 0x405   : > { %v1099_v12 = vmul.f32 %v5994_v11, %v5990_v5 }
 0x407   : > { %v1101_v15 = vpack.c.bf16 %v1099_v12, %v1099_v12 }
 0x408   : > { %v5996_v16 = vpop.eup %5995 }
 0x409   : > { %v1098_v17 = vmul.f32 %v5996_v16, %v5992_v7  ;;  %5618 = vmatmul.mubr.msk.bf16.vlgmr.msra.gmra.mrb[12].mxu0 %vm985_vm5, %v1101_v15 }
 0x40a   : > { %5630 = vmatpush3.bf16.msra.mxu0 %v5843_v14  ;;  %5633 = vmatprep.mubr.msk.bf16.mxu0 %vm6074_vm3, %v6073_v13 }
 0x40b   : > { %v1100_v21 = vpack.c.bf16 %v1098_v17, %v1098_v17  ;;  %5631 = vmatprep.subr.bf16.mxu0 %v6073_v13 }
 0x40d   : > { %5612 = vmatmul.mubr.msk.bf16.vlgmr.msra.gmra.mrb[8].mxu1 %vm985_vm5, %v1100_v21 }
 0x40e   : > { %5632 = vmatpush3.bf16.msra.mxu0 %v5844_v18  ;;  %5622 = vmatpush3.bf16.msra.mxu1 %v5845_v20 }
 0x40f   : > { %5623 = vmatprep.subr.bf16.mxu1 %v6073_v13  ;;  %5625 = vmatprep.mubr.msk.bf16.mxu1 %vm6074_vm3, %v6073_v13 }
 0x410   : > { %5645 = vmatprep.subr.bf16.mxu0 %v6073_v13 }
 0x411   : > { %5634 = vmatmul.mubr.msk.bf16.vlgmr.msra.gmra.mrb[16].mxu0 %vm802_vm4, %v6284_v19 }
 0x412   : > { %5624 = vmatpush3.bf16.msra.mxu1 %v5846_v22  ;;  %5647 = vmatprep.mubr.msk.bf16.mxu0 %vm6074_vm3, %v6073_v13 }
 0x413   : > { %5637 = vmatprep.subr.bf16.mxu1 %v6073_v13 }
 0x415   : > { %5626 = vmatmul.mubr.msk.bf16.vlgmr.msra.gmra.mrb[12].mxu1 %vm802_vm4, %v6284_v19 }
 0x416   : > { %5641 = vmatprep.mubr.msk.bf16.mxu1 %vm6074_vm3, %v6073_v13  ;;  %5638 = vmatpush3.bf16.msra.mxu1 %v5847_v23 }
 0x417   : > { %5639 = vmatprep.subr.bf16.mxu1 %v6073_v13 }
 0x41a   : > { %5640 = vmatpush3.bf16.msra.mxu1 %v5848_v24 }
 0x41b   : > { %5651 = vmatprep.subr.bf16.mxu1 %v6073_v13 }
 0x41d   : > { %5642 = vmatmul.mubr.msk.bf16.vlgmr.msra.gmra.mrb[16].mxu1 %vm802_vm4, %v6284_v19 }
 0x41e   : > { %5653 = vmatprep.mubr.msk.bf16.mxu1 %vm6074_vm3, %v6073_v13 }
 0x4dc   : > { %v6356_v25 = vpop.f32.mrb[12].mxu0 }
 0x4dd   : > { %v5619_v26 = vpop.f32.mrb[13].mxu0 }
 0x4de   : > { %v1192_v27 = vpop.f32.mrb[14].mxu0 }
 0x4df   : > { %v5620_v28 = vpop.f32.mrb[15].mxu0  ;;  %v5064_v27 = vld [vmem:[%s6215_s15 + $0x4] sm:$0xf] }
 0x4e0   : > { %v6358_v29 = vpop.f32.mrb[8].mxu1 }
 0x4e1   : > { %v1195_v30 = vpack.c.bf16 %v6356_v25, %v6358_v29  ;;  %v5613_v31 = vpop.f32.mrb[9].mxu1 }
 0x4e2   : > { %v1146_v32 = vpop.f32.mrb[10].mxu1 }
 0x4e3   : > { %v5614_v34 = vpop.f32.mrb[11].mxu1  ;;  %v1196_v32 = vld [vmem:[%s6215_s15] sm:$0xf] }
 0x4e4   : > { %v1322_v35 = vpop.f32.mrb[16].mxu0 }
 0x4e5   : > { %v1323_v36 = vadd.f32 %v5047_v33, %v1322_v35  ;;  %v5635_v37 = vpop.f32.mrb[17].mxu0  ;;  %v1616_v35 = vsel %vm1105_vm6, %v5064_v27, 0 }
 0x4e6   : > { %v1325_v38 = vpop.f32.mrb[18].mxu0  ;;  %v1663_v37 = vsel %vm1105_vm6, %v1196_v32, 0 }
 0x4e7   : > { %v1397_v40 = vpack.c.bf16 %v1323_v36, %v1323_v36  ;;  %v1326_v41 = vadd.f32 %v5047_v33, %v1325_v38  ;;  %v5636_v42 = vpop.f32.mrb[19].mxu0  ;;  %v5849_v38 = vld [vmem:[%s6205_s20 + $0x60] sm:$0xff]  }
 0x4e8   : > { %v1256_v43 = vpop.f32.mrb[12].mxu1 }
 0x4e9   : > { %v1405_v44 = vsel %vm985_vm5, %v1397_v40, 0  ;;  %v1398_v45 = vpack.c.bf16 %v1326_v41, %v1326_v41  ;;  %v1257_v46 = vadd.f32 %v5038_v39, %v1256_v43  ;;  %v5627_v47 = vpop.f32.mrb[13].mxu1  ;;  %v5851_v41 = vld [vmem:[%s6205_s20 + $0x20] sm:$0xff]  }
 0x4ea   : > { %5646 = vmatpush3.bf16.xpose.msra.mxu0 %v1405_v44  ;;  %v1259_v48 = vpop.f32.mrb[14].mxu1  ;;  %v5852_v47 = vld [vmem:[%s6205_s20 + $0x28] sm:$0xff]  }
 0x4eb   : > { %v1451_v49 = vsel %vm985_vm5, %v1398_v45, 0  ;;  %v5628_v50 = vpop.f32.mrb[15].mxu1  ;;  %5657 = vmatprep.subr.bf16.mxu0 %v6073_v13  ;;  %v1395_v51 = vpack.c.bf16 %v1257_v46, %v1257_v46  ;;  %v1260_v52 = vadd.f32 %v5038_v39, %v1259_v48  ;;  %v5850_v39 = vld [vmem:[%s6205_s20 + $0x68] sm:$0xff]  }
 0x4ec   : > { %5652 = vmatpush3.bf16.xpose.msra.mxu1 %v1451_v49  ;;  %v5853_v49 = vld [vmem:[%s6205_s20 + $0xa0] sm:$0xff]  }
 0x4ed   : > { %5663 = vmatprep.subr.bf16.mxu1 %v6073_v13  ;;  %v1396_v53 = vpack.c.bf16 %v1260_v52, %v1260_v52 }
 0x4f0   : > { %v1388_v55 = vpop.f32.mrb[16].mxu1 }
 0x4f1   : > { %5648 = vmatmul.mubr.msk.bf16.vlgmr.msra.gmra.mrb[20].mxu0 %vm985_vm5, %v1395_v51  ;;  %v1389_v56 = vadd.f32 %v5056_v54, %v1388_v55  ;;  %v5643_v57 = vpop.f32.mrb[17].mxu1 }
 0x4f2   : > { %5659 = vmatprep.mubr.msk.bf16.mxu0 %vm6074_vm3, %v6073_v13  ;;  %v1391_v58 = vpop.f32.mrb[18].mxu1 }
 0x4f3   : > { %5654 = vmatmul.mubr.msk.bf16.vlgmr.msra.gmra.mrb[20].mxu1 %vm985_vm5, %v1396_v53  ;;  %v1399_v59 = vpack.c.bf16 %v1389_v56, %v1389_v56  ;;  %v1392_v60 = vadd.f32 %v5056_v54, %v1391_v58  ;;  %v5644_v61 = vpop.f32.mrb[19].mxu1  ;;  %v5854_v53 = vld [vmem:[%s6205_s20 + $0xa8] sm:$0xff]   ;;  %v5081_v54 = vld [vmem:[%s6210_s1 + $0x6] ss:$0 sm:$0xff] }
 0x4f4   : > { %5665 = vmatprep.mubr.msk.bf16.mxu1 %vm6074_vm3, %v6073_v13 }
 0x4f5   : > { %v1521_v62 = vsel %vm1105_vm6, %v1399_v59, 0  ;;  %v1400_v63 = vpack.c.bf16 %v1392_v60, %v1392_v60 }
 0x4f6   : > { %5658 = vmatpush3.bf16.msra.mxu0 %v1521_v62 }
 0x4f7   : > { %v1567_v0 = vsel %vm1105_vm6, %v1400_v63, 0  ;;  %5669 = vmatprep.subr.bf16.mxu0 %v6073_v13 }
 0x4f8   : > { %5664 = vmatpush3.bf16.msra.mxu1 %v1567_v0 }
 0x4f9   : > { %5675 = vmatprep.subr.bf16.mxu1 %v6073_v13 }
 0x5c4   : > { %v1441_v1 = vpop.f32.mrb[20].mxu0 }
 0x5c5   : > { %v5649_v2 = vpop.f32.mrb[21].mxu0  ;;  %v1493_v3 = vsel %vm985_vm5, %v1441_v1, -inf }
 0x5c6   : > { %v1487_v4 = vpop.f32.mrb[20].mxu1  ;;  %1494 = vmax.xlane.f32.xlu0 %v1493_v3  ;;  %v1444_v5 = vpop.f32.mrb[22].mxu0 }
 0x5c7   : > { %v5650_v6 = vpop.f32.mrb[23].mxu0  ;;  %v5655_v7 = vpop.f32.mrb[21].mxu1  ;;  %v1496_v8 = vsel %vm985_vm5, %v1487_v4, -inf }
 0x5c8   : > { %1497 = vmax.xlane.f32.xlu1 %v1496_v8  ;;  %v1490_v9 = vpop.f32.mrb[22].mxu1  ;;  %v5072_v7 = vld [vmem:[%s6210_s1 + $0x2] ss:$0 sm:$0xff] }
 0x5c9   : > { %v5656_v10 = vpop.f32.mrb[23].mxu1 }
 0x653   : > { %v1495_v11 = vpop.xlane.xlu0 %1494 }
 0x654   : > { %v1499_v12 = vsub.f32 %v1441_v1, %v1495_v11 }
 0x655   : > { %v1498_v14 = vpop.xlane.xlu1 %1497 }
 0x656   : > { %v1501_v15 = vmul.f32 1.442695, %v1499_v12  ;;  %v1500_v16 = vsub.f32 %v1487_v4, %v1498_v14 }
 0x658   : > { %5997 = vpow2.f32 %v1501_v15  ;;  %v1503_v17 = vmul.f32 1.442695, %v1500_v16 }
 0x65a   : > { %5999 = vpow2.f32 %v1503_v17  ;;  %v5090_v17 = vld [vmem:[%s6210_s1 + $0xa] ss:$0 sm:$0xff] }
 0x662   : > { %v5998_v18 = vpop.eup %5997 }
 0x663   : > { %v1505_v20 = vsel %vm985_vm5, %v5998_v18, 0.0 }
 0x664   : > { %v6000_v21 = vpop.eup %5999  ;;  %1506 = vadd.xlane.f32.xlu0 %v1505_v20 }
 0x665   : > { %v1508_v22 = vsel %vm985_vm5, %v6000_v21, 0.0 }
 0x666   : > { %1509 = vadd.xlane.f32.xlu1 %v1508_v22 }
 0x6f1   : > { %v1507_v23 = vpop.xlane.xlu0 %1506 }
 0x6f2   : > { %6001 = vrcp.f32 %v1507_v23 }
 0x6f3   : > { %v1510_v24 = vpop.xlane.xlu1 %1509 }
 0x6f4   : > { %6003 = vrcp.f32 %v1510_v24 }
 0x6fc   : > { %v6002_v26 = vpop.eup %6001 }
 0x6fd   : > { %v1513_v28 = vmul.f32 %v6002_v26, %v5998_v18 }
 0x6fe   : > { %v6004_v31 = vpop.eup %6003 }
 0x6ff   : > { %v1514_v33 = vmul.f32 %v6004_v31, %v6000_v21  ;;  %v1515_v34 = vpack.c.bf16 %v1513_v28, %v1513_v28 }
 0x701   : > { %5660 = vmatmul.mubr.msk.bf16.vlgmr.msra.gmra.mrb[24].mxu0 %vm985_vm5, %v1515_v34  ;;  %v1516_v36 = vpack.c.bf16 %v1514_v33, %v1514_v33 }
 0x702   : > { %5670 = vmatpush3.bf16.msra.mxu0 %v1616_v35  ;;  %5671 = vmatprep.mubr.msk.bf16.mxu0 %vm6074_vm3, %v6073_v13 }
 0x703   : > { %5666 = vmatmul.mubr.msk.bf16.vlgmr.msra.gmra.mrb[24].mxu1 %vm985_vm5, %v1516_v36  ;;  %5681 = vmatprep.subr.bf16.mxu0 %v6073_v13 }
 0x704   : > { %5676 = vmatpush3.bf16.msra.mxu1 %v1663_v37  ;;  %5677 = vmatprep.mubr.msk.bf16.mxu1 %vm6074_vm3, %v6073_v13 }
 0x705   : > { %5689 = vmatprep.subr.bf16.mxu1 %v6073_v13 }
 0x70b   : > { %5678 = vmatmul.mubr.msk.bf16.vlgmr.msra.gmra.mrb[28].mxu1 %vm985_vm5, %v1195_v30 }
 0x70c   : > { %5690 = vmatpush3.bf16.msra.mxu1 %v5849_v38  ;;  %5693 = vmatprep.mubr.msk.bf16.mxu1 %vm6074_vm3, %v6073_v13 }
 0x70d   : > { %5691 = vmatprep.subr.bf16.mxu1 %v6073_v13 }
 0x710   : > { %5692 = vmatpush3.bf16.msra.mxu1 %v5850_v39 }
 0x711   : > { %5705 = vmatprep.subr.bf16.mxu1 %v6073_v13 }
 0x713   : > { %5694 = vmatmul.mubr.msk.bf16.vlgmr.msra.gmra.mrb[32].mxu1 %vm802_vm4, %v6284_v19 }
 0x714   : > { %5707 = vmatprep.mubr.msk.bf16.mxu1 %vm6074_vm3, %v6073_v13 }
 0x7d4   : > { %v1557_v25 = vpop.f32.mrb[24].mxu0 }
 0x7d5   : > { %v5661_v29 = vpop.f32.mrb[25].mxu0 }
 0x7d6   : > { %v1560_v30 = vpop.f32.mrb[26].mxu0  ;;  %v1603_v40 = vpop.f32.mrb[24].mxu1 }
 0x7d7   : > { %v1609_v42 = vpack.c.bf16 %v1603_v40, %v1557_v25  ;;  %v5662_v43 = vpop.f32.mrb[27].mxu0  ;;  %v5667_v44 = vpop.f32.mrb[25].mxu1 }
 0x7d8   : > { %v1606_v45 = vpop.f32.mrb[26].mxu1 }
 0x7d9   : > { %v5668_v46 = vpop.f32.mrb[27].mxu1  ;;  %5672 = vmatmul.mubr.msk.bf16.vlgmr.msra.gmra.mrb[28].mxu0 %vm985_vm5, %v1609_v42 }
 0x7da   : > { %5682 = vmatpush3.bf16.msra.mxu0 %v5851_v41  ;;  %5685 = vmatprep.mubr.msk.bf16.mxu0 %vm6074_vm3, %v6073_v13 }
 0x7db   : > { %5683 = vmatprep.subr.bf16.mxu0 %v6073_v13 }
 0x7de   : > { %v1699_v48 = vpop.f32.mrb[28].mxu1  ;;  %5684 = vmatpush3.bf16.msra.mxu0 %v5852_v47 }
 0x7df   : > { %v5679_v50 = vpop.f32.mrb[29].mxu1  ;;  %5697 = vmatprep.subr.bf16.mxu0 %v6073_v13 }
 0x7e0   : > { %v1702_v51 = vpop.f32.mrb[30].mxu1 }
 0x7e1   : > { %v5680_v52 = vpop.f32.mrb[31].mxu1  ;;  %5686 = vmatmul.mubr.msk.bf16.vlgmr.msra.gmra.mrb[32].mxu0 %vm802_vm4, %v6284_v19 }
 0x7e2   : > { %5698 = vmatpush3.bf16.msra.mxu0 %v5853_v49  ;;  %5701 = vmatprep.mubr.msk.bf16.mxu0 %vm6074_vm3, %v6073_v13  ;;  %v5098_v52 = vld [vmem:[%s6215_s15 + $0x8] sm:$0xf] }
 0x7e3   : > { %5699 = vmatprep.subr.bf16.mxu0 %v6073_v13 }
 0x7e6   : > { %v1831_v55 = vpop.f32.mrb[32].mxu1  ;;  %5700 = vmatpush3.bf16.msra.mxu0 %v5854_v53 }
 0x7e7   : > { %v1832_v56 = vadd.f32 %v5081_v54, %v1831_v55  ;;  %v5695_v57 = vpop.f32.mrb[33].mxu1  ;;  %5711 = vmatprep.subr.bf16.mxu0 %v6073_v13 }
 0x7e8   : > { %v1834_v58 = vpop.f32.mrb[34].mxu1  ;;  %v2125_v57 = vsel %vm1105_vm6, %v5098_v52, 0 }
 0x7e9   : > { %v1906_v59 = vpack.c.bf16 %v1832_v56, %v1832_v56  ;;  %v1835_v60 = vadd.f32 %v5081_v54, %v1834_v58  ;;  %v5696_v61 = vpop.f32.mrb[35].mxu1  ;;  %5702 = vmatmul.mubr.msk.bf16.vlgmr.msra.gmra.mrb[36].mxu0 %vm802_vm4, %v6284_v19 }
 0x7ea   : > { %5713 = vmatprep.mubr.msk.bf16.mxu0 %vm6074_vm3, %v6073_v13 }
 0x7eb   : > { %v1914_v62 = vsel %vm985_vm5, %v1906_v59, 0  ;;  %v1907_v63 = vpack.c.bf16 %v1835_v60, %v1835_v60  ;;  %v5857_v59 = vld [vmem:[%s6205_s20 + $0x30] sm:$0xff]   ;;  %v5858_v60 = vld [vmem:[%s6205_s20 + $0x38] sm:$0xff]  }
 0x7ec   : > { %5706 = vmatpush3.bf16.xpose.msra.mxu1 %v1914_v62 }
 0x7ed   : > { %v1960_v0 = vsel %vm985_vm5, %v1907_v63, 0  ;;  %5717 = vmatprep.subr.bf16.mxu1 %v6073_v13 }
 0x7ef   : > { %5712 = vmatpush3.bf16.xpose.msra.mxu0 %v1960_v0 }
 0x7f0   : > { %5723 = vmatprep.subr.bf16.mxu0 %v6073_v13 }
 0x8ac   : > { %v1652_v1 = vpop.f32.mrb[28].mxu0 }
 0x8ad   : > { %v6433_v2 = vadd.f32 %v1699_v48, %v1652_v1  ;;  %v5673_v3 = vpop.f32.mrb[29].mxu0  ;;  %v5855_v1 = vld [vmem:[%s6205_s20 + $0x70] sm:$0xff]  }
 0x8ae   : > { %v1655_v4 = vpop.f32.mrb[30].mxu0 }
 0x8af   : > { %v6435_v5 = vadd.f32 %v1702_v51, %v1655_v4  ;;  %v5674_v6 = vpop.f32.mrb[31].mxu0 }
 0x8b4   : > { %v1765_v8 = vpop.f32.mrb[32].mxu0 }
 0x8b5   : > { %v1766_v9 = vadd.f32 %v5072_v7, %v1765_v8  ;;  %v5687_v10 = vpop.f32.mrb[33].mxu0 }
 0x8b6   : > { %v1768_v11 = vpop.f32.mrb[34].mxu0  ;;  %v5859_v10 = vld [vmem:[%s6205_s20 + $0xb0] sm:$0xff]  }
 0x8b7   : > { %v1904_v12 = vpack.c.bf16 %v1766_v9, %v1766_v9  ;;  %v1769_v14 = vadd.f32 %v5072_v7, %v1768_v11  ;;  %v5688_v15 = vpop.f32.mrb[35].mxu0  ;;  %v5856_v9 = vld [vmem:[%s6205_s20 + $0x78] sm:$0xff]  }
 0x8b8   : > { %v5860_v11 = vld [vmem:[%s6205_s20 + $0xb8] sm:$0xff]  }
 0x8b9   : > { %v1905_v16 = vpack.c.bf16 %v1769_v14, %v1769_v14  ;;  %5708 = vmatmul.mubr.msk.bf16.vlgmr.msra.gmra.mrb[36].mxu1 %vm985_vm5, %v1904_v12 }
 0x8ba   : > { %5719 = vmatprep.mubr.msk.bf16.mxu1 %vm6074_vm3, %v6073_v13 }
 0x8bb   : > { %5714 = vmatmul.mubr.msk.bf16.vlgmr.msra.gmra.mrb[40].mxu0 %vm985_vm5, %v1905_v16 }
 0x8bc   : > { %v1897_v18 = vpop.f32.mrb[36].mxu0  ;;  %5725 = vmatprep.mubr.msk.bf16.mxu0 %vm6074_vm3, %v6073_v13 }
 0x8bd   : > { %v1898_v20 = vadd.f32 %v5090_v17, %v1897_v18  ;;  %v5703_v21 = vpop.f32.mrb[37].mxu0 }
 0x8be   : > { %v1900_v22 = vpop.f32.mrb[38].mxu0 }
 0x8bf   : > { %v1908_v23 = vpack.c.bf16 %v1898_v20, %v1898_v20  ;;  %v1901_v24 = vadd.f32 %v5090_v17, %v1900_v22  ;;  %v5704_v26 = vpop.f32.mrb[39].mxu0 }
 0x8c1   : > { %v2030_v27 = vsel %vm1105_vm6, %v1908_v23, 0  ;;  %v1909_v28 = vpack.c.bf16 %v1901_v24, %v1901_v24  ;;  %v5114_v24 = vld [vmem:[%s6210_s1 + $0x7] ss:$0 sm:$0xff] }
 0x8c2   : > { %5718 = vmatpush3.bf16.msra.mxu1 %v2030_v27 }
 0x8c3   : > { %v2076_v31 = vsel %vm1105_vm6, %v1909_v28, 0  ;;  %5729 = vmatprep.subr.bf16.mxu1 %v6073_v13 }
 0x8c4   : > { %5724 = vmatpush3.bf16.msra.mxu0 %v2076_v31  ;;  %v5105_v31 = vld [vmem:[%s6210_s1 + $0x3] ss:$0 sm:$0xff] }
 0x8c5   : > { %5735 = vmatprep.subr.bf16.mxu0 %v6073_v13 }
 0x98c   : > { %v1950_v32 = vpop.f32.mrb[36].mxu1 }
 0x98d   : > { %v5709_v33 = vpop.f32.mrb[37].mxu1  ;;  %v2002_v34 = vsel %vm985_vm5, %v1950_v32, -inf }
 0x98e   : > { %2003 = vmax.xlane.f32.xlu0 %v2002_v34  ;;  %v1953_v35 = vpop.f32.mrb[38].mxu1  ;;  %v1996_v36 = vpop.f32.mrb[40].mxu0 }
 0x98f   : > { %v5710_v37 = vpop.f32.mrb[39].mxu1  ;;  %v5715_v38 = vpop.f32.mrb[41].mxu0  ;;  %v2005_v39 = vsel %vm985_vm5, %v1996_v36, -inf }
 0x990   : > { %2006 = vmax.xlane.f32.xlu1 %v2005_v39  ;;  %v1999_v25 = vpop.f32.mrb[42].mxu0 }
 0x991   : > { %v5716_v29 = vpop.f32.mrb[43].mxu0  ;;  %v5123_v25 = vld [vmem:[%s6210_s1 + $0xb] ss:$0 sm:$0xff] }
 0xa1b   : > { %v2004_v30 = vpop.xlane.xlu0 %2003 }
 0xa1c   : > { %v2008_v40 = vsub.f32 %v1950_v32, %v2004_v30 }
 0xa1d   : > { %v2007_v41 = vpop.xlane.xlu1 %2006 }
 0xa1e   : > { %v2010_v42 = vmul.f32 1.442695, %v2008_v40  ;;  %v2009_v43 = vsub.f32 %v1996_v36, %v2007_v41 }
 0xa20   : > { %6005 = vpow2.f32 %v2010_v42  ;;  %v2012_v44 = vmul.f32 1.442695, %v2009_v43 }
 0xa22   : > { %6007 = vpow2.f32 %v2012_v44 }
 0xa2a   : > { %v6006_v45 = vpop.eup %6005 }
 0xa2b   : > { %v2014_v46 = vsel %vm985_vm5, %v6006_v45, 0.0 }
 0xa2c   : > { %v6008_v47 = vpop.eup %6007  ;;  %2015 = vadd.xlane.f32.xlu0 %v2014_v46 }
 0xa2d   : > { %v2017_v48 = vsel %vm985_vm5, %v6008_v47, 0.0 }
 0xa2e   : > { %2018 = vadd.xlane.f32.xlu1 %v2017_v48 }
 0xab9   : > { %v2016_v49 = vpop.xlane.xlu0 %2015 }
 0xaba   : > { %6009 = vrcp.f32 %v2016_v49 }
 0xabb   : > { %v2019_v50 = vpop.xlane.xlu1 %2018 }
 0xabc   : > { %6011 = vrcp.f32 %v2019_v50 }
 0xac4   : > { %v6010_v51 = vpop.eup %6009 }
 0xac5   : > { %v2022_v53 = vmul.f32 %v6010_v51, %v6006_v45 }
 0xac6   : > { %v6012_v54 = vpop.eup %6011 }
 0xac7   : > { %v2023_v55 = vmul.f32 %v6012_v54, %v6008_v47  ;;  %v2024_v56 = vpack.c.bf16 %v2022_v53, %v2022_v53 }
 0xac9   : > { %5720 = vmatmul.mubr.msk.bf16.vlgmr.msra.gmra.mrb[40].mxu1 %vm985_vm5, %v2024_v56  ;;  %v2025_v58 = vpack.c.bf16 %v2023_v55, %v2023_v55 }
 0xaca   : > { %5730 = vmatpush3.bf16.msra.mxu1 %v2125_v57  ;;  %5731 = vmatprep.mubr.msk.bf16.mxu1 %vm6074_vm3, %v6073_v13 }
 0xacb   : > { %5726 = vmatmul.mubr.msk.bf16.vlgmr.msra.gmra.mrb[44].mxu0 %vm985_vm5, %v2025_v58  ;;  %5743 = vmatprep.subr.bf16.mxu1 %v6073_v13 }
 0xacc   : > { %5739 = vmatprep.mubr.msk.bf16.mxu0 %vm6074_vm3, %v6073_v13  ;;  %5736 = vmatpush3.bf16.msra.mxu0 %v5857_v59 }
 0xacd   : > { %5737 = vmatprep.subr.bf16.mxu0 %v6073_v13 }
 0xad0   : > { %5738 = vmatpush3.bf16.msra.mxu0 %v5858_v60 }
 0xad1   : > { %5751 = vmatprep.subr.bf16.mxu0 %v6073_v13 }
 0xad3   : > { %5740 = vmatmul.mubr.msk.bf16.vlgmr.msra.gmra.mrb[48].mxu0 %vm802_vm4, %v6284_v19 }
 0xad4   : > { %5755 = vmatprep.mubr.msk.bf16.mxu0 %vm6074_vm3, %v6073_v13  ;;  %5752 = vmatpush3.bf16.msra.mxu0 %v5859_v10 }
 0xad5   : > { %5753 = vmatprep.subr.bf16.mxu0 %v6073_v13 }
 0xad8   : > { %5754 = vmatpush3.bf16.msra.mxu0 %v5860_v11 }
 0xad9   : > { %5765 = vmatprep.subr.bf16.mxu0 %v6073_v13 }
 0xadb   : > { %5756 = vmatmul.mubr.msk.bf16.vlgmr.msra.gmra.mrb[52].mxu0 %vm802_vm4, %v6284_v19 }
 0xadc   : > { %5767 = vmatprep.mubr.msk.bf16.mxu0 %vm6074_vm3, %v6073_v13 }
 0xb9c   : > { %v2066_v61 = vpop.f32.mrb[40].mxu1 }
 0xb9d   : > { %v5721_v62 = vpop.f32.mrb[41].mxu1 }
 0xb9e   : > { %v2069_v63 = vpop.f32.mrb[42].mxu1  ;;  %v2112_v0 = vpop.f32.mrb[44].mxu0 }
 0xb9f   : > { %v2118_v3 = vpack.c.bf16 %v2112_v0, %v2066_v61  ;;  %v5722_v4 = vpop.f32.mrb[43].mxu1  ;;  %v5727_v6 = vpop.f32.mrb[45].mxu0 }
 0xba0   : > { %v2115_v7 = vpop.f32.mrb[46].mxu0 }
 0xba1   : > { %v5728_v8 = vpop.f32.mrb[47].mxu0  ;;  %5732 = vmatmul.mubr.msk.bf16.vlgmr.msra.gmra.mrb[44].mxu1 %vm985_vm5, %v2118_v3 }
 0xba2   : > { %5744 = vmatpush3.bf16.msra.mxu1 %v5855_v1  ;;  %5747 = vmatprep.mubr.msk.bf16.mxu1 %vm6074_vm3, %v6073_v13 }
 0xba3   : > { %5745 = vmatprep.subr.bf16.mxu1 %v6073_v13 }
 0xba6   : > { %5746 = vmatpush3.bf16.msra.mxu1 %v5856_v9  ;;  %v2229_v12 = vpop.f32.mrb[48].mxu0  ;;  %v5131_v9 = vld [vmem:[%s6215_s15 + $0xc] sm:$0xf] }
 0xba7   : > { %5759 = vmatprep.subr.bf16.mxu1 %v6073_v13  ;;  %v5741_v14 = vpop.f32.mrb[49].mxu0  ;;  %v2230_v36 = vadd.f32 %v5105_v31, %v2229_v12 }
 0xba8   : > { %v2232_v15 = vpop.f32.mrb[50].mxu0 }
 0xba9   : > { %5748 = vmatmul.mubr.msk.bf16.vlgmr.msra.gmra.mrb[48].mxu1 %vm802_vm4, %v6284_v19  ;;  %v5742_v16 = vpop.f32.mrb[51].mxu0  ;;  %v2233_v38 = vadd.f32 %v5105_v31, %v2232_v15  ;;  %v2589_v15 = vsel %vm1105_vm6, %v5131_v9, 0 }
 0xbaa   : > { %5761 = vmatprep.mubr.msk.bf16.mxu1 %vm6074_vm3, %v6073_v13 }
 0xbab   : > { %v2369_v39 = vpack.c.bf16 %v2233_v38, %v2233_v38 }
 0xbae   : > { %v2361_v29 = vpop.f32.mrb[52].mxu0 }
 0xbaf   : > { %v2362_v30 = vadd.f32 %v5123_v25, %v2361_v29  ;;  %v5757_v40 = vpop.f32.mrb[53].mxu0 }
 0xbb0   : > { %v2364_v41 = vpop.f32.mrb[54].mxu0 }
 0xbb1   : > { %v2372_v42 = vpack.c.bf16 %v2362_v30, %v2362_v30  ;;  %v2365_v43 = vadd.f32 %v5123_v25, %v2364_v41  ;;  %v5758_v44 = vpop.f32.mrb[55].mxu0  ;;  %v6030_v25 = vld [vmem:[#allocation2 + $0x8] sm:$0xff] }
 0xbb3   : > { %v2494_v45 = vsel %vm1105_vm6, %v2372_v42, 0  ;;  %v2373_v46 = vpack.c.bf16 %v2365_v43, %v2365_v43 }
 0xbb5   : > { %v2540_v47 = vsel %vm1105_vm6, %v2373_v46, 0 }
 0xc74   : > { %v2161_v17 = vpop.f32.mrb[44].mxu1 }
 0xc75   : > { %v6490_v18 = vadd.f32 %v2161_v17, %v6433_v2  ;;  %v5733_v20 = vpop.f32.mrb[45].mxu1 }
 0xc76   : > { %v2164_v21 = vpop.f32.mrb[46].mxu1 }
 0xc77   : > { %v6493_v22 = vadd.f32 %v2164_v21, %v6435_v5  ;;  %v5734_v23 = vpop.f32.mrb[47].mxu1  ;;  %v2368_v5 = vpack.c.bf16 %v2230_v36, %v2230_v36 }
 0xc7c   : > { %v2295_v19 = vpop.f32.mrb[48].mxu1 }
 0xc7d   : > { %v2296_v26 = vadd.f32 %v5114_v24, %v2295_v19  ;;  %v5749_v27 = vpop.f32.mrb[49].mxu1 }
 0xc7e   : > { %v2298_v28 = vpop.f32.mrb[50].mxu1 }
 0xc7f   : > { %v2370_v32 = vpack.c.bf16 %v2296_v26, %v2296_v26  ;;  %v2299_v33 = vadd.f32 %v5114_v24, %v2298_v28  ;;  %v5750_v34 = vpop.f32.mrb[51].mxu1 }
 0xc81   : > { %v2378_v35 = vsel %vm985_vm5, %v2370_v32, 0  ;;  %v2371_v2 = vpack.c.bf16 %v2299_v33, %v2299_v33  ;;  %v5133_v32 = vld [vmem:[%s6900_s19] ss:$0 sm:$0xff] }
 0xc82   : > { %5760 = vmatpush3.bf16.xpose.msra.mxu1 %v2378_v35 }
 0xc83   : > { %v2424_v37 = vsel %vm985_vm5, %v2371_v2, 0  ;;  %5771 = vmatprep.subr.bf16.mxu1 %v6073_v13 }
 0xc84   : > { %5766 = vmatpush3.bf16.xpose.msra.mxu0 %v2424_v37 }
 0xc85   : > { %5777 = vmatprep.subr.bf16.mxu0 %v6073_v13 }
 0xc89   : > { %5762 = vmatmul.mubr.msk.bf16.vlgmr.msra.gmra.mrb[52].mxu1 %vm985_vm5, %v2368_v5  ;;  %v6029_v5 = vld [vmem:[#allocation2] sm:$0xff] }
 0xc8a   : > { %5773 = vmatprep.mubr.msk.bf16.mxu1 %vm6074_vm3, %v6073_v13  ;;  %5772 = vmatpush3.bf16.msra.mxu1 %v2494_v45 }
 0xc8b   : > { %5768 = vmatmul.mubr.msk.bf16.vlgmr.msra.gmra.mrb[56].mxu0 %vm985_vm5, %v2369_v39  ;;  %5783 = vmatprep.subr.bf16.mxu1 %v6073_v13 }
 0xc8c   : > { %5779 = vmatprep.mubr.msk.bf16.mxu0 %vm6074_vm3, %v6073_v13  ;;  %5778 = vmatpush3.bf16.msra.mxu0 %v2540_v47 }
 0xd5c   : > { %v2414_v48 = vpop.f32.mrb[52].mxu1 }
 0xd5d   : > { %v5763_v49 = vpop.f32.mrb[53].mxu1  ;;  %v2466_v50 = vsel %vm985_vm5, %v2414_v48, -inf }
 0xd5e   : > { %2467 = vmax.xlane.f32.xlu0 %v2466_v50  ;;  %v2417_v51 = vpop.f32.mrb[54].mxu1  ;;  %v2460_v52 = vpop.f32.mrb[56].mxu0  ;;  %v2699_v49 = vld [vmem:[%s6233_s4 + $0x40] sm:$0xff]  ;;  %v2692_v50 = vld [vmem:[%s6233_s4 + $0x8] sm:$0xff] }
 0xd5f   : > { %v5764_v53 = vpop.f32.mrb[55].mxu1  ;;  %v5769_v54 = vpop.f32.mrb[57].mxu0  ;;  %v2469_v55 = vsel %vm985_vm5, %v2460_v52, -inf }
 0xd60   : > { %2470 = vmax.xlane.f32.xlu1 %v2469_v55  ;;  %v2463_v56 = vpop.f32.mrb[58].mxu0 }
 0xd61   : > { %v5770_v57 = vpop.f32.mrb[59].mxu0  ;;  %v2707_v56 = vld [vmem:[%s6233_s4 + $0x80] sm:$0xff] }
 0xd62   : > { %v2715_v57 = vld [vmem:[%s6233_s4 + $0xc0] sm:$0xff] }
 0xdeb   : > { %v2468_v58 = vpop.xlane.xlu0 %2467 }
 0xdec   : > { %v2472_v59 = vsub.f32 %v2414_v48, %v2468_v58  ;;  %v2691_v48 = vld [vmem:[%s6233_s4] sm:$0xff]  ;;  %v2708_v58 = vld [vmem:[%s6233_s4 + $0x88] sm:$0xff] }
 0xded   : > { %v2471_v60 = vpop.xlane.xlu1 %2470  ;;  %v5137_v51 = vcombine.high %v2691_v48, %v2699_v49  ;;  %v5136_v53 = vcombine.low %v2691_v48, %v2699_v49  ;;  %v2697_v48 = vld [vmem:[%s6233_s4 + $0x30] sm:$0xff] }
 0xdee   : > { %v2474_v61 = vmul.f32 1.442695, %v2472_v59  ;;  %v2473_v62 = vsub.f32 %v2460_v52, %v2471_v60  ;;  %v2700_v52 = vld [vmem:[%s6233_s4 + $0x48] sm:$0xff]  ;;  %v5153_v59 = vcombine.high %v2707_v56, %v2715_v57  ;;  %v2705_v49 = vld [vmem:[%s6233_s4 + $0x70] sm:$0xff] }
 0xdef   : > { %v5138_v54 = vcombine.low %v2692_v50, %v2700_v52  ;;  %v5139_v55 = vcombine.high %v2692_v50, %v2700_v52  ;;  %2970 = vmatprep.subr.bf16.mxu0 %v5137_v51  ;;  %v2716_v60 = vld [vmem:[%s6233_s4 + $0xc8] sm:$0xff]  ;;  %v2698_v50 = vld [vmem:[%s6233_s4 + $0x38] sm:$0xff] }
 0xdf0   : > { %6013 = vpow2.f32 %v2474_v61  ;;  %v2476_v63 = vmul.f32 1.442695, %v2473_v62  ;;  %v5152_v61 = vcombine.low %v2707_v56, %v2715_v57  ;;  %v5154_v62 = vcombine.low %v2708_v58, %v2716_v60  ;;  %v2706_v51 = vld [vmem:[%s6233_s4 + $0x78] sm:$0xff]  ;;  %v2713_v56 = vld [vmem:[%s6233_s4 + $0xb0] sm:$0xff] }
 0xdf1   : > { %v2721_v57 = vld [vmem:[%s6233_s4 + $0xf0] sm:$0xff] }
 0xdf2   : > { %6015 = vpow2.f32 %v2476_v63  ;;  %v5155_v63 = vcombine.high %v2708_v58, %v2716_v60  ;;  %v2714_v58 = vld [vmem:[%s6233_s4 + $0xb8] sm:$0xff]  ;;  %v5148_v60 = vcombine.low %v2697_v48, %v2705_v49 }
 0xdfa   : > { %v6014_v0 = vpop.eup %6013 }
 0xdfb   : > { %v2478_v1 = vsel %vm985_vm5, %v6014_v0, 0.0 }
 0xdfc   : > { %v6016_v3 = vpop.eup %6015  ;;  %2479 = vadd.xlane.f32.xlu0 %v2478_v1  ;;  %v2701_v1 = vld [vmem:[%s6233_s4 + $0x50] sm:$0xff] }
 0xdfd   : > { %v2481_v4 = vsel %vm985_vm5, %v6016_v3, 0.0 }
 0xdfe   : > { %2482 = vadd.xlane.f32.xlu1 %v2481_v4 }
 0xe89   : > { %v2480_v6 = vpop.xlane.xlu0 %2479 }
 0xe8a   : > { %6017 = vrcp.f32 %v2480_v6  ;;  %v2702_v6 = vld [vmem:[%s6233_s4 + $0x58] sm:$0xff] }
 0xe8b   : > { %v2483_v7 = vpop.xlane.xlu1 %2482 }
 0xe8c   : > { %6019 = vrcp.f32 %v2483_v7  ;;  %v6075_v7 = vmov 0  }
 0xe94   : > { %v6018_v8 = vpop.eup %6017 }
 0xe95   : > { %v2486_v10 = vmul.f32 %v6018_v8, %v6014_v0  ;;  %v2693_v0 = vld [vmem:[%s6233_s4 + $0x10] sm:$0xff] }
 0xe96   : > { %v6020_v11 = vpop.eup %6019  ;;  %v5141_v4 = vcombine.high %v2693_v0, %v2701_v1  ;;  %v5140_v8 = vcombine.low %v2693_v0, %v2701_v1  ;;  %v5164_v0 = vcombine.low %v2713_v56, %v2721_v57 }
 0xe97   : > { %v2487_v12 = vmul.f32 %v6020_v11, %v6016_v3  ;;  %v2488_v14 = vpack.c.bf16 %v2486_v10, %v2486_v10  ;;  %v2694_v3 = vld [vmem:[%s6233_s4 + $0x18] sm:$0xff] }
 0xe98   : > { %v5142_v9 = vcombine.low %v2694_v3, %v2702_v6  ;;  %v5143_v10 = vcombine.high %v2694_v3, %v2702_v6  ;;  %v5861_v3 = vld [vmem:[%s6248_s23 + $0x40] sm:$0xff]  }
 0xe99   : > { %5774 = vmatmul.mubr.msk.bf16.vlgmr.msra.gmra.mrb[56].mxu1 %vm985_vm5, %v2488_v14  ;;  %v2489_v16 = vpack.c.bf16 %v2487_v12, %v2487_v12  ;;  %v5863_v6 = vld [vmem:[%s6248_s23] sm:$0xff]  }
 0xe9a   : > { %5784 = vmatpush3.bf16.msra.mxu1 %v2589_v15  ;;  %5785 = vmatprep.mubr.msk.bf16.mxu1 %vm6074_vm3, %v6073_v13 }
 0xe9b   : > { %5780 = vmatmul.mubr.msk.bf16.vlgmr.msra.gmra.mrb[60].mxu0 %vm985_vm5, %v2489_v16  ;;  %3013 = vmatprep.subr.bf16.mxu1 %v5139_v55  ;;  %v5151_v55 = vcombine.high %v2698_v50, %v2706_v51 }
 0xe9c   : > { %2971 = vmatpush1.bf16.msra.mxu0 %v5136_v53  ;;  %3002 = vmatprep.mubr.bf16.mxu0 %v6075_v7 }
 0xe9d   : > { %2972 = vmatprep.subr.bf16.mxu0 %v5153_v59  ;;  %v2722_v59 = vld [vmem:[%s6233_s4 + $0xf8] sm:$0xff] }
 0xe9e   : > { %v5166_v1 = vcombine.low %v2714_v58, %v2722_v59 }
 0xea0   : > { %2973 = vmatpush1.bf16.msra.mxu0 %v5152_v61  ;;  %v5150_v61 = vcombine.low %v2698_v50, %v2706_v51 }
 0xea1   : > { %3056 = vmatprep.subr.bf16.mxu0 %v5141_v4  ;;  %v5862_v4 = vld [vmem:[%s6248_s23 + $0xc0] sm:$0xff]  }
 0xf6c   : > { %v2530_v17 = vpop.f32.mrb[56].mxu1 }
 0xf6d   : > { %v5775_v20 = vpop.f32.mrb[57].mxu1 }
 0xf6e   : > { %v2533_v21 = vpop.f32.mrb[58].mxu1  ;;  %v2576_v23 = vpop.f32.mrb[60].mxu0 }
 0xf6f   : > { %v2582_v24 = vpack.c.bf16 %v2576_v23, %v2530_v17  ;;  %v5776_v19 = vpop.f32.mrb[59].mxu1  ;;  %v5781_v26 = vpop.f32.mrb[61].mxu0  ;;  %v5134_v21 = vld [vmem:[%s6901_s0] ss:$0 sm:$0xff] }
 0xf70   : > { %v2579_v27 = vpop.f32.mrb[62].mxu0 }
 0xf71   : > { %v5782_v28 = vpop.f32.mrb[63].mxu0  ;;  %5786 = vmatmul.mubr.msk.bf16.vlgmr.msra.gmra.mrb[60].mxu1 %vm985_vm5, %v2582_v24  ;;  %v5135_v27 = vld [vmem:[%s6902_s30] ss:$0 sm:$0xff] }
 0xf72   : > { %3014 = vmatpush1.bf16.msra.mxu1 %v5138_v54  ;;  %3045 = vmatprep.mubr.bf16.mxu1 %v6075_v7  ;;  %v5149_v54 = vcombine.high %v2697_v48, %v2705_v49 }
 0xf73   : > { %3015 = vmatprep.subr.bf16.mxu1 %v5155_v63  ;;  %v5167_v63 = vcombine.high %v2714_v58, %v2722_v59 }
 0xf76   : > { %3016 = vmatpush1.bf16.msra.mxu1 %v5154_v62  ;;  %v5165_v62 = vcombine.high %v2713_v56, %v2721_v57 }
 0xf77   : > { %3099 = vmatprep.subr.bf16.mxu1 %v5143_v10  ;;  %v5866_v10 = vld [vmem:[%s6248_s23 + $0xc8] sm:$0xff]  }
0x1044   : > { %v2625_v31 = vpop.f32.mrb[60].mxu1 }
0x1045   : > { %v2632_v13 = vadd.f32 %v2625_v31, %v6490_v18  ;;  %v5787_v33 = vpop.f32.mrb[61].mxu1  ;;  %v2709_v31 = vld [vmem:[%s6233_s4 + $0x90] sm:$0xff] }
0x1046   : > { %v2628_v34 = vpop.f32.mrb[62].mxu1  ;;  %v2718_v33 = vld [vmem:[%s6233_s4 + $0xd8] sm:$0xff] }
0x1047   : > { %v2641_v35 = vadd.f32 %v5133_v32, %v2632_v13  ;;  %v2633_v2 = vadd.f32 %v2628_v34, %v6493_v22  ;;  %v5788_v36 = vpop.f32.mrb[63].mxu1  ;;  %v2710_v13 = vld [vmem:[%s6233_s4 + $0x98] sm:$0xff] }
0x1049   : > { %v2642_v37 = vadd.f32 %v5133_v32, %v2633_v2  ;;  %v2643_v38 = vadd.f32 %v6029_v5, %v2641_v35  ;;  %v2717_v32 = vld [vmem:[%s6233_s4 + $0xd0] sm:$0xff]  ;;  %v2695_v5 = vld [vmem:[%s6233_s4 + $0x20] sm:$0xff] }
0x104a   : > { %v5157_v36 = vcombine.high %v2709_v31, %v2717_v32 }
0x104b   : > { %v2647_v39 = vsel %vm802_vm4, %v2643_v38, 0.0  ;;  %v2644_v29 = vadd.f32 %v6030_v25, %v2642_v37  ;;  %v5159_v37 = vcombine.high %v2710_v13, %v2718_v33  ;;  %v2704_v25 = vld [vmem:[%s6233_s4 + $0x68] sm:$0xff] }
0x104c   : > { %2648 = vadd.xlane.f32.xlu0 %v2647_v39  ;;  %v2696_v39 = vld [vmem:[%s6233_s4 + $0x28] sm:$0xff] }
0x104d   : > { %v2650_v30 = vsel %vm802_vm4, %v2644_v29, 0.0 }
0x104e   : > { %2651 = vadd.xlane.f32.xlu1 %v2650_v30  ;;  %v5158_v30 = vcombine.low %v2710_v13, %v2718_v33  ;;  %v5884_v13 = vld [vmem:[%s6248_s23 + $0xa8] sm:$0xff]   ;;  %v5885_v33 = vld [vmem:[%s6248_s23 + $0x70] sm:$0xff]  }
0x10d9   : > { %v2649_v18 = vpop.xlane.xlu0 %2648 }
0x10da   : > { %v2654_v40 = vmul.f32 0.03125, %v2649_v18 }
0x10db   : > { %v2652_v41 = vpop.xlane.xlu1 %2651 }
0x10dc   : > { %v2656_v22 = vsub.f32 %v2643_v38, %v2654_v40  ;;  %v2655_v42 = vmul.f32 0.03125, %v2652_v41  ;;  %v2703_v38 = vld [vmem:[%s6233_s4 + $0x60] sm:$0xff]  ;;  %v5147_v40 = vcombine.high %v2696_v39, %v2704_v25 }
0x10dd   : > { %v5145_v18 = vcombine.high %v2695_v5, %v2703_v38  ;;  %v2711_v41 = vld [vmem:[%s6233_s4 + $0xa0] sm:$0xff] }
0x10de   : > { %v2657_v43 = vsub.f32 %v2644_v29, %v2655_v42  ;;  %v2658_v44 = vmul.f32 %v2656_v22, %v2656_v22  ;;  %v5156_v29 = vcombine.low %v2709_v31, %v2717_v32  ;;  %v2712_v42 = vld [vmem:[%s6233_s4 + $0xa8] sm:$0xff] }
0x10df   : > { %v5882_v31 = vld [vmem:[%s6248_s23 + $0xe8] sm:$0xff]  }
0x10e0   : > { %v2660_v45 = vsel %vm802_vm4, %v2658_v44, 0.0  ;;  %v2659_v46 = vmul.f32 %v2657_v43, %v2657_v43  ;;  %v5144_v44 = vcombine.low %v2695_v5, %v2703_v38  ;;  %v5883_v32 = vld [vmem:[%s6248_s23 + $0x28] sm:$0xff]   ;;  %v5889_v5 = vld [vmem:[%s6248_s23 + $0x78] sm:$0xff]  }
0x10e1   : > { %2661 = vadd.xlane.f32.xlu0 %v2660_v45  ;;  %v5146_v45 = vcombine.low %v2696_v39, %v2704_v25  ;;  %v5890_v38 = vld [vmem:[%s6248_s23 + $0xf8] sm:$0xff]  }
0x10e2   : > { %v2663_v47 = vsel %vm802_vm4, %v2659_v46, 0.0  ;;  %v5891_v39 = vld [vmem:[%s6248_s23 + $0x38] sm:$0xff]  }
0x10e3   : > { %2664 = vadd.xlane.f32.xlu1 %v2663_v47  ;;  %v5892_v25 = vld [vmem:[%s6248_s23 + $0xb8] sm:$0xff]  }
0x116e   : > { %v2662_v11 = vpop.xlane.xlu0 %2661 }
0x116f   : > { %v2666_v12 = vmul.f32 0.03125, %v2662_v11  ;;  %v5868_v11 = vld [vmem:[%s6248_s23 + $0x88] sm:$0xff]  }
0x1170   : > { %v2665_v14 = vpop.xlane.xlu1 %2664 }
0x1171   : > { %v2668_v15 = vadd.f32 1e-05, %v2666_v12  ;;  %v2667_v16 = vmul.f32 0.03125, %v2665_v14  ;;  %v5869_v12 = vld [vmem:[%s6248_s23 + $0x50] sm:$0xff]  }
0x1172   : > { %v5870_v14 = vld [vmem:[%s6248_s23 + $0xd0] sm:$0xff]  }
0x1173   : > { %6021 = vrsqrt.f32 %v2668_v15  ;;  %v2669_v17 = vadd.f32 1e-05, %v2667_v16  ;;  %v5871_v15 = vld [vmem:[%s6248_s23 + $0x10] sm:$0xff]  }
0x1174   : > { %v5872_v16 = vld [vmem:[%s6248_s23 + $0x90] sm:$0xff]  }
0x1175   : > { %6023 = vrsqrt.f32 %v2669_v17  ;;  %v5873_v17 = vld [vmem:[%s6248_s23 + $0x58] sm:$0xff]  }
0x117d   : > { %v6022_v20 = vpop.eup %6021 }
0x117e   : > { %v2672_v23 = vmul.f32 %v6022_v20, %v2656_v22  ;;  %v2719_v22 = vld [vmem:[%s6233_s4 + $0xe0] sm:$0xff]  ;;  %v5874_v20 = vld [vmem:[%s6248_s23 + $0xd8] sm:$0xff]  }
0x117f   : > { %v6024_v24 = vpop.eup %6023  ;;  %v5161_v46 = vcombine.high %v2711_v41, %v2719_v22  ;;  %v5160_v52 = vcombine.low %v2711_v41, %v2719_v22  ;;  %v6645_v22 = vld [vmem:[%s6238_s5 + $0x8] sm:$0xff] }
0x1180   : > { %v2680_v19 = vmul.f32 %v5134_v21, %v2672_v23  ;;  %v2673_v26 = vmul.f32 %v6024_v24, %v2657_v43  ;;  %v2720_v43 = vld [vmem:[%s6233_s4 + $0xe8] sm:$0xff]  ;;  %v5876_v23 = vld [vmem:[%s6248_s23 + $0x98] sm:$0xff]   ;;  %v5877_v24 = vld [vmem:[%s6248_s23 + $0x60] sm:$0xff]  }
0x1181   : > { %v5163_v47 = vcombine.high %v2712_v42, %v2720_v43  ;;  %v5162_v53 = vcombine.low %v2712_v42, %v2720_v43 }
0x1182   : > { %v2681_v28 = vmul.f32 %v5134_v21, %v2673_v26  ;;  %v6561_v34 = vadd.f32 %v5135_v27, %v2680_v19  ;;  %v5875_v21 = vld [vmem:[%s6248_s23 + $0x18] sm:$0xff]   ;;  %v5878_v19 = vld [vmem:[%s6248_s23 + $0xe0] sm:$0xff]  }
0x1183   : > { %v5879_v26 = vld [vmem:[%s6248_s23 + $0x20] sm:$0xff]  }
0x1184   : > { %v6563_v35 = vadd.f32 %v5135_v27, %v2681_v28  ;;  %v5880_v27 = vld [vmem:[%s6248_s23 + $0xa0] sm:$0xff]   ;;  %v5881_v28 = vld [vmem:[%s6248_s23 + $0x68] sm:$0xff]  }
0x1186   : > { %v6567_v2 = vpack.c.bf16 %v6563_v35, %v6561_v34 }
0x1188   : > { %5168 = vmatmul.mubr.msk.bf16.vlgmr.msra.gmra.mrb[64].mxu0 %vm802_vm4, %v6567_v2  ;;  %5169 = vmatmul.mubr.msk.bf16.vlgmr.msra.gmra.mrb[64].mxu1 %vm802_vm4, %v6567_v2 }
0x1189   : > { %3057 = vmatpush1.bf16.msra.mxu0 %v5140_v8  ;;  %3100 = vmatpush1.bf16.msra.mxu1 %v5142_v9  ;;  %v5864_v8 = vld [vmem:[%s6248_s23 + $0x80] sm:$0xff]   ;;  %v5865_v9 = vld [vmem:[%s6248_s23 + $0x48] sm:$0xff]  }
0x118a   : > { %3058 = vmatprep.subr.bf16.mxu0 %v5157_v36  ;;  %3101 = vmatprep.subr.bf16.mxu1 %v5159_v37  ;;  %v5887_v36 = vld [vmem:[%s6248_s23 + $0x30] sm:$0xff]  }
0x118b   : > { %3088 = vmatprep.mubr.bf16.mxu0 %v6075_v7  ;;  %3131 = vmatprep.mubr.bf16.mxu1 %v6075_v7  ;;  %v5888_v37 = vld [vmem:[%s6248_s23 + $0xb0] sm:$0xff]  }
0x118d   : > { %3059 = vmatpush1.bf16.msra.mxu0 %v5156_v29  ;;  %3102 = vmatpush1.bf16.msra.mxu1 %v5158_v30  ;;  %v5893_v29 = vld [vmem:[%s6248_s23 + $0x140] sm:$0xff]  }
0x118e   : > { %3142 = vmatprep.subr.bf16.mxu0 %v5145_v18  ;;  %3185 = vmatprep.subr.bf16.mxu1 %v5147_v40  ;;  %v5894_v30 = vld [vmem:[%s6248_s23 + $0x1c0] sm:$0xff]   ;;  %v2727_v18 = vlaneseq }
0x1190   : > { %5170 = vmatmul.mubr.msk.bf16.vlgmr.msra.gmra.mrb[68].mxu0 %vm802_vm4, %v6567_v2  ;;  %5171 = vmatmul.mubr.msk.bf16.vlgmr.msra.gmra.mrb[68].mxu1 %vm802_vm4, %v6567_v2  ;;  %v6641_v40 = vshrl.u32 %v2727_v18, 7 }
0x1191   : > { %3143 = vmatpush1.bf16.msra.mxu0 %v5144_v44  ;;  %3186 = vmatpush1.bf16.msra.mxu1 %v5146_v45  ;;  %v2723_v45 = vld [vmem:[%s6238_s5] sm:$0xff] }
0x1192   : > { %3144 = vmatprep.subr.bf16.mxu0 %v5161_v46  ;;  %3187 = vmatprep.subr.bf16.mxu1 %v5163_v47  ;;  %v2753_v41 = vsub.s32 6, %v6641_v40  ;;  %v2729_v43 = vsub.s32 0, %v6641_v40  ;;  %v2737_v44 = vsub.s32 2, %v6641_v40  ;;  %v2733_v46 = vsub.s32 1, %v6641_v40 }
0x1193   : > { %3174 = vmatprep.mubr.bf16.mxu0 %v6075_v7  ;;  %3217 = vmatprep.mubr.bf16.mxu1 %v6075_v7  ;;  %v2741_v47 = vsub.s32 3, %v6641_v40  ;;  %v2757_v56 = vsub.s32 7, %v6641_v40 }
0x1194   : > { %v6648_v42 = vrot.slane %v6645_v22, %v2753_v41  ;;  %v2730_v48 = vrot.slane %v2723_v45, %v2729_v43  ;;  %v2738_v49 = vrot.slane %v2723_v45, %v2737_v44  ;;  %v2734_v50 = vrot.slane %v2723_v45, %v2733_v46 }
0x1195   : > { %3145 = vmatpush1.bf16.msra.mxu0 %v5160_v52  ;;  %3188 = vmatpush1.bf16.msra.mxu1 %v5162_v53  ;;  %v2742_v51 = vrot.slane %v2723_v45, %v2741_v47  ;;  %v2745_v52 = vsub.s32 4, %v6641_v40 }
0x1196   : > { %3228 = vmatprep.subr.bf16.mxu0 %v5149_v54  ;;  %3271 = vmatprep.subr.bf16.mxu1 %v5151_v55  ;;  %v2749_v55 = vsub.s32 5, %v6641_v40 }
0x1198   : > { %5172 = vmatmul.mubr.msk.bf16.vlgmr.msra.gmra.mrb[72].mxu0 %vm802_vm4, %v6567_v2  ;;  %5173 = vmatmul.mubr.msk.bf16.vlgmr.msra.gmra.mrb[72].mxu1 %vm802_vm4, %v6567_v2 }
0x1199   : > { %3229 = vmatpush1.bf16.msra.mxu0 %v5148_v60  ;;  %3272 = vmatpush1.bf16.msra.mxu1 %v5150_v61 }
0x119a   : > { %3230 = vmatprep.subr.bf16.mxu0 %v5165_v62  ;;  %3273 = vmatprep.subr.bf16.mxu1 %v5167_v63 }
0x119b   : > { %3260 = vmatprep.mubr.bf16.mxu0 %v6075_v7  ;;  %3303 = vmatprep.mubr.bf16.mxu1 %v6075_v7  ;;  %v5867_v7 = vld [vmem:[%s6248_s23 + $0x8] sm:$0xff]  }
0x119d   : > { %3231 = vmatpush1.bf16.msra.mxu0 %v5164_v0  ;;  %3274 = vmatpush1.bf16.msra.mxu1 %v5166_v1 }
0x119e   : > { %5391 = vmatprep.subr.bf16.mxu0 %v5861_v3  ;;  %5413 = vmatprep.subr.bf16.mxu1 %v5862_v4 }
0x11a0   : > { %5174 = vmatmul.mubr.msk.bf16.vlgmr.msra.gmra.mrb[76].mxu0 %vm802_vm4, %v6567_v2  ;;  %5175 = vmatmul.mubr.msk.bf16.vlgmr.msra.gmra.mrb[76].mxu1 %vm802_vm4, %v6567_v2  ;;  %v5886_v2 = vld [vmem:[%s6248_s23 + $0xf0] sm:$0xff]  }
0x11a1   : > { %5392 = vmatpush3.bf16.msra.mxu0 %v5863_v6  ;;  %5414 = vmatpush3.bf16.msra.mxu1 %v5864_v8  ;;  %v2746_v8 = vrot.slane %v2723_v45, %v2745_v52 }
0x11a2   : > { %5393 = vmatprep.subr.bf16.mxu0 %v5865_v9  ;;  %5415 = vmatprep.subr.bf16.mxu1 %v5866_v10  ;;  %v2754_v9 = vrot.slane %v2723_v45, %v2753_v41 }
0x11a5   : > { %5394 = vmatpush3.bf16.msra.mxu0 %v5867_v7  ;;  %5416 = vmatpush3.bf16.msra.mxu1 %v5868_v11  ;;  %v2750_v11 = vrot.slane %v2723_v45, %v2749_v55 }
0x11a6   : > { %5395 = vmatprep.subr.bf16.mxu0 %v5869_v12  ;;  %5417 = vmatprep.subr.bf16.mxu1 %v5870_v14  ;;  %v2758_v12 = vrot.slane %v2723_v45, %v2757_v56  ;;  %v2770_v45 = vrot.slane %v6645_v22, %v2737_v44  ;;  %v2774_v44 = vrot.slane %v6645_v22, %v2741_v47 }
0x11a9   : > { %5396 = vmatpush3.bf16.msra.mxu0 %v5871_v15  ;;  %5418 = vmatpush3.bf16.msra.mxu1 %v5872_v16 }
0x11aa   : > { %5397 = vmatprep.subr.bf16.mxu0 %v5873_v17  ;;  %5419 = vmatprep.subr.bf16.mxu1 %v5874_v20 }
0x11ad   : > { %5398 = vmatpush3.bf16.msra.mxu0 %v5875_v21  ;;  %5420 = vmatpush3.bf16.msra.mxu1 %v5876_v23 }
0x11ae   : > { %5399 = vmatprep.subr.bf16.mxu0 %v5877_v24  ;;  %5421 = vmatprep.subr.bf16.mxu1 %v5878_v19 }
0x11b1   : > { %5400 = vmatpush3.bf16.msra.mxu0 %v5879_v26  ;;  %5422 = vmatpush3.bf16.msra.mxu1 %v5880_v27 }
0x11b2   : > { %5401 = vmatprep.subr.bf16.mxu0 %v5881_v28  ;;  %5423 = vmatprep.subr.bf16.mxu1 %v5882_v31 }
0x11b5   : > { %5402 = vmatpush3.bf16.msra.mxu0 %v5883_v32  ;;  %5424 = vmatpush3.bf16.msra.mxu1 %v5884_v13  ;;  %v5895_v13 = vld [vmem:[%s6248_s23 + $0x100] sm:$0xff]  }
0x11b6   : > { %5403 = vmatprep.subr.bf16.mxu0 %v5885_v33  ;;  %5425 = vmatprep.subr.bf16.mxu1 %v5886_v2  ;;  %v5896_v33 = vld [vmem:[%s6248_s23 + $0x180] sm:$0xff]  }
0x11b9   : > { %5404 = vmatpush3.bf16.msra.mxu0 %v5887_v36  ;;  %5426 = vmatpush3.bf16.msra.mxu1 %v5888_v37 }
0x11ba   : > { %5405 = vmatprep.subr.bf16.mxu0 %v5889_v5  ;;  %5427 = vmatprep.subr.bf16.mxu1 %v5890_v38  ;;  %v5897_v38 = vld [vmem:[%s6248_s23 + $0x148] sm:$0xff]  }
0x11bd   : > { %5406 = vmatpush3.bf16.msra.mxu0 %v5891_v39  ;;  %5428 = vmatpush3.bf16.msra.mxu1 %v5892_v25  ;;  %v5898_v39 = vld [vmem:[%s6248_s23 + $0x1c8] sm:$0xff]   ;;  %v2762_v25 = vrot.slane %v6645_v22, %v2729_v43  ;;  %v2766_v43 = vrot.slane %v6645_v22, %v2733_v46  ;;  %v5902_v46 = vld [vmem:[%s6248_s23 + $0x1d0] sm:$0xff]  }
0x11be   : > { %5435 = vmatprep.subr.bf16.mxu0 %v5893_v29  ;;  %5457 = vmatprep.subr.bf16.mxu1 %v5894_v30 }
0x125b   : > { %v3004_v53 = vpop.f32.mrb[64].mxu0  ;;  %v3047_v54 = vpop.f32.mrb[64].mxu1 }
0x125c   : > { %v3005_v57 = vadd.f32 %v3004_v53, %v2730_v48  ;;  %v3048_v58 = vadd.f32 %v3047_v54, %v2738_v49  ;;  %v3006_v59 = vpop.f32.mrb[65].mxu0  ;;  %v3049_v60 = vpop.f32.mrb[65].mxu1 }
0x125d   : > { %v3007_v61 = vadd.f32 %v3006_v59, %v2734_v50  ;;  %v3050_v62 = vadd.f32 %v3049_v60, %v2742_v51  ;;  %v3008_v63 = vpop.f32.mrb[66].mxu0  ;;  %v3051_v0 = vpop.f32.mrb[66].mxu1 }
0x125e   : > { %v3009_v1 = vadd.f32 %v3008_v63, %v2730_v48  ;;  %v3052_v3 = vadd.f32 %v3051_v0, %v2738_v49  ;;  %v3010_v4 = vpop.f32.mrb[67].mxu0  ;;  %v3053_v6 = vpop.f32.mrb[67].mxu1  ;;  %v3314_v14 = vmax.f32 %v3005_v57, 0.0  ;;  %v3316_v15 = vmax.f32 %v3048_v58, 0.0  ;;  %v5899_v57 = vld [vmem:[%s6248_s23 + $0x108] sm:$0xff]   ;;  %v5901_v63 = vld [vmem:[%s6248_s23 + $0x150] sm:$0xff]  }
0x125f   : > { %v3011_v10 = vadd.f32 %v3010_v4, %v2734_v50  ;;  %v3054_v7 = vadd.f32 %v3053_v6, %v2742_v51  ;;  %v3315_v20 = vmax.f32 %v3007_v61, 0.0  ;;  %v3317_v21 = vmax.f32 %v3050_v62, 0.0  ;;  %v5900_v58 = vld [vmem:[%s6248_s23 + $0x188] sm:$0xff]  }
0x1260   : > { %v3330_v16 = vmax.f32 %v3009_v1, 0.0  ;;  %v3332_v17 = vmax.f32 %v3052_v3, 0.0 }
0x1261   : > { %v3331_v23 = vmax.f32 %v3011_v10, 0.0  ;;  %v3333_v24 = vmax.f32 %v3054_v7, 0.0 }
0x1262   : > { %v3346_v19 = vpack.c.bf16 %v3330_v16, %v3314_v14  ;;  %v3348_v26 = vpack.c.bf16 %v3332_v17, %v3316_v15 }
0x1263   : > { %v3347_v27 = vpack.c.bf16 %v3331_v23, %v3315_v20  ;;  %v3349_v28 = vpack.c.bf16 %v3333_v24, %v3317_v21  ;;  %v3090_v31 = vpop.f32.mrb[68].mxu0  ;;  %v3133_v32 = vpop.f32.mrb[68].mxu1  ;;  %v5905_v20 = vld [vmem:[%s6248_s23 + $0x158] sm:$0xff]  }
0x1264   : > { %v3091_v2 = vadd.f32 %v3090_v31, %v2746_v8  ;;  %v3134_v36 = vadd.f32 %v3133_v32, %v2754_v9  ;;  %v3092_v37 = vpop.f32.mrb[69].mxu0  ;;  %v3135_v5 = vpop.f32.mrb[69].mxu1  ;;  %v5906_v21 = vld [vmem:[%s6248_s23 + $0x1d8] sm:$0xff]  }
0x1265   : > { %v3093_v29 = vadd.f32 %v3092_v37, %v2750_v11  ;;  %v3136_v30 = vadd.f32 %v3135_v5, %v2758_v12  ;;  %v3094_v18 = vpop.f32.mrb[70].mxu0  ;;  %v3137_v41 = vpop.f32.mrb[70].mxu1  ;;  %4425 = vmatprep.mubr.bf16.mxu0 %v3347_v27  ;;  %4466 = vmatprep.mubr.bf16.mxu1 %v3349_v28  ;;  %v5907_v37 = vld [vmem:[%s6248_s23 + $0x118] sm:$0xff]  }
0x1266   : > { %v3095_v48 = vadd.f32 %v3094_v18, %v2746_v8  ;;  %v3138_v49 = vadd.f32 %v3137_v41, %v2754_v9  ;;  %v3096_v50 = vpop.f32.mrb[71].mxu0  ;;  %v3139_v51 = vpop.f32.mrb[71].mxu1  ;;  %4426 = vmatmul.mubr.bf16.vlgmr.msra.gmra.mrb[80].mxu0 %v3346_v19  ;;  %4467 = vmatmul.mubr.bf16.vlgmr.msra.gmra.mrb[80].mxu1 %v3348_v26  ;;  %v3318_v59 = vmax.f32 %v3091_v2, 0.0  ;;  %v3320_v60 = vmax.f32 %v3134_v36, 0.0  ;;  %v5908_v5 = vld [vmem:[%s6248_s23 + $0x198] sm:$0xff]  }
0x1267   : > { %v3097_v53 = vadd.f32 %v3096_v50, %v2750_v11  ;;  %v3140_v54 = vadd.f32 %v3139_v51, %v2758_v12  ;;  %5436 = vmatpush3.bf16.msra.mxu0 %v5895_v13  ;;  %5458 = vmatpush3.bf16.msra.mxu1 %v5896_v33  ;;  %v3319_v0 = vmax.f32 %v3093_v29, 0.0  ;;  %v3321_v1 = vmax.f32 %v3136_v30, 0.0  ;;  %v5903_v11 = vld [vmem:[%s6248_s23 + $0x110] sm:$0xff]  }
0x1268   : > { %v3334_v61 = vmax.f32 %v3095_v48, 0.0  ;;  %v3336_v62 = vmax.f32 %v3138_v49, 0.0  ;;  %5437 = vmatprep.subr.bf16.mxu0 %v5897_v38  ;;  %5459 = vmatprep.subr.bf16.mxu1 %v5898_v39  ;;  %v5904_v12 = vld [vmem:[%s6248_s23 + $0x190] sm:$0xff]   ;;  %v2778_v13 = vrot.slane %v6645_v22, %v2745_v52  ;;  %v2782_v33 = vrot.slane %v6645_v22, %v2749_v55  ;;  %v5909_v52 = vld [vmem:[%s6248_s23 + $0x160] sm:$0xff]  }
0x1269   : > { %v3335_v3 = vmax.f32 %v3097_v53, 0.0  ;;  %v3337_v4 = vmax.f32 %v3140_v54, 0.0  ;;  %v2790_v38 = vrot.slane %v6645_v22, %v2757_v56  ;;  %v5910_v55 = vld [vmem:[%s6248_s23 + $0x1e0] sm:$0xff]  }
0x126a   : > { %v6684_v6 = vpack.c.bf16 %v3334_v61, %v3318_v59  ;;  %v6686_v8 = vpack.c.bf16 %v3336_v62, %v3320_v60  ;;  %v5912_v53 = vld [vmem:[%s6248_s23 + $0x1a0] sm:$0xff]   ;;  %v5913_v59 = vld [vmem:[%s6248_s23 + $0x168] sm:$0xff]  }
0x126b   : > { %v3351_v47 = vpack.c.bf16 %v3335_v3, %v3319_v0  ;;  %v3353_v9 = vpack.c.bf16 %v3337_v4, %v3321_v1  ;;  %5438 = vmatpush3.bf16.msra.mxu0 %v5899_v57  ;;  %5460 = vmatpush3.bf16.msra.mxu1 %v5900_v58  ;;  %v3176_v10 = vpop.f32.mrb[72].mxu0  ;;  %v3219_v7 = vpop.f32.mrb[72].mxu1  ;;  %v5914_v60 = vld [vmem:[%s6248_s23 + $0x1e8] sm:$0xff]  }
0x126c   : > { %v3177_v14 = vadd.f32 %v3176_v10, %v2762_v25  ;;  %v3220_v15 = vadd.f32 %v3219_v7, %v2770_v45  ;;  %v3178_v16 = vpop.f32.mrb[73].mxu0  ;;  %v3221_v17 = vpop.f32.mrb[73].mxu1  ;;  %5439 = vmatprep.subr.bf16.mxu0 %v5901_v63  ;;  %5461 = vmatprep.subr.bf16.mxu1 %v5902_v46  ;;  %v5915_v10 = vld [vmem:[%s6248_s23 + $0x128] sm:$0xff]  }
0x126d   : > { %v3179_v23 = vadd.f32 %v3178_v16, %v2766_v43  ;;  %v3222_v24 = vadd.f32 %v3221_v17, %v2774_v44  ;;  %v3180_v19 = vpop.f32.mrb[74].mxu0  ;;  %v3223_v26 = vpop.f32.mrb[74].mxu1  ;;  %4507 = vmatprep.mubr.bf16.mxu0 %v3351_v47  ;;  %4548 = vmatprep.mubr.bf16.mxu1 %v3353_v9  ;;  %v5916_v7 = vld [vmem:[%s6248_s23 + $0x1a8] sm:$0xff]   ;;  %v5917_v16 = vld [vmem:[%s6248_s23 + $0x170] sm:$0xff]  }
0x126e   : > { %v3181_v27 = vadd.f32 %v3180_v19, %v2762_v25  ;;  %v3224_v28 = vadd.f32 %v3223_v26, %v2770_v45  ;;  %v3182_v31 = vpop.f32.mrb[75].mxu0  ;;  %v3225_v32 = vpop.f32.mrb[75].mxu1  ;;  %v3322_v39 = vmax.f32 %v3177_v14, 0.0  ;;  %v3324_v25 = vmax.f32 %v3220_v15, 0.0 }
0x126f   : > { %v3183_v2 = vadd.f32 %v3182_v31, %v2766_v43  ;;  %v3226_v36 = vadd.f32 %v3225_v32, %v2774_v44  ;;  %5440 = vmatpush3.bf16.msra.mxu0 %v5903_v11  ;;  %5462 = vmatpush3.bf16.msra.mxu1 %v5904_v12  ;;  %v3323_v18 = vmax.f32 %v3179_v23, 0.0  ;;  %v3325_v41 = vmax.f32 %v3222_v24, 0.0  ;;  %v5911_v43 = vld [vmem:[%s6248_s23 + $0x120] sm:$0xff]   ;;  %v5920_v31 = vld [vmem:[%s6248_s23 + $0x1b0] sm:$0xff]   ;;  %v5921_v32 = vld [vmem:[%s6248_s23 + $0x178] sm:$0xff]  }
0x1270   : > { %v3338_v29 = vmax.f32 %v3181_v27, 0.0  ;;  %v3340_v30 = vmax.f32 %v3224_v28, 0.0  ;;  %5441 = vmatprep.subr.bf16.mxu0 %v5905_v20  ;;  %5463 = vmatprep.subr.bf16.mxu1 %v5906_v21  ;;  %v5919_v28 = vld [vmem:[%s6248_s23 + $0x130] sm:$0xff]  }
0x1271   : > { %v3339_v45 = vmax.f32 %v3183_v2, 0.0  ;;  %v3341_v48 = vmax.f32 %v3226_v36, 0.0  ;;  %v5924_v2 = vld [vmem:[%s6248_s23 + $0x1b8] sm:$0xff]   ;;  %v5925_v36 = vld [vmem:[%s6248_s23 + $0x240] sm:$0xff]  }
0x1272   : > { %v6705_v49 = vpack.c.bf16 %v3338_v29, %v3322_v39  ;;  %v6707_v40 = vpack.c.bf16 %v3340_v30, %v3324_v25  ;;  %v5929_v39 = vld [vmem:[%s6248_s23 + $0x248] sm:$0xff]  }
0x1273   : > { %v6709_v22 = vpack.c.bf16 %v3339_v45, %v3323_v18  ;;  %v6711_v56 = vpack.c.bf16 %v3341_v48, %v3325_v41  ;;  %5442 = vmatpush3.bf16.msra.mxu0 %v5907_v37  ;;  %5464 = vmatpush3.bf16.msra.mxu1 %v5908_v5  ;;  %v3262_v50 = vpop.f32.mrb[76].mxu0  ;;  %v3305_v51 = vpop.f32.mrb[76].mxu1  ;;  %v5926_v37 = vld [vmem:[%s6248_s23 + $0x2c0] sm:$0xff]   ;;  %v5930_v25 = vld [vmem:[%s6248_s23 + $0x2c8] sm:$0xff]   ;;  %v5937_v18 = vld [vmem:[%s6248_s23 + $0x258] sm:$0xff]  }
0x1274   : > { %v3263_v54 = vadd.f32 %v3262_v50, %v2778_v13  ;;  %v3306_v57 = vadd.f32 %v3305_v51, %v6648_v42  ;;  %v3264_v58 = vpop.f32.mrb[77].mxu0  ;;  %v3307_v44 = vpop.f32.mrb[77].mxu1  ;;  %5443 = vmatprep.subr.bf16.mxu0 %v5909_v52  ;;  %5465 = vmatprep.subr.bf16.mxu1 %v5910_v55  ;;  %v5927_v5 = vld [vmem:[%s6248_s23 + $0x200] sm:$0xff]   ;;  %v5931_v29 = vld [vmem:[%s6248_s23 + $0x208] sm:$0xff]   ;;  %v5933_v52 = vld [vmem:[%s6248_s23 + $0x250] sm:$0xff]  }
0x1275   : > { %v3265_v61 = vadd.f32 %v3264_v58, %v2782_v33  ;;  %v3308_v62 = vadd.f32 %v3307_v44, %v2790_v38  ;;  %v3266_v63 = vpop.f32.mrb[78].mxu0  ;;  %v3309_v46 = vpop.f32.mrb[78].mxu1  ;;  %v5932_v30 = vld [vmem:[%s6248_s23 + $0x288] sm:$0xff]   ;;  %v5936_v55 = vld [vmem:[%s6248_s23 + $0x290] sm:$0xff]   ;;  %v5938_v41 = vld [vmem:[%s6248_s23 + $0x2d8] sm:$0xff]  }
0x1276   : > { %v3267_v0 = vadd.f32 %v3266_v63, %v2778_v13  ;;  %v3310_v1 = vadd.f32 %v3309_v46, %v6648_v42  ;;  %v3268_v3 = vpop.f32.mrb[79].mxu0  ;;  %v3311_v4 = vpop.f32.mrb[79].mxu1  ;;  %v3326_v11 = vmax.f32 %v3263_v54, 0.0  ;;  %v3328_v12 = vmax.f32 %v3306_v57, 0.0  ;;  %v5918_v42 = vld [vmem:[%s6248_s23 + $0x1f0] sm:$0xff]   ;;  %v5922_v13 = vld [vmem:[%s6248_s23 + $0x1f8] sm:$0xff]  }
0x1277   : > { %v3269_v47 = vadd.f32 %v3268_v3, %v2782_v33  ;;  %v3312_v9 = vadd.f32 %v3311_v4, %v2790_v38  ;;  %5444 = vmatpush3.bf16.msra.mxu0 %v5911_v43  ;;  %5466 = vmatpush3.bf16.msra.mxu1 %v5912_v53  ;;  %v3327_v17 = vmax.f32 %v3265_v61, 0.0  ;;  %v3329_v20 = vmax.f32 %v3308_v62, 0.0  ;;  %v5923_v33 = vld [vmem:[%s6248_s23 + $0x138] sm:$0xff]   ;;  %v5928_v38 = vld [vmem:[%s6248_s23 + $0x280] sm:$0xff]   ;;  %v5945_v43 = vld [vmem:[%s6248_s23 + $0x268] sm:$0xff]  }
0x1278   : > { %v3342_v14 = vmax.f32 %v3267_v0, 0.0  ;;  %v3344_v15 = vmax.f32 %v3310_v1, 0.0  ;;  %5445 = vmatprep.subr.bf16.mxu0 %v5913_v59  ;;  %5467 = vmatprep.subr.bf16.mxu1 %v5914_v60  ;;  %v5939_v45 = vld [vmem:[%s6248_s23 + $0x218] sm:$0xff]   ;;  %v5943_v50 = vld [vmem:[%s6248_s23 + $0x220] sm:$0xff]   ;;  %v5946_v53 = vld [vmem:[%s6248_s23 + $0x2e8] sm:$0xff]  }
0x1279   : > { %v3343_v21 = vmax.f32 %v3269_v47, 0.0  ;;  %v3345_v23 = vmax.f32 %v3312_v9, 0.0  ;;  %v5940_v48 = vld [vmem:[%s6248_s23 + $0x298] sm:$0xff]   ;;  %v5944_v51 = vld [vmem:[%s6248_s23 + $0x2a0] sm:$0xff]   ;;  %v5947_v54 = vld [vmem:[%s6248_s23 + $0x228] sm:$0xff]  }
0x127a   : > { %v6723_v24 = vpack.c.bf16 %v3342_v14, %v3326_v11  ;;  %v6725_v19 = vpack.c.bf16 %v3344_v15, %v3328_v12  ;;  %v5948_v57 = vld [vmem:[%s6248_s23 + $0x2a8] sm:$0xff]   ;;  %v5949_v58 = vld [vmem:[%s6248_s23 + $0x270] sm:$0xff]   ;;  %v5953_v61 = vld [vmem:[%s6248_s23 + $0x278] sm:$0xff]  }
0x127b   : > { %v6727_v26 = vpack.c.bf16 %v3343_v21, %v3327_v17  ;;  %v6729_v27 = vpack.c.bf16 %v3345_v23, %v3329_v20  ;;  %5446 = vmatpush3.bf16.msra.mxu0 %v5915_v10  ;;  %5468 = vmatpush3.bf16.msra.mxu1 %v5916_v7  ;;  %v5950_v44 = vld [vmem:[%s6248_s23 + $0x2f0] sm:$0xff]   ;;  %v5954_v62 = vld [vmem:[%s6248_s23 + $0x2f8] sm:$0xff]   ;;  %v5957_v0 = vld [vmem:[%s6248_s23 + $0x340] sm:$0xff]  }
0x127c   : > { %5447 = vmatprep.subr.bf16.mxu0 %v5917_v16  ;;  %5469 = vmatprep.subr.bf16.mxu1 %v5918_v42  ;;  %v5951_v59 = vld [vmem:[%s6248_s23 + $0x230] sm:$0xff]   ;;  %v5955_v63 = vld [vmem:[%s6248_s23 + $0x238] sm:$0xff]   ;;  %v5958_v1 = vld [vmem:[%s6248_s23 + $0x3c0] sm:$0xff]  }
0x127d   : > { %v5952_v60 = vld [vmem:[%s6248_s23 + $0x2b0] sm:$0xff]   ;;  %v5956_v46 = vld [vmem:[%s6248_s23 + $0x2b8] sm:$0xff]   ;;  %v5959_v3 = vld [vmem:[%s6248_s23 + $0x300] sm:$0xff]  }
0x127e   : > { %v5960_v4 = vld [vmem:[%s6248_s23 + $0x380] sm:$0xff]   ;;  %v5961_v47 = vld [vmem:[%s6248_s23 + $0x348] sm:$0xff]   ;;  %v5965_v11 = vld [vmem:[%s6248_s23 + $0x350] sm:$0xff]  }
0x127f   : > { %5448 = vmatpush3.bf16.msra.mxu0 %v5919_v28  ;;  %5470 = vmatpush3.bf16.msra.mxu1 %v5920_v31  ;;  %v5962_v9 = vld [vmem:[%s6248_s23 + $0x3c8] sm:$0xff]   ;;  %v5968_v12 = vld [vmem:[%s6248_s23 + $0x390] sm:$0xff]   ;;  %v5969_v14 = vld [vmem:[%s6248_s23 + $0x358] sm:$0xff]  }
0x1280   : > { %5449 = vmatprep.subr.bf16.mxu0 %v5921_v32  ;;  %5471 = vmatprep.subr.bf16.mxu1 %v5922_v13  ;;  %v5963_v10 = vld [vmem:[%s6248_s23 + $0x308] sm:$0xff]   ;;  %v5970_v15 = vld [vmem:[%s6248_s23 + $0x3d8] sm:$0xff]   ;;  %v5973_v17 = vld [vmem:[%s6248_s23 + $0x360] sm:$0xff]  }
0x1281   : > { %v5964_v7 = vld [vmem:[%s6248_s23 + $0x388] sm:$0xff]   ;;  %v5971_v16 = vld [vmem:[%s6248_s23 + $0x318] sm:$0xff]   ;;  %v5974_v20 = vld [vmem:[%s6248_s23 + $0x3e0] sm:$0xff]  }
0x1282   : > { %v5972_v42 = vld [vmem:[%s6248_s23 + $0x398] sm:$0xff]   ;;  %v5975_v21 = vld [vmem:[%s6248_s23 + $0x320] sm:$0xff]   ;;  %v5979_v28 = vld [vmem:[%s6248_s23 + $0x328] sm:$0xff]  }
0x1283   : > { %5450 = vmatpush3.bf16.msra.mxu0 %v5923_v33  ;;  %5472 = vmatpush3.bf16.msra.mxu1 %v5924_v2  ;;  %v5976_v23 = vld [vmem:[%s6248_s23 + $0x3a0] sm:$0xff]   ;;  %v5980_v31 = vld [vmem:[%s6248_s23 + $0x3a8] sm:$0xff]   ;;  %v5981_v32 = vld [vmem:[%s6248_s23 + $0x370] sm:$0xff]  }
0x1284   : > { %5479 = vmatprep.subr.bf16.mxu0 %v5925_v36  ;;  %5501 = vmatprep.subr.bf16.mxu1 %v5926_v37  ;;  %v5982_v13 = vld [vmem:[%s6248_s23 + $0x3f0] sm:$0xff]   ;;  %v5985_v36 = vld [vmem:[%s6248_s23 + $0x378] sm:$0xff]  }
0x1285   : > { %v5983_v33 = vld [vmem:[%s6248_s23 + $0x330] sm:$0xff]   ;;  %v5986_v37 = vld [vmem:[%s6248_s23 + $0x3f8] sm:$0xff]  }
0x1286   : > { %4508 = vmatmul.mubr.bf16.vlgmr.msra.gmra.mrb[84].mxu0 %v6684_v6  ;;  %4549 = vmatmul.mubr.bf16.vlgmr.msra.gmra.mrb[84].mxu1 %v6686_v8  ;;  %v5934_v6 = vld [vmem:[%s6248_s23 + $0x2d0] sm:$0xff]  }
0x1287   : > { %5480 = vmatpush3.bf16.msra.mxu0 %v5927_v5  ;;  %4589 = vmatprep.mubr.bf16.mxu0 %v6709_v22  ;;  %v5935_v8 = vld [vmem:[%s6248_s23 + $0x210] sm:$0xff]   ;;  %v5941_v22 = vld [vmem:[%s6248_s23 + $0x260] sm:$0xff]   ;;  %v5987_v5 = vld [vmem:[%s6248_s23 + $0x338] sm:$0xff]  }
0x1288   : > { %5502 = vmatpush3.bf16.msra.mxu1 %v5928_v38  ;;  %4630 = vmatprep.mubr.bf16.mxu1 %v6711_v56  ;;  %v5942_v56 = vld [vmem:[%s6248_s23 + $0x2e0] sm:$0xff]   ;;  %v5984_v2 = vld [vmem:[%s6248_s23 + $0x3b0] sm:$0xff]   ;;  %v5988_v38 = vld [vmem:[%s6248_s23 + $0x3b8] sm:$0xff]  }
0x1289   : > { %5481 = vmatprep.subr.bf16.mxu0 %v5929_v39  ;;  %5503 = vmatprep.subr.bf16.mxu1 %v5930_v25 }
0x128b   : > { %5482 = vmatpush3.bf16.msra.mxu0 %v5931_v29  ;;  %v5176_v29 = vld [vmem:[%s6903_s28] ss:$0 sm:$0xff] }
0x128c   : > { %5504 = vmatpush3.bf16.msra.mxu1 %v5932_v30  ;;  %5483 = vmatprep.subr.bf16.mxu0 %v5933_v52 }
0x128d   : > { %5505 = vmatprep.subr.bf16.mxu1 %v5934_v6 }
0x128f   : > { %5484 = vmatpush3.bf16.msra.mxu0 %v5935_v8 }
0x1290   : > { %5506 = vmatpush3.bf16.msra.mxu1 %v5936_v55  ;;  %5485 = vmatprep.subr.bf16.mxu0 %v5937_v18 }
0x1291   : > { %5507 = vmatprep.subr.bf16.mxu1 %v5938_v41 }
0x1293   : > { %5486 = vmatpush3.bf16.msra.mxu0 %v5939_v45 }
0x1294   : > { %5508 = vmatpush3.bf16.msra.mxu1 %v5940_v48  ;;  %5487 = vmatprep.subr.bf16.mxu0 %v5941_v22 }
0x1295   : > { %5509 = vmatprep.subr.bf16.mxu1 %v5942_v56 }
0x1297   : > { %5488 = vmatpush3.bf16.msra.mxu0 %v5943_v50 }
0x1298   : > { %5510 = vmatpush3.bf16.msra.mxu1 %v5944_v51  ;;  %5489 = vmatprep.subr.bf16.mxu0 %v5945_v43 }
0x1299   : > { %5511 = vmatprep.subr.bf16.mxu1 %v5946_v53 }
0x129b   : > { %5490 = vmatpush3.bf16.msra.mxu0 %v5947_v54 }
0x129c   : > { %5512 = vmatpush3.bf16.msra.mxu1 %v5948_v57  ;;  %5491 = vmatprep.subr.bf16.mxu0 %v5949_v58 }
0x129d   : > { %5513 = vmatprep.subr.bf16.mxu1 %v5950_v44 }
0x129f   : > { %5492 = vmatpush3.bf16.msra.mxu0 %v5951_v59 }
0x12a0   : > { %5514 = vmatpush3.bf16.msra.mxu1 %v5952_v60  ;;  %5493 = vmatprep.subr.bf16.mxu0 %v5953_v61 }
0x12a1   : > { %5515 = vmatprep.subr.bf16.mxu1 %v5954_v62 }
0x12a3   : > { %5494 = vmatpush3.bf16.msra.mxu0 %v5955_v63 }
0x12a4   : > { %5516 = vmatpush3.bf16.msra.mxu1 %v5956_v46  ;;  %5523 = vmatprep.subr.bf16.mxu0 %v5957_v0 }
0x12a5   : > { %5545 = vmatprep.subr.bf16.mxu1 %v5958_v1 }
0x12a6   : > { %4590 = vmatmul.mubr.bf16.vlgmr.msra.gmra.mrb[88].mxu0 %v6705_v49  ;;  %v5966_v49 = vld [vmem:[%s6248_s23 + $0x3d0] sm:$0xff]  }
0x12a7   : > { %4631 = vmatmul.mubr.bf16.vlgmr.msra.gmra.mrb[88].mxu1 %v6707_v40  ;;  %5524 = vmatpush3.bf16.msra.mxu0 %v5959_v3  ;;  %v5967_v40 = vld [vmem:[%s6248_s23 + $0x310] sm:$0xff]  }
0x12a8   : > { %4671 = vmatprep.mubr.bf16.mxu0 %v6727_v26  ;;  %5546 = vmatpush3.bf16.msra.mxu1 %v5960_v4  ;;  %v5977_v26 = vld [vmem:[%s6248_s23 + $0x368] sm:$0xff]  }
0x12a9   : > { %4712 = vmatprep.mubr.bf16.mxu1 %v6729_v27  ;;  %5525 = vmatprep.subr.bf16.mxu0 %v5961_v47  ;;  %v5978_v27 = vld [vmem:[%s6248_s23 + $0x3e8] sm:$0xff]  }
0x12aa   : > { %5547 = vmatprep.subr.bf16.mxu1 %v5962_v9 }
0x12ab   : > { %5526 = vmatpush3.bf16.msra.mxu0 %v5963_v10 }
0x12ac   : > { %5548 = vmatpush3.bf16.msra.mxu1 %v5964_v7  ;;  %5527 = vmatprep.subr.bf16.mxu0 %v5965_v11 }
0x12ad   : > { %5549 = vmatprep.subr.bf16.mxu1 %v5966_v49 }
0x12af   : > { %5528 = vmatpush3.bf16.msra.mxu0 %v5967_v40 }
0x12b0   : > { %5550 = vmatpush3.bf16.msra.mxu1 %v5968_v12  ;;  %5529 = vmatprep.subr.bf16.mxu0 %v5969_v14 }
0x12b1   : > { %5551 = vmatprep.subr.bf16.mxu1 %v5970_v15 }
0x12b3   : > { %5530 = vmatpush3.bf16.msra.mxu0 %v5971_v16 }
0x12b4   : > { %5552 = vmatpush3.bf16.msra.mxu1 %v5972_v42  ;;  %5531 = vmatprep.subr.bf16.mxu0 %v5973_v17 }
0x12b5   : > { %5553 = vmatprep.subr.bf16.mxu1 %v5974_v20 }
0x12b7   : > { %5532 = vmatpush3.bf16.msra.mxu0 %v5975_v21 }
0x12b8   : > { %5554 = vmatpush3.bf16.msra.mxu1 %v5976_v23  ;;  %5533 = vmatprep.subr.bf16.mxu0 %v5977_v26 }
0x12b9   : > { %5555 = vmatprep.subr.bf16.mxu1 %v5978_v27 }
0x12bb   : > { %5534 = vmatpush3.bf16.msra.mxu0 %v5979_v28 }
0x12bc   : > { %5556 = vmatpush3.bf16.msra.mxu1 %v5980_v31  ;;  %5535 = vmatprep.subr.bf16.mxu0 %v5981_v32 }
0x12bd   : > { %5557 = vmatprep.subr.bf16.mxu1 %v5982_v13 }
0x12bf   : > { %5536 = vmatpush3.bf16.msra.mxu0 %v5983_v33 }
0x12c0   : > { %5558 = vmatpush3.bf16.msra.mxu1 %v5984_v2  ;;  %5537 = vmatprep.subr.bf16.mxu0 %v5985_v36 }
0x12c1   : > { %5559 = vmatprep.subr.bf16.mxu1 %v5986_v37 }
0x12c3   : > { %5538 = vmatpush3.bf16.msra.mxu0 %v5987_v5 }
0x12c4   : > { %5560 = vmatpush3.bf16.msra.mxu1 %v5988_v38 }
0x12c6   : > { %4672 = vmatmul.mubr.bf16.vlgmr.msra.gmra.mrb[92].mxu0 %v6723_v24 }
0x12c7   : > { %4713 = vmatmul.mubr.bf16.vlgmr.msra.gmra.mrb[92].mxu1 %v6725_v19 }
0x1339   : > { %v5407_v39 = vpop.f32.mrb[80].mxu0  ;;  %v5429_v25 = vpop.f32.mrb[80].mxu1 }
0x133a   : > { %v5408_v30 = vpop.f32.mrb[81].mxu0  ;;  %v5430_v52 = vpop.f32.mrb[81].mxu1 }
0x133b   : > { %v5409_v6 = vadd.f32 %v5408_v30, %v5407_v39  ;;  %v5431_v8 = vadd.f32 %v5430_v52, %v5429_v25  ;;  %v5410_v55 = vpop.f32.mrb[82].mxu0  ;;  %v5432_v18 = vpop.f32.mrb[82].mxu1 }
0x133c   : > { %v5411_v41 = vpop.f32.mrb[83].mxu0  ;;  %v5433_v45 = vpop.f32.mrb[83].mxu1 }
0x133d   : > { %v4428_v48 = vadd.f32 %v5409_v6, %v5176_v29  ;;  %v5412_v22 = vadd.f32 %v5411_v41, %v5410_v55  ;;  %v5434_v24 = vadd.f32 %v5433_v45, %v5432_v18 }
0x133f   : > { %v4469_v56 = vadd.f32 %v5431_v8, %v4428_v48  ;;  %v4431_v19 = vadd.f32 %v5412_v22, %v5176_v29 }
0x1341   : > { %v4472_v50 = vadd.f32 %v5434_v24, %v4431_v19 }
0x1359   : > { %v5451_v51 = vpop.f32.mrb[84].mxu0  ;;  %v5473_v43 = vpop.f32.mrb[84].mxu1 }
0x135a   : > { %v5452_v53 = vpop.f32.mrb[85].mxu0  ;;  %v5474_v54 = vpop.f32.mrb[85].mxu1 }
0x135b   : > { %v5453_v57 = vadd.f32 %v5452_v53, %v5451_v51  ;;  %v5475_v58 = vadd.f32 %v5474_v54, %v5473_v43  ;;  %v5454_v44 = vpop.f32.mrb[86].mxu0  ;;  %v5476_v59 = vpop.f32.mrb[86].mxu1 }
0x135c   : > { %v5455_v60 = vpop.f32.mrb[87].mxu0  ;;  %v5477_v61 = vpop.f32.mrb[87].mxu1 }
0x135d   : > { %v4510_v62 = vadd.f32 %v5453_v57, %v4469_v56  ;;  %v5456_v63 = vadd.f32 %v5455_v60, %v5454_v44  ;;  %v5478_v46 = vadd.f32 %v5477_v61, %v5476_v59  ;;  %v5306_v60 = vld [vmem:[%s700_s18] ss:$0 sm:$0xff] }
0x135f   : > { %v4551_v0 = vadd.f32 %v5475_v58, %v4510_v62  ;;  %v4513_v1 = vadd.f32 %v5456_v63, %v4472_v50  ;;  %v5305_v58 = vld [vmem:[%s697_s2] ss:$0 sm:$0xff] }
0x1361   : > { %v4554_v3 = vadd.f32 %v5478_v46, %v4513_v1 }
0x1379   : > { %v5495_v4 = vpop.f32.mrb[88].mxu0 }
0x137a   : > { %v5517_v47 = vpop.f32.mrb[88].mxu1  ;;  %v5496_v9 = vpop.f32.mrb[89].mxu0 }
0x137b   : > { %v5497_v10 = vadd.f32 %v5496_v9, %v5495_v4  ;;  %v5518_v7 = vpop.f32.mrb[89].mxu1  ;;  %v5498_v11 = vpop.f32.mrb[90].mxu0 }
0x137c   : > { %v5519_v49 = vadd.f32 %v5518_v7, %v5517_v47  ;;  %v5520_v40 = vpop.f32.mrb[90].mxu1  ;;  %v5499_v12 = vpop.f32.mrb[91].mxu0 }
0x137d   : > { %v4592_v14 = vadd.f32 %v5497_v10, %v4551_v0  ;;  %v5500_v15 = vadd.f32 %v5499_v12, %v5498_v11  ;;  %v5521_v16 = vpop.f32.mrb[91].mxu1 }
0x137e   : > { %v5522_v42 = vadd.f32 %v5521_v16, %v5520_v40 }
0x137f   : > { %v4633_v17 = vadd.f32 %v5519_v49, %v4592_v14  ;;  %v4595_v20 = vadd.f32 %v5500_v15, %v4554_v3 }
0x1381   : > { %v4636_v21 = vadd.f32 %v5522_v42, %v4595_v20 }
0x1399   : > { %v5539_v23 = vpop.f32.mrb[92].mxu0 }
0x139a   : > { %v5561_v26 = vpop.f32.mrb[92].mxu1  ;;  %v5540_v27 = vpop.f32.mrb[93].mxu0 }
0x139b   : > { %v5541_v28 = vadd.f32 %v5540_v27, %v5539_v23  ;;  %v5562_v31 = vpop.f32.mrb[93].mxu1  ;;  %v5542_v32 = vpop.f32.mrb[94].mxu0 }
0x139c   : > { %v5563_v13 = vadd.f32 %v5562_v31, %v5561_v26  ;;  %v5564_v33 = vpop.f32.mrb[94].mxu1  ;;  %v5543_v2 = vpop.f32.mrb[95].mxu0 }
0x139d   : > { %v4674_v36 = vadd.f32 %v5541_v28, %v4633_v17  ;;  %v5544_v37 = vadd.f32 %v5543_v2, %v5542_v32  ;;  %v5565_v5 = vpop.f32.mrb[95].mxu1 }
0x139e   : > { %v5566_v38 = vadd.f32 %v5565_v5, %v5564_v33 }
0x139f   : > { %v4715_v39 = vadd.f32 %v5563_v13, %v4674_v36  ;;  %v4677_v25 = vadd.f32 %v5544_v37, %v4636_v21 }
0x13a1   : > { %v4718_v29 = vadd.f32 %v5566_v38, %v4677_v25  ;;  %v4721_v30 = vadd.f32 %v4715_v39, %v6561_v34 }
0x13a3   : > { %v4725_v52 = vsel %vm802_vm4, %v4721_v30, 0.0  ;;  %v4722_v6 = vadd.f32 %v4718_v29, %v6563_v35 }
0x13a4   : > { %4726 = vadd.xlane.f32.xlu0 %v4725_v52 }
0x13a5   : > { %v4728_v8 = vsel %vm802_vm4, %v4722_v6, 0.0 }
0x13a6   : > { %4729 = vadd.xlane.f32.xlu1 %v4728_v8 }
0x1431   : > { %v4727_v55 = vpop.xlane.xlu0 %4726 }
0x1432   : > { %v4731_v18 = vmul.f32 0.03125, %v4727_v55 }
0x1433   : > { %v4730_v41 = vpop.xlane.xlu1 %4729 }
0x1434   : > { %v4733_v45 = vsub.f32 %v4721_v30, %v4731_v18  ;;  %v4732_v48 = vmul.f32 0.03125, %v4730_v41 }
0x1436   : > { %v4734_v22 = vsub.f32 %v4722_v6, %v4732_v48  ;;  %v4735_v24 = vmul.f32 %v4733_v45, %v4733_v45 }
0x1438   : > { %v4737_v56 = vsel %vm802_vm4, %v4735_v24, 0.0  ;;  %v4736_v19 = vmul.f32 %v4734_v22, %v4734_v22 }
0x1439   : > { %4738 = vadd.xlane.f32.xlu0 %v4737_v56 }
0x143a   : > { %v4740_v34 = vsel %vm802_vm4, %v4736_v19, 0.0 }
0x143b   : > { %4741 = vadd.xlane.f32.xlu1 %v4740_v34 }
0x14c6   : > { %v4739_v35 = vpop.xlane.xlu0 %4738 }
0x14c7   : > { %v4743_v50 = vmul.f32 0.03125, %v4739_v35 }
0x14c8   : > { %v4742_v51 = vpop.xlane.xlu1 %4741 }
0x14c9   : > { %v4745_v43 = vadd.f32 1e-05, %v4743_v50  ;;  %v4744_v53 = vmul.f32 0.03125, %v4742_v51 }
0x14cb   : > { %6025 = vrsqrt.f32 %v4745_v43  ;;  %v4746_v54 = vadd.f32 1e-05, %v4744_v53 }
0x14cd   : > { %6027 = vrsqrt.f32 %v4746_v54 }
0x14d5   : > { %v6026_v57 = vpop.eup %6025 }
0x14d6   : > { %v4749_v44 = vmul.f32 %v6026_v57, %v4733_v45 }
0x14d7   : > { %v6028_v59 = vpop.eup %6027 }
0x14d8   : > { %v4757_v61 = vmul.f32 %v5305_v58, %v4749_v44  ;;  %v4750_v62 = vmul.f32 %v6028_v59, %v4734_v22  ;;  %4772 = sbr.rel (%p5307_p9) target bundleno = 5359 (0x14ef), region = 88 }
0x14da   : > { %v4765_v63 = vadd.f32 %v5306_v60, %v4757_v61  ;;  %v4758_v46 = vmul.f32 %v5305_v58, %v4750_v62 }
0x14dc   : > { %4767 = vst.msk [vmem:[#allocation2] sm:$0xff] %vm802_vm4, %v4765_v63  ;;  %v4766_v0 = vadd.f32 %v5306_v60, %v4758_v46  ;;  %v4773_v1 = vsel (!%p5307_p9), %vm802_vm4, %v4765_v63, 0.0 }
0x14dd   : > { %v4774_v4 = vrot.slane (!%p5307_p9), %v4773_v1, 4 }
0x14de   : > { %4768 = vst.msk [vmem:[#allocation2 + $0x8] sm:$0xff] %vm802_vm4, %v4766_v0  ;;  %v4780_v3 = vsel (!%p5307_p9), %vm802_vm4, %v4766_v0, 0.0 }
0x14df   : > { %v4781_v47 = vrot.slane %v4780_v3, 4  ;;  %v4775_v9 = vadd.f32 %v4774_v4, %v4773_v1 }
0x14e1   : > { %v4782_v10 = vadd.f32 %v4781_v47, %v4780_v3  ;;  %v4776_v7 = vrot.slane %v4775_v9, 2 }
0x14e3   : > { %v4783_v11 = vrot.slane %v4782_v10, 2  ;;  %v4777_v49 = vadd.f32 %v4776_v7, %v4775_v9 }
0x14e5   : > { %v4784_v40 = vadd.f32 %v4783_v11, %v4782_v10  ;;  %v4778_v12 = vrot.slane %v4777_v49, 1 }
0x14e7   : > { %v4785_v14 = vrot.slane %v4784_v40, 1  ;;  %v4779_v15 = vadd.f32 %v4778_v12, %v4777_v49 }
0x14e9   : > { %v4786_v16 = vadd.f32 %v4785_v14, %v4784_v40  ;;  %v4788_v42 = vmul.f32 0.125, %v4779_v15 }
0x14eb   : > { %v4789_v17 = vmul.f32 0.125, %v4786_v16 }
0x14ed   : > { %v4793_v20 = vsel %vm4792_vm7, %v4789_v17, %v4788_v42 }
0x14ee   : > { %4796 = vst.msk [vmem:[%s6264_s16] sm:$0x3] %vm4795_vm8, %v4793_v20 }
0x14ef PF: > { %s6906_s26 = sld [smem:[#allocation6_spill]]  ;;  %s6907_s18 = sld [smem:[#allocation4_spill]] }
0x14f0   : > { %s6908_s19 = sld [smem:[#allocation5_spill]]  ;;  %s6909_s20 = sld [smem:[#allocation7_spill]] }
0x14f1   : > { %s6910_s21 = sld [smem:[#allocation8_spill]] }
0x14f5   : > { %s25_s22 = sadd.s32 1, %s6906_s26  }
0x14f6   : > { %p22_p10 = scmp.ge.s32.totalorder %s25_s22, 6  }
0x14f8   :  { %24 = sbr.rel (!%p22_p10) target bundleno = 11 (0xb), region = 179 }

</bundles_post_ra>
